<compile_context>
chip_gen: v5e
topology: v5e:2x2
jax: 0.10.0
libtpu: 0.0.40
codegen_flags: <defaults>
</compile_context>

<pallas_src>
import jax
import jax.numpy as jnp
from jax import lax
from jax.experimental import pallas as pl
from jax.experimental.pallas import tpu as pltpu

NUM_BANK = 16   # cn1 .. cn16
NUM_HW = 4      # highway layers


def _shift_up(x, n):
    """out[t] = x[t + n] (zero-filled past the end); time axis is axis 0."""
    if n <= 0:
        return x
    L = x.shape[0]
    if n >= L:
        return jnp.zeros_like(x)
    pad = jnp.zeros((n,) + x.shape[1:], x.dtype)
    return jnp.concatenate([x[n:], pad], axis=0)


# ----------------------------------------------------------------------------
# Kernel 1: pre-net MLP + tap-fused conv bank + maxpool + cnp1/cnp2 + residual
#           + fused highway
# ----------------------------------------------------------------------------
def encoder_core_kernel(emb_ref, w1_ref, b1_ref, w2_ref, b2_ref,
                        wbank_ref, bbank_ref, bnb_scale_ref, bnb_shift_ref,
                        wp1_ref, bp1_ref, bnp1_scale_ref, bnp1_shift_ref,
                        wp2_ref, bp2_ref, bnp2_scale_ref, bnp2_shift_ref,
                        hw_w_ref, hw_b_ref,
                        out_ref, cbo_ref):
    f32 = jnp.float32
    bf16 = jnp.bfloat16
    L = emb_ref.shape[0]
    H2 = w2_ref.shape[1]
    NB = NUM_BANK

    # --- pre-net: pn1 -> relu -> (dropout=id) -> pn2 -> relu -> (dropout=id) ---
    x = emb_ref[...]
    h = jnp.maximum(
        jnp.dot(x.astype(bf16), w1_ref[...], preferred_element_type=f32)
        + b1_ref[...], 0.0)
    x2 = jnp.maximum(
        jnp.dot(h.astype(bf16), w2_ref[...], preferred_element_type=f32)
        + b2_ref[...], 0.0)                                   # == po6, (L, H2)
    x2b = x2.astype(bf16)

    # --- 16-branch conv bank, fused per tap ---------------------------------
    # Tap j contributes to every branch b >= j; the packed weight block for
    # tap j is concat_{b=j..15} W_b[:, :, j]  -> (H2, (16-j)*H2), and its
    # matmul result lands at cbo columns [j*H2, 16*H2).
    cbo_ref[...] = jnp.dot(x2b, wbank_ref[:, 0:NB * H2],
                           preferred_element_type=f32)        # tap 0, full width
    off = NB * H2
    for j in range(1, NB):
        width = (NB - j) * H2
        if j < L:  # x[t + j] is identically zero when j >= L
            xj = _shift_up(x2b, j)                            # (L, H2)
            contrib = jnp.dot(xj, wbank_ref[:, off:off + width],
                              preferred_element_type=f32)
            cbo_ref[:, j * H2:NB * H2] += contrib
        off += width

    # bias -> relu -> BN affine (module order: conv, relu, BN)
    cbo = jnp.maximum(cbo_ref[...] + bbank_ref[...], 0.0)
    cbo = cbo * bnb_scale_ref[...] + bnb_shift_ref[...]       # (L, 16*H2)

    # --- maxpool(2, stride 1, pad 1) then [:, :, 1:] == max(x[t], x[t+1]) ----
    neg = jnp.full((1, NB * H2), -jnp.inf, f32)
    mpo = jnp.maximum(cbo, jnp.concatenate([cbo[1:, :], neg], axis=0))
    mpo_b = mpo.astype(bf16)

    # --- cnp1 (k=3 forward-looking), relu, BN --------------------------------
    # Shift the small (L, H2) products instead of the wide (L, 16*H2) input.
    y1 = jnp.dot(mpo_b, wp1_ref[0], preferred_element_type=f32)
    for j in range(1, 3):
        if j < L:
            y1 = y1 + _shift_up(
                jnp.dot(mpo_b, wp1_ref[j], preferred_element_type=f32), j)
    y1 = jnp.maximum(y1 + bp1_ref[...], 0.0)
    y1 = y1 * bnp1_scale_ref[...] + bnp1_shift_ref[...]
    y1b = y1.astype(bf16)

    # --- cnp2 (k=3 forward-looking), BN (no relu), residual add with po6 -----
    y2 = jnp.dot(y1b, wp2_ref[0], preferred_element_type=f32)
    for j in range(1, 3):
        if j < L:
            y2 = y2 + _shift_up(
                jnp.dot(y1b, wp2_ref[j], preferred_element_type=f32), j)
    y2 = y2 + bp2_ref[...]
    y2 = y2 * bnp2_scale_ref[...] + bnp2_shift_ref[...]
    y = y2 + x2

    # --- highway (4 layers, f = relu), gate+transform fused ------------------
    for l in range(NUM_HW):
        z = (jnp.dot(y.astype(bf16), hw_w_ref[l], preferred_element_type=f32)
             + hw_b_ref[l:l + 1, :])                          # (L, 2*H2)
        g = jax.nn.sigmoid(z[:, 0:H2])
        nl = jnp.maximum(z[:, H2:2 * H2], 0.0)
        y = g * nl + (1.0 - g) * y

    out_ref[...] = y


# ----------------------------------------------------------------------------
# Kernel 2: bidirectional single-layer LSTM (batch = 1), PyTorch gate order ifgo
#           - fused fwd/bwd input projection, interleaved recurrences
# ----------------------------------------------------------------------------
def bilstm_kernel(x_ref, wih_ref, b_ref, whh_f_ref, whh_b_ref,
                  h0_ref, c0_ref,
                  out_ref, hn_ref, cn_ref,
                  xw_ref, hf_buf, hb_buf):
    f32 = jnp.float32
    bf16 = jnp.bfloat16
    L = x_ref.shape[0]
    H = whh_f_ref.shape[0]
    G = 4 * H

    # One (L, H) @ (H, 8H) matmul covers both directions' input projections.
    xw_ref[...] = (jnp.dot(x_ref[...].astype(bf16), wih_ref[...],
                           preferred_element_type=f32) + b_ref[...])

    whh_f = whh_f_ref[...]
    whh_b = whh_b_ref[...]

    def cell(z, c_prev):
        i = jax.nn.sigmoid(z[:, 0:H])
        f = jax.nn.sigmoid(z[:, H:2 * H])
        g = jnp.tanh(z[:, 2 * H:3 * H])
        o = jax.nn.sigmoid(z[:, 3 * H:4 * H])
        c = f * c_prev + i * g
        return o * jnp.tanh(c), c

    def step(i, carry):
        hf, cf, hb, cb = carry
        tf = i
        tb = L - 1 - i
        # Two independent per-step chains -> the LLO scheduler overlaps them.
        zf = (xw_ref[pl.ds(tf, 1), pl.ds(0, G)]
              + jnp.dot(hf.astype(bf16), whh_f, preferred_element_type=f32))
        zb = (xw_ref[pl.ds(tb, 1), pl.ds(G, G)]
              + jnp.dot(hb.astype(bf16), whh_b, preferred_element_type=f32))
        hf, cf = cell(zf, cf)
        hb, cb = cell(zb, cb)
        hf_buf[pl.ds(tf, 1), :] = hf
        hb_buf[pl.ds(tb, 1), :] = hb
        return (hf, cf, hb, cb)

    init = (h0_ref[0:1, :], c0_ref[0:1, :], h0_ref[1:2, :], c0_ref[1:2, :])
    # Full unroll for short sequences gives the scheduler cross-step visibility.
    lstm_unroll = True if L <= 64 else 8
    hf, cf, hb, cb = lax.fori_loop(0, L, step, init, unroll=lstm_unroll)

    # Single dense store of the full (L, 2H) output.
    out_ref[...] = jnp.concatenate([hf_buf[...], hb_buf[...]], axis=1)
    hn_ref[...] = jnp.concatenate([hf, hb], axis=0)
    cn_ref[...] = jnp.concatenate([cf, cb], axis=0)


# ----------------------------------------------------------------------------
# Wrappers
# ----------------------------------------------------------------------------
def _vmem():
    return pl.BlockSpec(memory_space=pltpu.MemorySpace.VMEM)


_COMPILER_PARAMS = pltpu.CompilerParams(vmem_limit_bytes=64 * 1024 * 1024)


def run_encoder_core(emb, p):
    L = emb.shape[0]
    H2 = p["w2"].shape[1]
    args = (emb, p["w1"], p["b1"], p["w2"], p["b2"],
            p["wbank_packed"], p["bbank"], p["bnb_scale"], p["bnb_shift"],
            p["wp1"], p["bp1"], p["bnp1_scale"], p["bnp1_shift"],
            p["wp2"], p["bp2"], p["bnp2_scale"], p["bnp2_shift"],
            p["hw_w"], p["hw_b"])
    return pl.pallas_call(
        encoder_core_kernel,
        out_shape=jax.ShapeDtypeStruct((L, H2), jnp.float32),
        in_specs=[_vmem() for _ in args],
        out_specs=_vmem(),
        scratch_shapes=[pltpu.VMEM((L, NUM_BANK * H2), jnp.float32)],
        compiler_params=_COMPILER_PARAMS,
    )(*args)


def run_bilstm(x, p, h0, c0):
    L, H = x.shape
    args = (x, p["wih"], p["b_lstm"], p["whh_f"], p["whh_b"], h0, c0)
    out_shape = (jax.ShapeDtypeStruct((L, 2 * H), jnp.float32),
                 jax.ShapeDtypeStruct((2, H), jnp.float32),
                 jax.ShapeDtypeStruct((2, H), jnp.float32))
    return pl.pallas_call(
        bilstm_kernel,
        out_shape=out_shape,
        in_specs=[_vmem() for _ in args],
        out_specs=(_vmem(), _vmem(), _vmem()),
        scratch_shapes=[pltpu.VMEM((L, 8 * H), jnp.float32),   # fused xw
                        pltpu.VMEM((L, H), jnp.float32),       # fwd hidden states
                        pltpu.VMEM((L, H), jnp.float32)],      # bwd hidden states
        compiler_params=_COMPILER_PARAMS,
    )(*args)


@jax.jit
def encoder_forward(tokens, hidden, params):
    """tokens: (L, 1) int32; hidden: (h0, c0) each (2, 1, H2).
    Returns (output (L, 1, 2*H2), (hn, cn) each (2, 1, H2)), matching PyTorch."""
    h0, c0 = hidden
    # input.transpose(0, 1) -> embedding -> squeeze(0)
    idx = tokens.transpose(1, 0).reshape(-1)
    embedded = params["embedding"][idx]                     # (L, H1) (glue gather)
    ohl = run_encoder_core(embedded, params)                # (L, H2)
    out, hn, cn = run_bilstm(ohl, params, h0[:, 0, :], c0[:, 0, :])
    return out[:, None, :], (hn[:, None, :], cn[:, None, :])


# ----------------------------------------------------------------------------
# Deterministic parameter construction (synthetic, not a checkpoint)
# ----------------------------------------------------------------------------
def init_params(key, vocab, H1, H2):
    keys = iter(jax.random.split(key, 64))
    f32 = jnp.float32
    bf16 = jnp.bfloat16
    nrm = lambda shape, s=0.05: (s * jax.random.normal(next(keys), shape)).astype(f32)

    p = {}
    p["embedding"] = nrm((vocab, H1), 0.1)

    # pre-net linears, stored transposed: y = x @ W + b  (weights bf16)
    p["w1"] = nrm((H1, H1)).astype(bf16); p["b1"] = nrm((1, H1))
    p["w2"] = nrm((H1, H2)).astype(bf16); p["b2"] = nrm((1, H2))

    # Conv bank.  Conceptual layout: wbank[b, j, cin, cout] == torch
    # cn{b+1}.weight[cout, cin, j]; taps j >= k do not exist for branch b.
    # Packed per-tap: for tap j concat over branches b = j..15  -> (H2, 136*H2).
    wbank = nrm((NUM_BANK, NUM_BANK, H2, H2))
    tap_blocks = []
    for j in range(NUM_BANK):
        tap_blocks.append(
            jnp.concatenate([wbank[b, j] for b in range(j, NUM_BANK)], axis=1))
    p["wbank_packed"] = jnp.concatenate(tap_blocks, axis=1).astype(bf16)
    p["bbank"] = nrm((NUM_BANK, H2)).reshape(1, NUM_BANK * H2)

    def bn_affine(shape):
        gamma = 1.0 + 0.1 * jax.random.normal(next(keys), shape)
        beta = 0.05 * jax.random.normal(next(keys), shape)
        mean = 0.05 * jax.random.normal(next(keys), shape)
        var = 1.0 + 0.1 * jax.random.uniform(next(keys), shape)
        scale = gamma / jnp.sqrt(var + 1e-5)
        shift = beta - mean * scale
        return scale.astype(f32), shift.astype(f32)

    sb, hb = bn_affine((NUM_BANK, H2))
    p["bnb_scale"] = sb.reshape(1, NUM_BANK * H2)
    p["bnb_shift"] = hb.reshape(1, NUM_BANK * H2)

    # cnp1: torch weight (H2, 16*H2, 3) -> wp1[j, cin, cout]
    p["wp1"] = nrm((3, NUM_BANK * H2, H2)).astype(bf16); p["bp1"] = nrm((1, H2))
    p["bnp1_scale"], p["bnp1_shift"] = bn_affine((1, H2))
    # cnp2: torch weight (H2, H2, 3) -> wp2[j, cin, cout]
    p["wp2"] = nrm((3, H2, H2)).astype(bf16); p["bp2"] = nrm((1, H2))
    p["bnp2_scale"], p["bnp2_shift"] = bn_affine((1, H2))

    # highway: [Wg | Wh] fused along the output dim; biases likewise.
    p["hw_w"] = nrm((NUM_HW, H2, 2 * H2)).astype(bf16)
    p["hw_b"] = nrm((NUM_HW, 2 * H2))

    # bidirectional LSTM, gate order i,f,g,o; combined bias (b_ih + b_hh) == 0
    # per the module's documented init.  Input weights fused [fwd | bwd].
    p["wih"] = nrm((H2, 8 * H2), 0.01).astype(bf16)
    p["b_lstm"] = jnp.zeros((1, 8 * H2), f32)
    p["whh_f"] = nrm((H2, 4 * H2), 0.01).astype(bf16)
    p["whh_b"] = nrm((H2, 4 * H2), 0.01).astype(bf16)
    return p


if __name__ == "__main__":
    L, VOCAB, H1, H2 = 8, 50, 32, 32
    root = jax.random.PRNGKey(0)
    k_params, k_tok = jax.random.split(root)
    params = init_params(k_params, VOCAB, H1, H2)

    tokens = jax.random.randint(k_tok, (L, 1), 0, VOCAB, dtype=jnp.int32)
    h0 = jnp.zeros((2, 1, H2), jnp.float32)   # initHidden()
    c0 = jnp.zeros((2, 1, H2), jnp.float32)

    output, (hn, cn) = encoder_forward(tokens, (h0, c0), params)
    jax.block_until_ready((output, hn, cn))

    assert output.shape == (L, 1, 2 * H2)
    assert hn.shape == (2, 1, H2) and cn.shape == (2, 1, H2)
    assert bool(jnp.all(jnp.isfinite(output)))
    print("KERNEL_OK")
</pallas_src>

<mosaic_0001>
module attributes {stable_mosaic.version = 11 : i64} {
  func.func @bilstm_kernel(%arg0: memref<8x32xf32, #tpu.memory_space<vmem>>, %arg1: memref<32x256xbf16, #tpu.memory_space<vmem>>, %arg2: memref<1x256xf32, #tpu.memory_space<vmem>>, %arg3: memref<32x128xbf16, #tpu.memory_space<vmem>>, %arg4: memref<32x128xbf16, #tpu.memory_space<vmem>>, %arg5: memref<2x32xf32, #tpu.memory_space<vmem>>, %arg6: memref<2x32xf32, #tpu.memory_space<vmem>>, %arg7: memref<8x64xf32, #tpu.memory_space<vmem>>, %arg8: memref<2x32xf32, #tpu.memory_space<vmem>>, %arg9: memref<2x32xf32, #tpu.memory_space<vmem>>, %arg10: memref<8x256xf32, #tpu.memory_space<vmem>>, %arg11: memref<8x32xf32, #tpu.memory_space<vmem>>, %arg12: memref<8x32xf32, #tpu.memory_space<vmem>>) attributes {dimension_semantics = [], scalar_prefetch = 0 : i64, scratch_operands = 3 : i64, tpu.core_type = #tpu.core_type<tc>} {
    %c0 = arith.constant 0 : index
    %c0_0 = arith.constant 0 : index
    %0 = vector.load %arg0[%c0, %c0_0] : memref<8x32xf32, #tpu.memory_space<vmem>>, vector<8x32xf32>
    %1 = arith.truncf %0 : vector<8x32xf32> to vector<8x32xbf16>
    %c0_1 = arith.constant 0 : index
    %c0_2 = arith.constant 0 : index
    %2 = vector.load %arg1[%c0_1, %c0_2] : memref<32x256xbf16, #tpu.memory_space<vmem>>, vector<32x256xbf16>
    %cst = arith.constant dense<0.000000e+00> : vector<8x256xf32>
    %3 = tpu.matmul %1, %2, %cst {dimension_numbers = #tpu.dot_dimension_numbers<[1], [0], [0], [1], [0, 0, 1, 1], [], []>} : vector<8x32xbf16>, vector<32x256xbf16>, vector<8x256xf32> -> vector<8x256xf32>
    %c0_3 = arith.constant 0 : index
    %c0_4 = arith.constant 0 : index
    %4 = vector.load %arg2[%c0_3, %c0_4] : memref<1x256xf32, #tpu.memory_space<vmem>>, vector<1x256xf32>
    %5 = vector.broadcast %4 : vector<1x256xf32> to vector<8x256xf32>
    %6 = arith.addf %3, %5 : vector<8x256xf32>
    %c0_5 = arith.constant 0 : index
    %c0_6 = arith.constant 0 : index
    %7 = vector.load %arg10[%c0_5, %c0_6] : memref<8x256xf32, #tpu.memory_space<vmem>>, vector<8x256xf32>
    tpu.vector_store %arg10[%c0_5, %c0_6], %6 {strides = array<i32>} : memref<8x256xf32, #tpu.memory_space<vmem>>, vector<8x256xf32>,
    %c0_7 = arith.constant 0 : index
    %c0_8 = arith.constant 0 : index
    %8 = vector.load %arg3[%c0_7, %c0_8] : memref<32x128xbf16, #tpu.memory_space<vmem>>, vector<32x128xbf16>
    %c0_9 = arith.constant 0 : index
    %c0_10 = arith.constant 0 : index
    %9 = vector.load %arg4[%c0_9, %c0_10] : memref<32x128xbf16, #tpu.memory_space<vmem>>, vector<32x128xbf16>
    %c0_11 = arith.constant 0 : index
    %c0_12 = arith.constant 0 : index
    %10 = vector.load %arg5[%c0_11, %c0_12] : memref<2x32xf32, #tpu.memory_space<vmem>>, vector<1x32xf32>
    %c0_13 = arith.constant 0 : index
    %c0_14 = arith.constant 0 : index
    %11 = vector.load %arg6[%c0_13, %c0_14] : memref<2x32xf32, #tpu.memory_space<vmem>>, vector<1x32xf32>
    %c1 = arith.constant 1 : index
    %c0_15 = arith.constant 0 : index
    %12 = vector.load %arg5[%c1, %c0_15] : memref<2x32xf32, #tpu.memory_space<vmem>>, vector<1x32xf32>
    %c1_16 = arith.constant 1 : index
    %c0_17 = arith.constant 0 : index
    %13 = vector.load %arg6[%c1_16, %c0_17] : memref<2x32xf32, #tpu.memory_space<vmem>>, vector<1x32xf32>
    %c0_i32 = arith.constant 0 : i32
    %c7_i32 = arith.constant 7 : i32
    %14 = arith.subi %c7_i32, %c0_i32 : i32
    %15 = arith.index_cast %c0_i32 : i32 to index
    %c0_18 = arith.constant 0 : index
    %16 = vector.load %arg10[%15, %c0_18] : memref<8x256xf32, #tpu.memory_space<vmem>>, vector<1x128xf32>
    %17 = arith.truncf %10 : vector<1x32xf32> to vector<1x32xbf16>
    %cst_19 = arith.constant dense<0.000000e+00> : vector<1x128xf32>
    %18 = tpu.matmul %17, %8, %cst_19 {dimension_numbers = #tpu.dot_dimension_numbers<[1], [0], [0], [1], [0, 0, 1, 1], [], []>} : vector<1x32xbf16>, vector<32x128xbf16>, vector<1x128xf32> -> vector<1x128xf32>
    %19 = arith.addf %16, %18 : vector<1x128xf32>
    %20 = arith.index_cast %14 : i32 to index
    %c128 = arith.constant 128 : index
    %21 = vector.load %arg10[%20, %c128] : memref<8x256xf32, #tpu.memory_space<vmem>>, vector<1x128xf32>
    %22 = arith.truncf %12 : vector<1x32xf32> to vector<1x32xbf16>
    %cst_20 = arith.constant dense<0.000000e+00> : vector<1x128xf32>
    %23 = tpu.matmul %22, %9, %cst_20 {dimension_numbers = #tpu.dot_dimension_numbers<[1], [0], [0], [1], [0, 0, 1, 1], [], []>} : vector<1x32xbf16>, vector<32x128xbf16>, vector<1x128xf32> -> vector<1x128xf32>
    %24 = arith.addf %21, %23 : vector<1x128xf32>
    %25 = vector.extract_strided_slice %19 {offsets = [0, 0], sizes = [1, 32], strides = [1, 1]} : vector<1x128xf32> to vector<1x32xf32>
    %26 = arith.negf %25 : vector<1x32xf32>
    %27 = math.exp %26 : vector<1x32xf32>
    %cst_21 = arith.constant 1.000000e+00 : f32
    %28 = vector.broadcast %cst_21 : f32 to vector<1x32xf32>
    %29 = arith.addf %28, %27 : vector<1x32xf32>
    %30 = arith.divf %28, %29 : vector<1x32xf32>
    %31 = vector.extract_strided_slice %19 {offsets = [0, 32], sizes = [1, 32], strides = [1, 1]} : vector<1x128xf32> to vector<1x32xf32>
    %32 = arith.negf %31 : vector<1x32xf32>
    %33 = math.exp %32 : vector<1x32xf32>
    %cst_22 = arith.constant 1.000000e+00 : f32
    %34 = vector.broadcast %cst_22 : f32 to vector<1x32xf32>
    %35 = arith.addf %34, %33 : vector<1x32xf32>
    %36 = arith.divf %34, %35 : vector<1x32xf32>
    %37 = vector.extract_strided_slice %19 {offsets = [0, 64], sizes = [1, 32], strides = [1, 1]} : vector<1x128xf32> to vector<1x32xf32>
    %38 = math.tanh %37 : vector<1x32xf32>
    %39 = vector.extract_strided_slice %19 {offsets = [0, 96], sizes = [1, 32], strides = [1, 1]} : vector<1x128xf32> to vector<1x32xf32>
    %40 = arith.negf %39 : vector<1x32xf32>
    %41 = math.exp %40 : vector<1x32xf32>
    %cst_23 = arith.constant 1.000000e+00 : f32
    %42 = vector.broadcast %cst_23 : f32 to vector<1x32xf32>
    %43 = arith.addf %42, %41 : vector<1x32xf32>
    %44 = arith.divf %42, %43 : vector<1x32xf32>
    %45 = arith.mulf %36, %11 : vector<1x32xf32>
    %46 = arith.mulf %30, %38 : vector<1x32xf32>
    %47 = arith.addf %45, %46 : vector<1x32xf32>
    %48 = math.tanh %47 : vector<1x32xf32>
    %49 = arith.mulf %44, %48 : vector<1x32xf32>
    %50 = vector.extract_strided_slice %24 {offsets = [0, 0], sizes = [1, 32], strides = [1, 1]} : vector<1x128xf32> to vector<1x32xf32>
    %51 = arith.negf %50 : vector<1x32xf32>
    %52 = math.exp %51 : vector<1x32xf32>
    %cst_24 = arith.constant 1.000000e+00 : f32
    %53 = vector.broadcast %cst_24 : f32 to vector<1x32xf32>
    %54 = arith.addf %53, %52 : vector<1x32xf32>
    %55 = arith.divf %53, %54 : vector<1x32xf32>
    %56 = vector.extract_strided_slice %24 {offsets = [0, 32], sizes = [1, 32], strides = [1, 1]} : vector<1x128xf32> to vector<1x32xf32>
    %57 = arith.negf %56 : vector<1x32xf32>
    %58 = math.exp %57 : vector<1x32xf32>
    %cst_25 = arith.constant 1.000000e+00 : f32
    %59 = vector.broadcast %cst_25 : f32 to vector<1x32xf32>
    %60 = arith.addf %59, %58 : vector<1x32xf32>
    %61 = arith.divf %59, %60 : vector<1x32xf32>
    %62 = vector.extract_strided_slice %24 {offsets = [0, 64], sizes = [1, 32], strides = [1, 1]} : vector<1x128xf32> to vector<1x32xf32>
    %63 = math.tanh %62 : vector<1x32xf32>
    %64 = vector.extract_strided_slice %24 {offsets = [0, 96], sizes = [1, 32], strides = [1, 1]} : vector<1x128xf32> to vector<1x32xf32>
    %65 = arith.negf %64 : vector<1x32xf32>
    %66 = math.exp %65 : vector<1x32xf32>
    %cst_26 = arith.constant 1.000000e+00 : f32
    %67 = vector.broadcast %cst_26 : f32 to vector<1x32xf32>
    %68 = arith.addf %67, %66 : vector<1x32xf32>
    %69 = arith.divf %67, %68 : vector<1x32xf32>
    %70 = arith.mulf %61, %13 : vector<1x32xf32>
    %71 = arith.mulf %55, %63 : vector<1x32xf32>
    %72 = arith.addf %70, %71 : vector<1x32xf32>
    %73 = math.tanh %72 : vector<1x32xf32>
    %74 = arith.mulf %69, %73 : vector<1x32xf32>
    %75 = arith.index_cast %c0_i32 : i32 to index
    %c0_27 = arith.constant 0 : index
    %76 = vector.load %arg11[%75, %c0_27] : memref<8x32xf32, #tpu.memory_space<vmem>>, vector<1x32xf32>
    tpu.vector_store %arg11[%75, %c0_27], %49 {strides = array<i32>} : memref<8x32xf32, #tpu.memory_space<vmem>>, vector<1x32xf32>,
    %77 = arith.index_cast %14 : i32 to index
    %c0_28 = arith.constant 0 : index
    %78 = vector.load %arg12[%77, %c0_28] : memref<8x32xf32, #tpu.memory_space<vmem>>, vector<1x32xf32>
    tpu.vector_store %arg12[%77, %c0_28], %74 {strides = array<i32>} : memref<8x32xf32, #tpu.memory_space<vmem>>, vector<1x32xf32>,
    %c1_i32 = arith.constant 1 : i32
    %c7_i32_29 = arith.constant 7 : i32
    %79 = arith.subi %c7_i32_29, %c1_i32 : i32
    %80 = arith.index_cast %c1_i32 : i32 to index
    %c0_30 = arith.constant 0 : index
    %81 = vector.load %arg10[%80, %c0_30] : memref<8x256xf32, #tpu.memory_space<vmem>>, vector<1x128xf32>
    %82 = arith.truncf %49 : vector<1x32xf32> to vector<1x32xbf16>
    %cst_31 = arith.constant dense<0.000000e+00> : vector<1x128xf32>
    %83 = tpu.matmul %82, %8, %cst_31 {dimension_numbers = #tpu.dot_dimension_numbers<[1], [0], [0], [1], [0, 0, 1, 1], [], []>} : vector<1x32xbf16>, vector<32x128xbf16>, vector<1x128xf32> -> vector<1x128xf32>
    %84 = arith.addf %81, %83 : vector<1x128xf32>
    %85 = arith.index_cast %79 : i32 to index
    %c128_32 = arith.constant 128 : index
    %86 = vector.load %arg10[%85, %c128_32] : memref<8x256xf32, #tpu.memory_space<vmem>>, vector<1x128xf32>
    %87 = arith.truncf %74 : vector<1x32xf32> to vector<1x32xbf16>
    %cst_33 = arith.constant dense<0.000000e+00> : vector<1x128xf32>
    %88 = tpu.matmul %87, %9, %cst_33 {dimension_numbers = #tpu.dot_dimension_numbers<[1], [0], [0], [1], [0, 0, 1, 1], [], []>} : vector<1x32xbf16>, vector<32x128xbf16>, vector<1x128xf32> -> vector<1x128xf32>
    %89 = arith.addf %86, %88 : vector<1x128xf32>
    %90 = vector.extract_strided_slice %84 {offsets = [0, 0], sizes = [1, 32], strides = [1, 1]} : vector<1x128xf32> to vector<1x32xf32>
    %91 = arith.negf %90 : vector<1x32xf32>
    %92 = math.exp %91 : vector<1x32xf32>
    %cst_34 = arith.constant 1.000000e+00 : f32
    %93 = vector.broadcast %cst_34 : f32 to vector<1x32xf32>
    %94 = arith.addf %93, %92 : vector<1x32xf32>
    %95 = arith.divf %93, %94 : vector<1x32xf32>
    %96 = vector.extract_strided_slice %84 {offsets = [0, 32], sizes = [1, 32], strides = [1, 1]} : vector<1x128xf32> to vector<1x32xf32>
    %97 = arith.negf %96 : vector<1x32xf32>
    %98 = math.exp %97 : vector<1x32xf32>
    %cst_35 = arith.constant 1.000000e+00 : f32
    %99 = vector.broadcast %cst_35 : f32 to vector<1x32xf32>
    %100 = arith.addf %99, %98 : vector<1x32xf32>
    %101 = arith.divf %99, %100 : vector<1x32xf32>
    %102 = vector.extract_strided_slice %84 {offsets = [0, 64], sizes = [1, 32], strides = [1, 1]} : vector<1x128xf32> to vector<1x32xf32>
    %103 = math.tanh %102 : vector<1x32xf32>
    %104 = vector.extract_strided_slice %84 {offsets = [0, 96], sizes = [1, 32], strides = [1, 1]} : vector<1x128xf32> to vector<1x32xf32>
    %105 = arith.negf %104 : vector<1x32xf32>
    %106 = math.exp %105 : vector<1x32xf32>
    %cst_36 = arith.constant 1.000000e+00 : f32
    %107 = vector.broadcast %cst_36 : f32 to vector<1x32xf32>
    %108 = arith.addf %107, %106 : vector<1x32xf32>
    %109 = arith.divf %107, %108 : vector<1x32xf32>
    %110 = arith.mulf %101, %47 : vector<1x32xf32>
    %111 = arith.mulf %95, %103 : vector<1x32xf32>
    %112 = arith.addf %110, %111 : vector<1x32xf32>
    %113 = math.tanh %112 : vector<1x32xf32>
    %114 = arith.mulf %109, %113 : vector<1x32xf32>
    %115 = vector.extract_strided_slice %89 {offsets = [0, 0], sizes = [1, 32], strides = [1, 1]} : vector<1x128xf32> to vector<1x32xf32>
    %116 = arith.negf %115 : vector<1x32xf32>
    %117 = math.exp %116 : vector<1x32xf32>
    %cst_37 = arith.constant 1.000000e+00 : f32
    %118 = vector.broadcast %cst_37 : f32 to vector<1x32xf32>
    %119 = arith.addf %118, %117 : vector<1x32xf32>
    %120 = arith.divf %118, %119 : vector<1x32xf32>
    %121 = vector.extract_strided_slice %89 {offsets = [0, 32], sizes = [1, 32], strides = [1, 1]} : vector<1x128xf32> to vector<1x32xf32>
    %122 = arith.negf %121 : vector<1x32xf32>
    %123 = math.exp %122 : vector<1x32xf32>
    %cst_38 = arith.constant 1.000000e+00 : f32
    %124 = vector.broadcast %cst_38 : f32 to vector<1x32xf32>
    %125 = arith.addf %124, %123 : vector<1x32xf32>
    %126 = arith.divf %124, %125 : vector<1x32xf32>
    %127 = vector.extract_strided_slice %89 {offsets = [0, 64], sizes = [1, 32], strides = [1, 1]} : vector<1x128xf32> to vector<1x32xf32>
    %128 = math.tanh %127 : vector<1x32xf32>
    %129 = vector.extract_strided_slice %89 {offsets = [0, 96], sizes = [1, 32], strides = [1, 1]} : vector<1x128xf32> to vector<1x32xf32>
    %130 = arith.negf %129 : vector<1x32xf32>
    %131 = math.exp %130 : vector<1x32xf32>
    %cst_39 = arith.constant 1.000000e+00 : f32
    %132 = vector.broadcast %cst_39 : f32 to vector<1x32xf32>
    %133 = arith.addf %132, %131 : vector<1x32xf32>
    %134 = arith.divf %132, %133 : vector<1x32xf32>
    %135 = arith.mulf %126, %72 : vector<1x32xf32>
    %136 = arith.mulf %120, %128 : vector<1x32xf32>
    %137 = arith.addf %135, %136 : vector<1x32xf32>
    %138 = math.tanh %137 : vector<1x32xf32>
    %139 = arith.mulf %134, %138 : vector<1x32xf32>
    %140 = arith.index_cast %c1_i32 : i32 to index
    %c0_40 = arith.constant 0 : index
    %141 = vector.load %arg11[%140, %c0_40] : memref<8x32xf32, #tpu.memory_space<vmem>>, vector<1x32xf32>
    tpu.vector_store %arg11[%140, %c0_40], %114 {strides = array<i32>} : memref<8x32xf32, #tpu.memory_space<vmem>>, vector<1x32xf32>,
    %142 = arith.index_cast %79 : i32 to index
    %c0_41 = arith.constant 0 : index
    %143 = vector.load %arg12[%142, %c0_41] : memref<8x32xf32, #tpu.memory_space<vmem>>, vector<1x32xf32>
    tpu.vector_store %arg12[%142, %c0_41], %139 {strides = array<i32>} : memref<8x32xf32, #tpu.memory_space<vmem>>, vector<1x32xf32>,
    %c2_i32 = arith.constant 2 : i32
    %c7_i32_42 = arith.constant 7 : i32
    %144 = arith.subi %c7_i32_42, %c2_i32 : i32
    %145 = arith.index_cast %c2_i32 : i32 to index
    %c0_43 = arith.constant 0 : index
    %146 = vector.load %arg10[%145, %c0_43] : memref<8x256xf32, #tpu.memory_space<vmem>>, vector<1x128xf32>
    %147 = arith.truncf %114 : vector<1x32xf32> to vector<1x32xbf16>
    %cst_44 = arith.constant dense<0.000000e+00> : vector<1x128xf32>
    %148 = tpu.matmul %147, %8, %cst_44 {dimension_numbers = #tpu.dot_dimension_numbers<[1], [0], [0], [1], [0, 0, 1, 1], [], []>} : vector<1x32xbf16>, vector<32x128xbf16>, vector<1x128xf32> -> vector<1x128xf32>
    %149 = arith.addf %146, %148 : vector<1x128xf32>
    %150 = arith.index_cast %144 : i32 to index
    %c128_45 = arith.constant 128 : index
    %151 = vector.load %arg10[%150, %c128_45] : memref<8x256xf32, #tpu.memory_space<vmem>>, vector<1x128xf32>
    %152 = arith.truncf %139 : vector<1x32xf32> to vector<1x32xbf16>
    %cst_46 = arith.constant dense<0.000000e+00> : vector<1x128xf32>
    %153 = tpu.matmul %152, %9, %cst_46 {dimension_numbers = #tpu.dot_dimension_numbers<[1], [0], [0], [1], [0, 0, 1, 1], [], []>} : vector<1x32xbf16>, vector<32x128xbf16>, vector<1x128xf32> -> vector<1x128xf32>
    %154 = arith.addf %151, %153 : vector<1x128xf32>
    %155 = vector.extract_strided_slice %149 {offsets = [0, 0], sizes = [1, 32], strides = [1, 1]} : vector<1x128xf32> to vector<1x32xf32>
    %156 = arith.negf %155 : vector<1x32xf32>
    %157 = math.exp %156 : vector<1x32xf32>
    %cst_47 = arith.constant 1.000000e+00 : f32
    %158 = vector.broadcast %cst_47 : f32 to vector<1x32xf32>
    %159 = arith.addf %158, %157 : vector<1x32xf32>
    %160 = arith.divf %158, %159 : vector<1x32xf32>
    %161 = vector.extract_strided_slice %149 {offsets = [0, 32], sizes = [1, 32], strides = [1, 1]} : vector<1x128xf32> to vector<1x32xf32>
    %162 = arith.negf %161 : vector<1x32xf32>
    %163 = math.exp %162 : vector<1x32xf32>
    %cst_48 = arith.constant 1.000000e+00 : f32
    %164 = vector.broadcast %cst_48 : f32 to vector<1x32xf32>
    %165 = arith.addf %164, %163 : vector<1x32xf32>
    %166 = arith.divf %164, %165 : vector<1x32xf32>
    %167 = vector.extract_strided_slice %149 {offsets = [0, 64], sizes = [1, 32], strides = [1, 1]} : vector<1x128xf32> to vector<1x32xf32>
    %168 = math.tanh %167 : vector<1x32xf32>
    %169 = vector.extract_strided_slice %149 {offsets = [0, 96], sizes = [1, 32], strides = [1, 1]} : vector<1x128xf32> to vector<1x32xf32>
    %170 = arith.negf %169 : vector<1x32xf32>
    %171 = math.exp %170 : vector<1x32xf32>
    %cst_49 = arith.constant 1.000000e+00 : f32
    %172 = vector.broadcast %cst_49 : f32 to vector<1x32xf32>
    %173 = arith.addf %172, %171 : vector<1x32xf32>
    %174 = arith.divf %172, %173 : vector<1x32xf32>
    %175 = arith.mulf %166, %112 : vector<1x32xf32>
    %176 = arith.mulf %160, %168 : vector<1x32xf32>
    %177 = arith.addf %175, %176 : vector<1x32xf32>
    %178 = math.tanh %177 : vector<1x32xf32>
    %179 = arith.mulf %174, %178 : vector<1x32xf32>
    %180 = vector.extract_strided_slice %154 {offsets = [0, 0], sizes = [1, 32], strides = [1, 1]} : vector<1x128xf32> to vector<1x32xf32>
    %181 = arith.negf %180 : vector<1x32xf32>
    %182 = math.exp %181 : vector<1x32xf32>
    %cst_50 = arith.constant 1.000000e+00 : f32
    %183 = vector.broadcast %cst_50 : f32 to vector<1x32xf32>
    %184 = arith.addf %183, %182 : vector<1x32xf32>
    %185 = arith.divf %183, %184 : vector<1x32xf32>
    %186 = vector.extract_strided_slice %154 {offsets = [0, 32], sizes = [1, 32], strides = [1, 1]} : vector<1x128xf32> to vector<1x32xf32>
    %187 = arith.negf %186 : vector<1x32xf32>
    %188 = math.exp %187 : vector<1x32xf32>
    %cst_51 = arith.constant 1.000000e+00 : f32
    %189 = vector.broadcast %cst_51 : f32 to vector<1x32xf32>
    %190 = arith.addf %189, %188 : vector<1x32xf32>
    %191 = arith.divf %189, %190 : vector<1x32xf32>
    %192 = vector.extract_strided_slice %154 {offsets = [0, 64], sizes = [1, 32], strides = [1, 1]} : vector<1x128xf32> to vector<1x32xf32>
    %193 = math.tanh %192 : vector<1x32xf32>
    %194 = vector.extract_strided_slice %154 {offsets = [0, 96], sizes = [1, 32], strides = [1, 1]} : vector<1x128xf32> to vector<1x32xf32>
    %195 = arith.negf %194 : vector<1x32xf32>
    %196 = math.exp %195 : vector<1x32xf32>
    %cst_52 = arith.constant 1.000000e+00 : f32
    %197 = vector.broadcast %cst_52 : f32 to vector<1x32xf32>
    %198 = arith.addf %197, %196 : vector<1x32xf32>
    %199 = arith.divf %197, %198 : vector<1x32xf32>
    %200 = arith.mulf %191, %137 : vector<1x32xf32>
    %201 = arith.mulf %185, %193 : vector<1x32xf32>
    %202 = arith.addf %200, %201 : vector<1x32xf32>
    %203 = math.tanh %202 : vector<1x32xf32>
    %204 = arith.mulf %199, %203 : vector<1x32xf32>
    %205 = arith.index_cast %c2_i32 : i32 to index
    %c0_53 = arith.constant 0 : index
    %206 = vector.load %arg11[%205, %c0_53] : memref<8x32xf32, #tpu.memory_space<vmem>>, vector<1x32xf32>
    tpu.vector_store %arg11[%205, %c0_53], %179 {strides = array<i32>} : memref<8x32xf32, #tpu.memory_space<vmem>>, vector<1x32xf32>,
    %207 = arith.index_cast %144 : i32 to index
    %c0_54 = arith.constant 0 : index
    %208 = vector.load %arg12[%207, %c0_54] : memref<8x32xf32, #tpu.memory_space<vmem>>, vector<1x32xf32>
    tpu.vector_store %arg12[%207, %c0_54], %204 {strides = array<i32>} : memref<8x32xf32, #tpu.memory_space<vmem>>, vector<1x32xf32>,
    %c3_i32 = arith.constant 3 : i32
    %c7_i32_55 = arith.constant 7 : i32
    %209 = arith.subi %c7_i32_55, %c3_i32 : i32
    %210 = arith.index_cast %c3_i32 : i32 to index
    %c0_56 = arith.constant 0 : index
    %211 = vector.load %arg10[%210, %c0_56] : memref<8x256xf32, #tpu.memory_space<vmem>>, vector<1x128xf32>
    %212 = arith.truncf %179 : vector<1x32xf32> to vector<1x32xbf16>
    %cst_57 = arith.constant dense<0.000000e+00> : vector<1x128xf32>
    %213 = tpu.matmul %212, %8, %cst_57 {dimension_numbers = #tpu.dot_dimension_numbers<[1], [0], [0], [1], [0, 0, 1, 1], [], []>} : vector<1x32xbf16>, vector<32x128xbf16>, vector<1x128xf32> -> vector<1x128xf32>
    %214 = arith.addf %211, %213 : vector<1x128xf32>
    %215 = arith.index_cast %209 : i32 to index
    %c128_58 = arith.constant 128 : index
    %216 = vector.load %arg10[%215, %c128_58] : memref<8x256xf32, #tpu.memory_space<vmem>>, vector<1x128xf32>
    %217 = arith.truncf %204 : vector<1x32xf32> to vector<1x32xbf16>
    %cst_59 = arith.constant dense<0.000000e+00> : vector<1x128xf32>
    %218 = tpu.matmul %217, %9, %cst_59 {dimension_numbers = #tpu.dot_dimension_numbers<[1], [0], [0], [1], [0, 0, 1, 1], [], []>} : vector<1x32xbf16>, vector<32x128xbf16>, vector<1x128xf32> -> vector<1x128xf32>
    %219 = arith.addf %216, %218 : vector<1x128xf32>
    %220 = vector.extract_strided_slice %214 {offsets = [0, 0], sizes = [1, 32], strides = [1, 1]} : vector<1x128xf32> to vector<1x32xf32>
    %221 = arith.negf %220 : vector<1x32xf32>
    %222 = math.exp %221 : vector<1x32xf32>
    %cst_60 = arith.constant 1.000000e+00 : f32
    %223 = vector.broadcast %cst_60 : f32 to vector<1x32xf32>
    %224 = arith.addf %223, %222 : vector<1x32xf32>
    %225 = arith.divf %223, %224 : vector<1x32xf32>
    %226 = vector.extract_strided_slice %214 {offsets = [0, 32], sizes = [1, 32], strides = [1, 1]} : vector<1x128xf32> to vector<1x32xf32>
    %227 = arith.negf %226 : vector<1x32xf32>
    %228 = math.exp %227 : vector<1x32xf32>
    %cst_61 = arith.constant 1.000000e+00 : f32
    %229 = vector.broadcast %cst_61 : f32 to vector<1x32xf32>
    %230 = arith.addf %229, %228 : vector<1x32xf32>
    %231 = arith.divf %229, %230 : vector<1x32xf32>
    %232 = vector.extract_strided_slice %214 {offsets = [0, 64], sizes = [1, 32], strides = [1, 1]} : vector<1x128xf32> to vector<1x32xf32>
    %233 = math.tanh %232 : vector<1x32xf32>
    %234 = vector.extract_strided_slice %214 {offsets = [0, 96], sizes = [1, 32], strides = [1, 1]} : vector<1x128xf32> to vector<1x32xf32>
    %235 = arith.negf %234 : vector<1x32xf32>
    %236 = math.exp %235 : vector<1x32xf32>
    %cst_62 = arith.constant 1.000000e+00 : f32
    %237 = vector.broadcast %cst_62 : f32 to vector<1x32xf32>
    %238 = arith.addf %237, %236 : vector<1x32xf32>
    %239 = arith.divf %237, %238 : vector<1x32xf32>
    %240 = arith.mulf %231, %177 : vector<1x32xf32>
    %241 = arith.mulf %225, %233 : vector<1x32xf32>
    %242 = arith.addf %240, %241 : vector<1x32xf32>
    %243 = math.tanh %242 : vector<1x32xf32>
    %244 = arith.mulf %239, %243 : vector<1x32xf32>
    %245 = vector.extract_strided_slice %219 {offsets = [0, 0], sizes = [1, 32], strides = [1, 1]} : vector<1x128xf32> to vector<1x32xf32>
    %246 = arith.negf %245 : vector<1x32xf32>
    %247 = math.exp %246 : vector<1x32xf32>
    %cst_63 = arith.constant 1.000000e+00 : f32
    %248 = vector.broadcast %cst_63 : f32 to vector<1x32xf32>
    %249 = arith.addf %248, %247 : vector<1x32xf32>
    %250 = arith.divf %248, %249 : vector<1x32xf32>
    %251 = vector.extract_strided_slice %219 {offsets = [0, 32], sizes = [1, 32], strides = [1, 1]} : vector<1x128xf32> to vector<1x32xf32>
    %252 = arith.negf %251 : vector<1x32xf32>
    %253 = math.exp %252 : vector<1x32xf32>
    %cst_64 = arith.constant 1.000000e+00 : f32
    %254 = vector.broadcast %cst_64 : f32 to vector<1x32xf32>
    %255 = arith.addf %254, %253 : vector<1x32xf32>
    %256 = arith.divf %254, %255 : vector<1x32xf32>
    %257 = vector.extract_strided_slice %219 {offsets = [0, 64], sizes = [1, 32], strides = [1, 1]} : vector<1x128xf32> to vector<1x32xf32>
    %258 = math.tanh %257 : vector<1x32xf32>
    %259 = vector.extract_strided_slice %219 {offsets = [0, 96], sizes = [1, 32], strides = [1, 1]} : vector<1x128xf32> to vector<1x32xf32>
    %260 = arith.negf %259 : vector<1x32xf32>
    %261 = math.exp %260 : vector<1x32xf32>
    %cst_65 = arith.constant 1.000000e+00 : f32
    %262 = vector.broadcast %cst_65 : f32 to vector<1x32xf32>
    %263 = arith.addf %262, %261 : vector<1x32xf32>
    %264 = arith.divf %262, %263 : vector<1x32xf32>
    %265 = arith.mulf %256, %202 : vector<1x32xf32>
    %266 = arith.mulf %250, %258 : vector<1x32xf32>
    %267 = arith.addf %265, %266 : vector<1x32xf32>
    %268 = math.tanh %267 : vector<1x32xf32>
    %269 = arith.mulf %264, %268 : vector<1x32xf32>
    %270 = arith.index_cast %c3_i32 : i32 to index
    %c0_66 = arith.constant 0 : index
    %271 = vector.load %arg11[%270, %c0_66] : memref<8x32xf32, #tpu.memory_space<vmem>>, vector<1x32xf32>
    tpu.vector_store %arg11[%270, %c0_66], %244 {strides = array<i32>} : memref<8x32xf32, #tpu.memory_space<vmem>>, vector<1x32xf32>,
    %272 = arith.index_cast %209 : i32 to index
    %c0_67 = arith.constant 0 : index
    %273 = vector.load %arg12[%272, %c0_67] : memref<8x32xf32, #tpu.memory_space<vmem>>, vector<1x32xf32>
    tpu.vector_store %arg12[%272, %c0_67], %269 {strides = array<i32>} : memref<8x32xf32, #tpu.memory_space<vmem>>, vector<1x32xf32>,
    %c4_i32 = arith.constant 4 : i32
    %c7_i32_68 = arith.constant 7 : i32
    %274 = arith.subi %c7_i32_68, %c4_i32 : i32
    %275 = arith.index_cast %c4_i32 : i32 to index
    %c0_69 = arith.constant 0 : index
    %276 = vector.load %arg10[%275, %c0_69] : memref<8x256xf32, #tpu.memory_space<vmem>>, vector<1x128xf32>
    %277 = arith.truncf %244 : vector<1x32xf32> to vector<1x32xbf16>
    %cst_70 = arith.constant dense<0.000000e+00> : vector<1x128xf32>
    %278 = tpu.matmul %277, %8, %cst_70 {dimension_numbers = #tpu.dot_dimension_numbers<[1], [0], [0], [1], [0, 0, 1, 1], [], []>} : vector<1x32xbf16>, vector<32x128xbf16>, vector<1x128xf32> -> vector<1x128xf32>
    %279 = arith.addf %276, %278 : vector<1x128xf32>
    %280 = arith.index_cast %274 : i32 to index
    %c128_71 = arith.constant 128 : index
    %281 = vector.load %arg10[%280, %c128_71] : memref<8x256xf32, #tpu.memory_space<vmem>>, vector<1x128xf32>
    %282 = arith.truncf %269 : vector<1x32xf32> to vector<1x32xbf16>
    %cst_72 = arith.constant dense<0.000000e+00> : vector<1x128xf32>
    %283 = tpu.matmul %282, %9, %cst_72 {dimension_numbers = #tpu.dot_dimension_numbers<[1], [0], [0], [1], [0, 0, 1, 1], [], []>} : vector<1x32xbf16>, vector<32x128xbf16>, vector<1x128xf32> -> vector<1x128xf32>
    %284 = arith.addf %281, %283 : vector<1x128xf32>
    %285 = vector.extract_strided_slice %279 {offsets = [0, 0], sizes = [1, 32], strides = [1, 1]} : vector<1x128xf32> to vector<1x32xf32>
    %286 = arith.negf %285 : vector<1x32xf32>
    %287 = math.exp %286 : vector<1x32xf32>
    %cst_73 = arith.constant 1.000000e+00 : f32
    %288 = vector.broadcast %cst_73 : f32 to vector<1x32xf32>
    %289 = arith.addf %288, %287 : vector<1x32xf32>
    %290 = arith.divf %288, %289 : vector<1x32xf32>
    %291 = vector.extract_strided_slice %279 {offsets = [0, 32], sizes = [1, 32], strides = [1, 1]} : vector<1x128xf32> to vector<1x32xf32>
    %292 = arith.negf %291 : vector<1x32xf32>
    %293 = math.exp %292 : vector<1x32xf32>
    %cst_74 = arith.constant 1.000000e+00 : f32
    %294 = vector.broadcast %cst_74 : f32 to vector<1x32xf32>
    %295 = arith.addf %294, %293 : vector<1x32xf32>
    %296 = arith.divf %294, %295 : vector<1x32xf32>
    %297 = vector.extract_strided_slice %279 {offsets = [0, 64], sizes = [1, 32], strides = [1, 1]} : vector<1x128xf32> to vector<1x32xf32>
    %298 = math.tanh %297 : vector<1x32xf32>
    %299 = vector.extract_strided_slice %279 {offsets = [0, 96], sizes = [1, 32], strides = [1, 1]} : vector<1x128xf32> to vector<1x32xf32>
    %300 = arith.negf %299 : vector<1x32xf32>
    %301 = math.exp %300 : vector<1x32xf32>
    %cst_75 = arith.constant 1.000000e+00 : f32
    %302 = vector.broadcast %cst_75 : f32 to vector<1x32xf32>
    %303 = arith.addf %302, %301 : vector<1x32xf32>
    %304 = arith.divf %302, %303 : vector<1x32xf32>
    %305 = arith.mulf %296, %242 : vector<1x32xf32>
    %306 = arith.mulf %290, %298 : vector<1x32xf32>
    %307 = arith.addf %305, %306 : vector<1x32xf32>
    %308 = math.tanh %307 : vector<1x32xf32>
    %309 = arith.mulf %304, %308 : vector<1x32xf32>
    %310 = vector.extract_strided_slice %284 {offsets = [0, 0], sizes = [1, 32], strides = [1, 1]} : vector<1x128xf32> to vector<1x32xf32>
    %311 = arith.negf %310 : vector<1x32xf32>
    %312 = math.exp %311 : vector<1x32xf32>
    %cst_76 = arith.constant 1.000000e+00 : f32
    %313 = vector.broadcast %cst_76 : f32 to vector<1x32xf32>
    %314 = arith.addf %313, %312 : vector<1x32xf32>
    %315 = arith.divf %313, %314 : vector<1x32xf32>
    %316 = vector.extract_strided_slice %284 {offsets = [0, 32], sizes = [1, 32], strides = [1, 1]} : vector<1x128xf32> to vector<1x32xf32>
    %317 = arith.negf %316 : vector<1x32xf32>
    %318 = math.exp %317 : vector<1x32xf32>
    %cst_77 = arith.constant 1.000000e+00 : f32
    %319 = vector.broadcast %cst_77 : f32 to vector<1x32xf32>
    %320 = arith.addf %319, %318 : vector<1x32xf32>
    %321 = arith.divf %319, %320 : vector<1x32xf32>
    %322 = vector.extract_strided_slice %284 {offsets = [0, 64], sizes = [1, 32], strides = [1, 1]} : vector<1x128xf32> to vector<1x32xf32>
    %323 = math.tanh %322 : vector<1x32xf32>
    %324 = vector.extract_strided_slice %284 {offsets = [0, 96], sizes = [1, 32], strides = [1, 1]} : vector<1x128xf32> to vector<1x32xf32>
    %325 = arith.negf %324 : vector<1x32xf32>
    %326 = math.exp %325 : vector<1x32xf32>
    %cst_78 = arith.constant 1.000000e+00 : f32
    %327 = vector.broadcast %cst_78 : f32 to vector<1x32xf32>
    %328 = arith.addf %327, %326 : vector<1x32xf32>
    %329 = arith.divf %327, %328 : vector<1x32xf32>
    %330 = arith.mulf %321, %267 : vector<1x32xf32>
    %331 = arith.mulf %315, %323 : vector<1x32xf32>
    %332 = arith.addf %330, %331 : vector<1x32xf32>
    %333 = math.tanh %332 : vector<1x32xf32>
    %334 = arith.mulf %329, %333 : vector<1x32xf32>
    %335 = arith.index_cast %c4_i32 : i32 to index
    %c0_79 = arith.constant 0 : index
    %336 = vector.load %arg11[%335, %c0_79] : memref<8x32xf32, #tpu.memory_space<vmem>>, vector<1x32xf32>
    tpu.vector_store %arg11[%335, %c0_79], %309 {strides = array<i32>} : memref<8x32xf32, #tpu.memory_space<vmem>>, vector<1x32xf32>,
    %337 = arith.index_cast %274 : i32 to index
    %c0_80 = arith.constant 0 : index
    %338 = vector.load %arg12[%337, %c0_80] : memref<8x32xf32, #tpu.memory_space<vmem>>, vector<1x32xf32>
    tpu.vector_store %arg12[%337, %c0_80], %334 {strides = array<i32>} : memref<8x32xf32, #tpu.memory_space<vmem>>, vector<1x32xf32>,
    %c5_i32 = arith.constant 5 : i32
    %c7_i32_81 = arith.constant 7 : i32
    %339 = arith.subi %c7_i32_81, %c5_i32 : i32
    %340 = arith.index_cast %c5_i32 : i32 to index
    %c0_82 = arith.constant 0 : index
    %341 = vector.load %arg10[%340, %c0_82] : memref<8x256xf32, #tpu.memory_space<vmem>>, vector<1x128xf32>
    %342 = arith.truncf %309 : vector<1x32xf32> to vector<1x32xbf16>
    %cst_83 = arith.constant dense<0.000000e+00> : vector<1x128xf32>
    %343 = tpu.matmul %342, %8, %cst_83 {dimension_numbers = #tpu.dot_dimension_numbers<[1], [0], [0], [1], [0, 0, 1, 1], [], []>} : vector<1x32xbf16>, vector<32x128xbf16>, vector<1x128xf32> -> vector<1x128xf32>
    %344 = arith.addf %341, %343 : vector<1x128xf32>
    %345 = arith.index_cast %339 : i32 to index
    %c128_84 = arith.constant 128 : index
    %346 = vector.load %arg10[%345, %c128_84] : memref<8x256xf32, #tpu.memory_space<vmem>>, vector<1x128xf32>
    %347 = arith.truncf %334 : vector<1x32xf32> to vector<1x32xbf16>
    %cst_85 = arith.constant dense<0.000000e+00> : vector<1x128xf32>
    %348 = tpu.matmul %347, %9, %cst_85 {dimension_numbers = #tpu.dot_dimension_numbers<[1], [0], [0], [1], [0, 0, 1, 1], [], []>} : vector<1x32xbf16>, vector<32x128xbf16>, vector<1x128xf32> -> vector<1x128xf32>
    %349 = arith.addf %346, %348 : vector<1x128xf32>
    %350 = vector.extract_strided_slice %344 {offsets = [0, 0], sizes = [1, 32], strides = [1, 1]} : vector<1x128xf32> to vector<1x32xf32>
    %351 = arith.negf %350 : vector<1x32xf32>
    %352 = math.exp %351 : vector<1x32xf32>
    %cst_86 = arith.constant 1.000000e+00 : f32
    %353 = vector.broadcast %cst_86 : f32 to vector<1x32xf32>
    %354 = arith.addf %353, %352 : vector<1x32xf32>
    %355 = arith.divf %353, %354 : vector<1x32xf32>
    %356 = vector.extract_strided_slice %344 {offsets = [0, 32], sizes = [1, 32], strides = [1, 1]} : vector<1x128xf32> to vector<1x32xf32>
    %357 = arith.negf %356 : vector<1x32xf32>
    %358 = math.exp %357 : vector<1x32xf32>
    %cst_87 = arith.constant 1.000000e+00 : f32
    %359 = vector.broadcast %cst_87 : f32 to vector<1x32xf32>
    %360 = arith.addf %359, %358 : vector<1x32xf32>
    %361 = arith.divf %359, %360 : vector<1x32xf32>
    %362 = vector.extract_strided_slice %344 {offsets = [0, 64], sizes = [1, 32], strides = [1, 1]} : vector<1x128xf32> to vector<1x32xf32>
    %363 = math.tanh %362 : vector<1x32xf32>
    %364 = vector.extract_strided_slice %344 {offsets = [0, 96], sizes = [1, 32], strides = [1, 1]} : vector<1x128xf32> to vector<1x32xf32>
    %365 = arith.negf %364 : vector<1x32xf32>
    %366 = math.exp %365 : vector<1x32xf32>
    %cst_88 = arith.constant 1.000000e+00 : f32
    %367 = vector.broadcast %cst_88 : f32 to vector<1x32xf32>
    %368 = arith.addf %367, %366 : vector<1x32xf32>
    %369 = arith.divf %367, %368 : vector<1x32xf32>
    %370 = arith.mulf %361, %307 : vector<1x32xf32>
    %371 = arith.mulf %355, %363 : vector<1x32xf32>
    %372 = arith.addf %370, %371 : vector<1x32xf32>
    %373 = math.tanh %372 : vector<1x32xf32>
    %374 = arith.mulf %369, %373 : vector<1x32xf32>
    %375 = vector.extract_strided_slice %349 {offsets = [0, 0], sizes = [1, 32], strides = [1, 1]} : vector<1x128xf32> to vector<1x32xf32>
    %376 = arith.negf %375 : vector<1x32xf32>
    %377 = math.exp %376 : vector<1x32xf32>
    %cst_89 = arith.constant 1.000000e+00 : f32
    %378 = vector.broadcast %cst_89 : f32 to vector<1x32xf32>
    %379 = arith.addf %378, %377 : vector<1x32xf32>
    %380 = arith.divf %378, %379 : vector<1x32xf32>
    %381 = vector.extract_strided_slice %349 {offsets = [0, 32], sizes = [1, 32], strides = [1, 1]} : vector<1x128xf32> to vector<1x32xf32>
    %382 = arith.negf %381 : vector<1x32xf32>
    %383 = math.exp %382 : vector<1x32xf32>
    %cst_90 = arith.constant 1.000000e+00 : f32
    %384 = vector.broadcast %cst_90 : f32 to vector<1x32xf32>
    %385 = arith.addf %384, %383 : vector<1x32xf32>
    %386 = arith.divf %384, %385 : vector<1x32xf32>
    %387 = vector.extract_strided_slice %349 {offsets = [0, 64], sizes = [1, 32], strides = [1, 1]} : vector<1x128xf32> to vector<1x32xf32>
    %388 = math.tanh %387 : vector<1x32xf32>
    %389 = vector.extract_strided_slice %349 {offsets = [0, 96], sizes = [1, 32], strides = [1, 1]} : vector<1x128xf32> to vector<1x32xf32>
    %390 = arith.negf %389 : vector<1x32xf32>
    %391 = math.exp %390 : vector<1x32xf32>
    %cst_91 = arith.constant 1.000000e+00 : f32
    %392 = vector.broadcast %cst_91 : f32 to vector<1x32xf32>
    %393 = arith.addf %392, %391 : vector<1x32xf32>
    %394 = arith.divf %392, %393 : vector<1x32xf32>
    %395 = arith.mulf %386, %332 : vector<1x32xf32>
    %396 = arith.mulf %380, %388 : vector<1x32xf32>
    %397 = arith.addf %395, %396 : vector<1x32xf32>
    %398 = math.tanh %397 : vector<1x32xf32>
    %399 = arith.mulf %394, %398 : vector<1x32xf32>
    %400 = arith.index_cast %c5_i32 : i32 to index
    %c0_92 = arith.constant 0 : index
    %401 = vector.load %arg11[%400, %c0_92] : memref<8x32xf32, #tpu.memory_space<vmem>>, vector<1x32xf32>
    tpu.vector_store %arg11[%400, %c0_92], %374 {strides = array<i32>} : memref<8x32xf32, #tpu.memory_space<vmem>>, vector<1x32xf32>,
    %402 = arith.index_cast %339 : i32 to index
    %c0_93 = arith.constant 0 : index
    %403 = vector.load %arg12[%402, %c0_93] : memref<8x32xf32, #tpu.memory_space<vmem>>, vector<1x32xf32>
    tpu.vector_store %arg12[%402, %c0_93], %399 {strides = array<i32>} : memref<8x32xf32, #tpu.memory_space<vmem>>, vector<1x32xf32>,
    %c6_i32 = arith.constant 6 : i32
    %c7_i32_94 = arith.constant 7 : i32
    %404 = arith.subi %c7_i32_94, %c6_i32 : i32
    %405 = arith.index_cast %c6_i32 : i32 to index
    %c0_95 = arith.constant 0 : index
    %406 = vector.load %arg10[%405, %c0_95] : memref<8x256xf32, #tpu.memory_space<vmem>>, vector<1x128xf32>
    %407 = arith.truncf %374 : vector<1x32xf32> to vector<1x32xbf16>
    %cst_96 = arith.constant dense<0.000000e+00> : vector<1x128xf32>
    %408 = tpu.matmul %407, %8, %cst_96 {dimension_numbers = #tpu.dot_dimension_numbers<[1], [0], [0], [1], [0, 0, 1, 1], [], []>} : vector<1x32xbf16>, vector<32x128xbf16>, vector<1x128xf32> -> vector<1x128xf32>
    %409 = arith.addf %406, %408 : vector<1x128xf32>
    %410 = arith.index_cast %404 : i32 to index
    %c128_97 = arith.constant 128 : index
    %411 = vector.load %arg10[%410, %c128_97] : memref<8x256xf32, #tpu.memory_space<vmem>>, vector<1x128xf32>
    %412 = arith.truncf %399 : vector<1x32xf32> to vector<1x32xbf16>
    %cst_98 = arith.constant dense<0.000000e+00> : vector<1x128xf32>
    %413 = tpu.matmul %412, %9, %cst_98 {dimension_numbers = #tpu.dot_dimension_numbers<[1], [0], [0], [1], [0, 0, 1, 1], [], []>} : vector<1x32xbf16>, vector<32x128xbf16>, vector<1x128xf32> -> vector<1x128xf32>
    %414 = arith.addf %411, %413 : vector<1x128xf32>
    %415 = vector.extract_strided_slice %409 {offsets = [0, 0], sizes = [1, 32], strides = [1, 1]} : vector<1x128xf32> to vector<1x32xf32>
    %416 = arith.negf %415 : vector<1x32xf32>
    %417 = math.exp %416 : vector<1x32xf32>
    %cst_99 = arith.constant 1.000000e+00 : f32
    %418 = vector.broadcast %cst_99 : f32 to vector<1x32xf32>
    %419 = arith.addf %418, %417 : vector<1x32xf32>
    %420 = arith.divf %418, %419 : vector<1x32xf32>
    %421 = vector.extract_strided_slice %409 {offsets = [0, 32], sizes = [1, 32], strides = [1, 1]} : vector<1x128xf32> to vector<1x32xf32>
    %422 = arith.negf %421 : vector<1x32xf32>
    %423 = math.exp %422 : vector<1x32xf32>
    %cst_100 = arith.constant 1.000000e+00 : f32
    %424 = vector.broadcast %cst_100 : f32 to vector<1x32xf32>
    %425 = arith.addf %424, %423 : vector<1x32xf32>
    %426 = arith.divf %424, %425 : vector<1x32xf32>
    %427 = vector.extract_strided_slice %409 {offsets = [0, 64], sizes = [1, 32], strides = [1, 1]} : vector<1x128xf32> to vector<1x32xf32>
    %428 = math.tanh %427 : vector<1x32xf32>
    %429 = vector.extract_strided_slice %409 {offsets = [0, 96], sizes = [1, 32], strides = [1, 1]} : vector<1x128xf32> to vector<1x32xf32>
    %430 = arith.negf %429 : vector<1x32xf32>
    %431 = math.exp %430 : vector<1x32xf32>
    %cst_101 = arith.constant 1.000000e+00 : f32
    %432 = vector.broadcast %cst_101 : f32 to vector<1x32xf32>
    %433 = arith.addf %432, %431 : vector<1x32xf32>
    %434 = arith.divf %432, %433 : vector<1x32xf32>
    %435 = arith.mulf %426, %372 : vector<1x32xf32>
    %436 = arith.mulf %420, %428 : vector<1x32xf32>
    %437 = arith.addf %435, %436 : vector<1x32xf32>
    %438 = math.tanh %437 : vector<1x32xf32>
    %439 = arith.mulf %434, %438 : vector<1x32xf32>
    %440 = vector.extract_strided_slice %414 {offsets = [0, 0], sizes = [1, 32], strides = [1, 1]} : vector<1x128xf32> to vector<1x32xf32>
    %441 = arith.negf %440 : vector<1x32xf32>
    %442 = math.exp %441 : vector<1x32xf32>
    %cst_102 = arith.constant 1.000000e+00 : f32
    %443 = vector.broadcast %cst_102 : f32 to vector<1x32xf32>
    %444 = arith.addf %443, %442 : vector<1x32xf32>
    %445 = arith.divf %443, %444 : vector<1x32xf32>
    %446 = vector.extract_strided_slice %414 {offsets = [0, 32], sizes = [1, 32], strides = [1, 1]} : vector<1x128xf32> to vector<1x32xf32>
    %447 = arith.negf %446 : vector<1x32xf32>
    %448 = math.exp %447 : vector<1x32xf32>
    %cst_103 = arith.constant 1.000000e+00 : f32
    %449 = vector.broadcast %cst_103 : f32 to vector<1x32xf32>
    %450 = arith.addf %449, %448 : vector<1x32xf32>
    %451 = arith.divf %449, %450 : vector<1x32xf32>
    %452 = vector.extract_strided_slice %414 {offsets = [0, 64], sizes = [1, 32], strides = [1, 1]} : vector<1x128xf32> to vector<1x32xf32>
    %453 = math.tanh %452 : vector<1x32xf32>
    %454 = vector.extract_strided_slice %414 {offsets = [0, 96], sizes = [1, 32], strides = [1, 1]} : vector<1x128xf32> to vector<1x32xf32>
    %455 = arith.negf %454 : vector<1x32xf32>
    %456 = math.exp %455 : vector<1x32xf32>
    %cst_104 = arith.constant 1.000000e+00 : f32
    %457 = vector.broadcast %cst_104 : f32 to vector<1x32xf32>
    %458 = arith.addf %457, %456 : vector<1x32xf32>
    %459 = arith.divf %457, %458 : vector<1x32xf32>
    %460 = arith.mulf %451, %397 : vector<1x32xf32>
    %461 = arith.mulf %445, %453 : vector<1x32xf32>
    %462 = arith.addf %460, %461 : vector<1x32xf32>
    %463 = math.tanh %462 : vector<1x32xf32>
    %464 = arith.mulf %459, %463 : vector<1x32xf32>
    %465 = arith.index_cast %c6_i32 : i32 to index
    %c0_105 = arith.constant 0 : index
    %466 = vector.load %arg11[%465, %c0_105] : memref<8x32xf32, #tpu.memory_space<vmem>>, vector<1x32xf32>
    tpu.vector_store %arg11[%465, %c0_105], %439 {strides = array<i32>} : memref<8x32xf32, #tpu.memory_space<vmem>>, vector<1x32xf32>,
    %467 = arith.index_cast %404 : i32 to index
    %c0_106 = arith.constant 0 : index
    %468 = vector.load %arg12[%467, %c0_106] : memref<8x32xf32, #tpu.memory_space<vmem>>, vector<1x32xf32>
    tpu.vector_store %arg12[%467, %c0_106], %464 {strides = array<i32>} : memref<8x32xf32, #tpu.memory_space<vmem>>, vector<1x32xf32>,
    %c7_i32_107 = arith.constant 7 : i32
    %c7_i32_108 = arith.constant 7 : i32
    %469 = arith.subi %c7_i32_108, %c7_i32_107 : i32
    %470 = arith.index_cast %c7_i32_107 : i32 to index
    %c0_109 = arith.constant 0 : index
    %471 = vector.load %arg10[%470, %c0_109] : memref<8x256xf32, #tpu.memory_space<vmem>>, vector<1x128xf32>
    %472 = arith.truncf %439 : vector<1x32xf32> to vector<1x32xbf16>
    %cst_110 = arith.constant dense<0.000000e+00> : vector<1x128xf32>
    %473 = tpu.matmul %472, %8, %cst_110 {dimension_numbers = #tpu.dot_dimension_numbers<[1], [0], [0], [1], [0, 0, 1, 1], [], []>} : vector<1x32xbf16>, vector<32x128xbf16>, vector<1x128xf32> -> vector<1x128xf32>
    %474 = arith.addf %471, %473 : vector<1x128xf32>
    %475 = arith.index_cast %469 : i32 to index
    %c128_111 = arith.constant 128 : index
    %476 = vector.load %arg10[%475, %c128_111] : memref<8x256xf32, #tpu.memory_space<vmem>>, vector<1x128xf32>
    %477 = arith.truncf %464 : vector<1x32xf32> to vector<1x32xbf16>
    %cst_112 = arith.constant dense<0.000000e+00> : vector<1x128xf32>
    %478 = tpu.matmul %477, %9, %cst_112 {dimension_numbers = #tpu.dot_dimension_numbers<[1], [0], [0], [1], [0, 0, 1, 1], [], []>} : vector<1x32xbf16>, vector<32x128xbf16>, vector<1x128xf32> -> vector<1x128xf32>
    %479 = arith.addf %476, %478 : vector<1x128xf32>
    %480 = vector.extract_strided_slice %474 {offsets = [0, 0], sizes = [1, 32], strides = [1, 1]} : vector<1x128xf32> to vector<1x32xf32>
    %481 = arith.negf %480 : vector<1x32xf32>
    %482 = math.exp %481 : vector<1x32xf32>
    %cst_113 = arith.constant 1.000000e+00 : f32
    %483 = vector.broadcast %cst_113 : f32 to vector<1x32xf32>
    %484 = arith.addf %483, %482 : vector<1x32xf32>
    %485 = arith.divf %483, %484 : vector<1x32xf32>
    %486 = vector.extract_strided_slice %474 {offsets = [0, 32], sizes = [1, 32], strides = [1, 1]} : vector<1x128xf32> to vector<1x32xf32>
    %487 = arith.negf %486 : vector<1x32xf32>
    %488 = math.exp %487 : vector<1x32xf32>
    %cst_114 = arith.constant 1.000000e+00 : f32
    %489 = vector.broadcast %cst_114 : f32 to vector<1x32xf32>
    %490 = arith.addf %489, %488 : vector<1x32xf32>
    %491 = arith.divf %489, %490 : vector<1x32xf32>
    %492 = vector.extract_strided_slice %474 {offsets = [0, 64], sizes = [1, 32], strides = [1, 1]} : vector<1x128xf32> to vector<1x32xf32>
    %493 = math.tanh %492 : vector<1x32xf32>
    %494 = vector.extract_strided_slice %474 {offsets = [0, 96], sizes = [1, 32], strides = [1, 1]} : vector<1x128xf32> to vector<1x32xf32>
    %495 = arith.negf %494 : vector<1x32xf32>
    %496 = math.exp %495 : vector<1x32xf32>
    %cst_115 = arith.constant 1.000000e+00 : f32
    %497 = vector.broadcast %cst_115 : f32 to vector<1x32xf32>
    %498 = arith.addf %497, %496 : vector<1x32xf32>
    %499 = arith.divf %497, %498 : vector<1x32xf32>
    %500 = arith.mulf %491, %437 : vector<1x32xf32>
    %501 = arith.mulf %485, %493 : vector<1x32xf32>
    %502 = arith.addf %500, %501 : vector<1x32xf32>
    %503 = math.tanh %502 : vector<1x32xf32>
    %504 = arith.mulf %499, %503 : vector<1x32xf32>
    %505 = vector.extract_strided_slice %479 {offsets = [0, 0], sizes = [1, 32], strides = [1, 1]} : vector<1x128xf32> to vector<1x32xf32>
    %506 = arith.negf %505 : vector<1x32xf32>
    %507 = math.exp %506 : vector<1x32xf32>
    %cst_116 = arith.constant 1.000000e+00 : f32
    %508 = vector.broadcast %cst_116 : f32 to vector<1x32xf32>
    %509 = arith.addf %508, %507 : vector<1x32xf32>
    %510 = arith.divf %508, %509 : vector<1x32xf32>
    %511 = vector.extract_strided_slice %479 {offsets = [0, 32], sizes = [1, 32], strides = [1, 1]} : vector<1x128xf32> to vector<1x32xf32>
    %512 = arith.negf %511 : vector<1x32xf32>
    %513 = math.exp %512 : vector<1x32xf32>
    %cst_117 = arith.constant 1.000000e+00 : f32
    %514 = vector.broadcast %cst_117 : f32 to vector<1x32xf32>
    %515 = arith.addf %514, %513 : vector<1x32xf32>
    %516 = arith.divf %514, %515 : vector<1x32xf32>
    %517 = vector.extract_strided_slice %479 {offsets = [0, 64], sizes = [1, 32], strides = [1, 1]} : vector<1x128xf32> to vector<1x32xf32>
    %518 = math.tanh %517 : vector<1x32xf32>
    %519 = vector.extract_strided_slice %479 {offsets = [0, 96], sizes = [1, 32], strides = [1, 1]} : vector<1x128xf32> to vector<1x32xf32>
    %520 = arith.negf %519 : vector<1x32xf32>
    %521 = math.exp %520 : vector<1x32xf32>
    %cst_118 = arith.constant 1.000000e+00 : f32
    %522 = vector.broadcast %cst_118 : f32 to vector<1x32xf32>
    %523 = arith.addf %522, %521 : vector<1x32xf32>
    %524 = arith.divf %522, %523 : vector<1x32xf32>
    %525 = arith.mulf %516, %462 : vector<1x32xf32>
    %526 = arith.mulf %510, %518 : vector<1x32xf32>
    %527 = arith.addf %525, %526 : vector<1x32xf32>
    %528 = math.tanh %527 : vector<1x32xf32>
    %529 = arith.mulf %524, %528 : vector<1x32xf32>
    %530 = arith.index_cast %c7_i32_107 : i32 to index
    %c0_119 = arith.constant 0 : index
    %531 = vector.load %arg11[%530, %c0_119] : memref<8x32xf32, #tpu.memory_space<vmem>>, vector<1x32xf32>
    tpu.vector_store %arg11[%530, %c0_119], %504 {strides = array<i32>} : memref<8x32xf32, #tpu.memory_space<vmem>>, vector<1x32xf32>,
    %532 = arith.index_cast %469 : i32 to index
    %c0_120 = arith.constant 0 : index
    %533 = vector.load %arg12[%532, %c0_120] : memref<8x32xf32, #tpu.memory_space<vmem>>, vector<1x32xf32>
    tpu.vector_store %arg12[%532, %c0_120], %529 {strides = array<i32>} : memref<8x32xf32, #tpu.memory_space<vmem>>, vector<1x32xf32>,
    %c8_i32 = arith.constant 8 : i32
    %c0_121 = arith.constant 0 : index
    %c0_122 = arith.constant 0 : index
    %534 = vector.load %arg11[%c0_121, %c0_122] : memref<8x32xf32, #tpu.memory_space<vmem>>, vector<8x32xf32>
    %c0_123 = arith.constant 0 : index
    %c0_124 = arith.constant 0 : index
    %535 = vector.load %arg12[%c0_123, %c0_124] : memref<8x32xf32, #tpu.memory_space<vmem>>, vector<8x32xf32>
    %536 = tpu.concatenate %534, %535 in 1 : vector<8x32xf32>, vector<8x32xf32> -> vector<8x64xf32>
    %c0_125 = arith.constant 0 : index
    %c0_126 = arith.constant 0 : index
    %537 = vector.load %arg7[%c0_125, %c0_126] : memref<8x64xf32, #tpu.memory_space<vmem>>, vector<8x64xf32>
    tpu.vector_store %arg7[%c0_125, %c0_126], %536 {strides = array<i32>} : memref<8x64xf32, #tpu.memory_space<vmem>>, vector<8x64xf32>,
    %538 = tpu.concatenate %504, %529 in 0 : vector<1x32xf32>, vector<1x32xf32> -> vector<2x32xf32>
    %c0_127 = arith.constant 0 : index
    %c0_128 = arith.constant 0 : index
    %539 = vector.load %arg8[%c0_127, %c0_128] : memref<2x32xf32, #tpu.memory_space<vmem>>, vector<2x32xf32>
    tpu.vector_store %arg8[%c0_127, %c0_128], %538 {strides = array<i32>} : memref<2x32xf32, #tpu.memory_space<vmem>>, vector<2x32xf32>,
    %540 = tpu.concatenate %502, %527 in 0 : vector<1x32xf32>, vector<1x32xf32> -> vector<2x32xf32>
    %c0_129 = arith.constant 0 : index
    %c0_130 = arith.constant 0 : index
    %541 = vector.load %arg9[%c0_129, %c0_130] : memref<2x32xf32, #tpu.memory_space<vmem>>, vector<2x32xf32>
    tpu.vector_store %arg9[%c0_129, %c0_130], %540 {strides = array<i32>} : memref<2x32xf32, #tpu.memory_space<vmem>>, vector<2x32xf32>,
    return
  }
}

module attributes {stable_mosaic.version = 11 : i64} {
  func.func @encoder_core_kernel(%arg0: memref<8x32xf32, #tpu.memory_space<vmem>>, %arg1: memref<32x32xbf16, #tpu.memory_space<vmem>>, %arg2: memref<1x32xf32, #tpu.memory_space<vmem>>, %arg3: memref<32x32xbf16, #tpu.memory_space<vmem>>, %arg4: memref<1x32xf32, #tpu.memory_space<vmem>>, %arg5: memref<32x4352xbf16, #tpu.memory_space<vmem>>, %arg6: memref<1x512xf32, #tpu.memory_space<vmem>>, %arg7: memref<1x512xf32, #tpu.memory_space<vmem>>, %arg8: memref<1x512xf32, #tpu.memory_space<vmem>>, %arg9: memref<3x512x32xbf16, #tpu.memory_space<vmem>>, %arg10: memref<1x32xf32, #tpu.memory_space<vmem>>, %arg11: memref<1x32xf32, #tpu.memory_space<vmem>>, %arg12: memref<1x32xf32, #tpu.memory_space<vmem>>, %arg13: memref<3x32x32xbf16, #tpu.memory_space<vmem>>, %arg14: memref<1x32xf32, #tpu.memory_space<vmem>>, %arg15: memref<1x32xf32, #tpu.memory_space<vmem>>, %arg16: memref<1x32xf32, #tpu.memory_space<vmem>>, %arg17: memref<4x32x64xbf16, #tpu.memory_space<vmem>>, %arg18: memref<4x64xf32, #tpu.memory_space<vmem>>, %arg19: memref<8x32xf32, #tpu.memory_space<vmem>>, %arg20: memref<8x512xf32, #tpu.memory_space<vmem>>) attributes {dimension_semantics = [], scalar_prefetch = 0 : i64, scratch_operands = 1 : i64, tpu.core_type = #tpu.core_type<tc>} {
    %c0 = arith.constant 0 : index
    %c0_0 = arith.constant 0 : index
    %0 = vector.load %arg0[%c0, %c0_0] : memref<8x32xf32, #tpu.memory_space<vmem>>, vector<8x32xf32>
    %1 = arith.truncf %0 : vector<8x32xf32> to vector<8x32xbf16>
    %c0_1 = arith.constant 0 : index
    %c0_2 = arith.constant 0 : index
    %2 = vector.load %arg1[%c0_1, %c0_2] : memref<32x32xbf16, #tpu.memory_space<vmem>>, vector<32x32xbf16>
    %cst = arith.constant dense<0.000000e+00> : vector<8x32xf32>
    %3 = tpu.matmul %1, %2, %cst {dimension_numbers = #tpu.dot_dimension_numbers<[1], [0], [0], [1], [0, 0, 1, 1], [], []>} : vector<8x32xbf16>, vector<32x32xbf16>, vector<8x32xf32> -> vector<8x32xf32>
    %c0_3 = arith.constant 0 : index
    %c0_4 = arith.constant 0 : index
    %4 = vector.load %arg2[%c0_3, %c0_4] : memref<1x32xf32, #tpu.memory_space<vmem>>, vector<1x32xf32>
    %5 = vector.broadcast %4 : vector<1x32xf32> to vector<8x32xf32>
    %6 = arith.addf %3, %5 : vector<8x32xf32>
    %cst_5 = arith.constant 0.000000e+00 : f32
    %7 = vector.broadcast %cst_5 : f32 to vector<8x32xf32>
    %8 = arith.maximumf %6, %7 : vector<8x32xf32>
    %9 = arith.truncf %8 : vector<8x32xf32> to vector<8x32xbf16>
    %c0_6 = arith.constant 0 : index
    %c0_7 = arith.constant 0 : index
    %10 = vector.load %arg3[%c0_6, %c0_7] : memref<32x32xbf16, #tpu.memory_space<vmem>>, vector<32x32xbf16>
    %cst_8 = arith.constant dense<0.000000e+00> : vector<8x32xf32>
    %11 = tpu.matmul %9, %10, %cst_8 {dimension_numbers = #tpu.dot_dimension_numbers<[1], [0], [0], [1], [0, 0, 1, 1], [], []>} : vector<8x32xbf16>, vector<32x32xbf16>, vector<8x32xf32> -> vector<8x32xf32>
    %c0_9 = arith.constant 0 : index
    %c0_10 = arith.constant 0 : index
    %12 = vector.load %arg4[%c0_9, %c0_10] : memref<1x32xf32, #tpu.memory_space<vmem>>, vector<1x32xf32>
    %13 = vector.broadcast %12 : vector<1x32xf32> to vector<8x32xf32>
    %14 = arith.addf %11, %13 : vector<8x32xf32>
    %cst_11 = arith.constant 0.000000e+00 : f32
    %15 = vector.broadcast %cst_11 : f32 to vector<8x32xf32>
    %16 = arith.maximumf %14, %15 : vector<8x32xf32>
    %17 = arith.truncf %16 : vector<8x32xf32> to vector<8x32xbf16>
    %c0_12 = arith.constant 0 : index
    %c0_13 = arith.constant 0 : index
    %18 = vector.load %arg5[%c0_12, %c0_13] : memref<32x4352xbf16, #tpu.memory_space<vmem>>, vector<32x512xbf16>
    %cst_14 = arith.constant dense<0.000000e+00> : vector<8x512xf32>
    %19 = tpu.matmul %17, %18, %cst_14 {dimension_numbers = #tpu.dot_dimension_numbers<[1], [0], [0], [1], [0, 0, 1, 1], [], []>} : vector<8x32xbf16>, vector<32x512xbf16>, vector<8x512xf32> -> vector<8x512xf32>
    %c0_15 = arith.constant 0 : index
    %c0_16 = arith.constant 0 : index
    %20 = vector.load %arg20[%c0_15, %c0_16] : memref<8x512xf32, #tpu.memory_space<vmem>>, vector<8x512xf32>
    tpu.vector_store %arg20[%c0_15, %c0_16], %19 {strides = array<i32>} : memref<8x512xf32, #tpu.memory_space<vmem>>, vector<8x512xf32>,
    %cst_17 = arith.constant 0.000000e+00 : bf16
    %21 = vector.broadcast %cst_17 : bf16 to vector<1x32xbf16>
    %22 = vector.extract_strided_slice %17 {offsets = [1, 0], sizes = [7, 32], strides = [1, 1]} : vector<8x32xbf16> to vector<7x32xbf16>
    %23 = tpu.concatenate %22, %21 in 0 : vector<7x32xbf16>, vector<1x32xbf16> -> vector<8x32xbf16>
    %c0_18 = arith.constant 0 : index
    %c512 = arith.constant 512 : index
    %24 = vector.load %arg5[%c0_18, %c512] : memref<32x4352xbf16, #tpu.memory_space<vmem>>, vector<32x480xbf16>
    %cst_19 = arith.constant dense<0.000000e+00> : vector<8x480xf32>
    %25 = tpu.matmul %23, %24, %cst_19 {dimension_numbers = #tpu.dot_dimension_numbers<[1], [0], [0], [1], [0, 0, 1, 1], [], []>} : vector<8x32xbf16>, vector<32x480xbf16>, vector<8x480xf32> -> vector<8x480xf32>
    %c0_20 = arith.constant 0 : index
    %c32 = arith.constant 32 : index
    %26 = vector.load %arg20[%c0_20, %c32] : memref<8x512xf32, #tpu.memory_space<vmem>>, vector<8x480xf32>
    %27 = arith.addf %26, %25 : vector<8x480xf32>
    %c0_21 = arith.constant 0 : index
    %c32_22 = arith.constant 32 : index
    %28 = vector.load %arg20[%c0_21, %c32_22] : memref<8x512xf32, #tpu.memory_space<vmem>>, vector<8x480xf32>
    tpu.vector_store %arg20[%c0_21, %c32_22], %27 {strides = array<i32>} : memref<8x512xf32, #tpu.memory_space<vmem>>, vector<8x480xf32>,
    %cst_23 = arith.constant 0.000000e+00 : bf16
    %29 = vector.broadcast %cst_23 : bf16 to vector<2x32xbf16>
    %30 = vector.extract_strided_slice %17 {offsets = [2, 0], sizes = [6, 32], strides = [1, 1]} : vector<8x32xbf16> to vector<6x32xbf16>
    %31 = tpu.concatenate %30, %29 in 0 : vector<6x32xbf16>, vector<2x32xbf16> -> vector<8x32xbf16>
    %c0_24 = arith.constant 0 : index
    %c992 = arith.constant 992 : index
    %32 = vector.load %arg5[%c0_24, %c992] : memref<32x4352xbf16, #tpu.memory_space<vmem>>, vector<32x448xbf16>
    %cst_25 = arith.constant dense<0.000000e+00> : vector<8x448xf32>
    %33 = tpu.matmul %31, %32, %cst_25 {dimension_numbers = #tpu.dot_dimension_numbers<[1], [0], [0], [1], [0, 0, 1, 1], [], []>} : vector<8x32xbf16>, vector<32x448xbf16>, vector<8x448xf32> -> vector<8x448xf32>
    %c0_26 = arith.constant 0 : index
    %c64 = arith.constant 64 : index
    %34 = vector.load %arg20[%c0_26, %c64] : memref<8x512xf32, #tpu.memory_space<vmem>>, vector<8x448xf32>
    %35 = arith.addf %34, %33 : vector<8x448xf32>
    %c0_27 = arith.constant 0 : index
    %c64_28 = arith.constant 64 : index
    %36 = vector.load %arg20[%c0_27, %c64_28] : memref<8x512xf32, #tpu.memory_space<vmem>>, vector<8x448xf32>
    tpu.vector_store %arg20[%c0_27, %c64_28], %35 {strides = array<i32>} : memref<8x512xf32, #tpu.memory_space<vmem>>, vector<8x448xf32>,
    %cst_29 = arith.constant 0.000000e+00 : bf16
    %37 = vector.broadcast %cst_29 : bf16 to vector<3x32xbf16>
    %38 = vector.extract_strided_slice %17 {offsets = [3, 0], sizes = [5, 32], strides = [1, 1]} : vector<8x32xbf16> to vector<5x32xbf16>
    %39 = tpu.concatenate %38, %37 in 0 : vector<5x32xbf16>, vector<3x32xbf16> -> vector<8x32xbf16>
    %c0_30 = arith.constant 0 : index
    %c1440 = arith.constant 1440 : index
    %40 = vector.load %arg5[%c0_30, %c1440] : memref<32x4352xbf16, #tpu.memory_space<vmem>>, vector<32x416xbf16>
    %cst_31 = arith.constant dense<0.000000e+00> : vector<8x416xf32>
    %41 = tpu.matmul %39, %40, %cst_31 {dimension_numbers = #tpu.dot_dimension_numbers<[1], [0], [0], [1], [0, 0, 1, 1], [], []>} : vector<8x32xbf16>, vector<32x416xbf16>, vector<8x416xf32> -> vector<8x416xf32>
    %c0_32 = arith.constant 0 : index
    %c96 = arith.constant 96 : index
    %42 = vector.load %arg20[%c0_32, %c96] : memref<8x512xf32, #tpu.memory_space<vmem>>, vector<8x416xf32>
    %43 = arith.addf %42, %41 : vector<8x416xf32>
    %c0_33 = arith.constant 0 : index
    %c96_34 = arith.constant 96 : index
    %44 = vector.load %arg20[%c0_33, %c96_34] : memref<8x512xf32, #tpu.memory_space<vmem>>, vector<8x416xf32>
    tpu.vector_store %arg20[%c0_33, %c96_34], %43 {strides = array<i32>} : memref<8x512xf32, #tpu.memory_space<vmem>>, vector<8x416xf32>,
    %cst_35 = arith.constant 0.000000e+00 : bf16
    %45 = vector.broadcast %cst_35 : bf16 to vector<4x32xbf16>
    %46 = vector.extract_strided_slice %17 {offsets = [4, 0], sizes = [4, 32], strides = [1, 1]} : vector<8x32xbf16> to vector<4x32xbf16>
    %47 = tpu.concatenate %46, %45 in 0 : vector<4x32xbf16>, vector<4x32xbf16> -> vector<8x32xbf16>
    %c0_36 = arith.constant 0 : index
    %c1856 = arith.constant 1856 : index
    %48 = vector.load %arg5[%c0_36, %c1856] : memref<32x4352xbf16, #tpu.memory_space<vmem>>, vector<32x384xbf16>
    %cst_37 = arith.constant dense<0.000000e+00> : vector<8x384xf32>
    %49 = tpu.matmul %47, %48, %cst_37 {dimension_numbers = #tpu.dot_dimension_numbers<[1], [0], [0], [1], [0, 0, 1, 1], [], []>} : vector<8x32xbf16>, vector<32x384xbf16>, vector<8x384xf32> -> vector<8x384xf32>
    %c0_38 = arith.constant 0 : index
    %c128 = arith.constant 128 : index
    %50 = vector.load %arg20[%c0_38, %c128] : memref<8x512xf32, #tpu.memory_space<vmem>>, vector<8x384xf32>
    %51 = arith.addf %50, %49 : vector<8x384xf32>
    %c0_39 = arith.constant 0 : index
    %c128_40 = arith.constant 128 : index
    %52 = vector.load %arg20[%c0_39, %c128_40] : memref<8x512xf32, #tpu.memory_space<vmem>>, vector<8x384xf32>
    tpu.vector_store %arg20[%c0_39, %c128_40], %51 {strides = array<i32>} : memref<8x512xf32, #tpu.memory_space<vmem>>, vector<8x384xf32>,
    %cst_41 = arith.constant 0.000000e+00 : bf16
    %53 = vector.broadcast %cst_41 : bf16 to vector<5x32xbf16>
    %54 = vector.extract_strided_slice %17 {offsets = [5, 0], sizes = [3, 32], strides = [1, 1]} : vector<8x32xbf16> to vector<3x32xbf16>
    %55 = tpu.concatenate %54, %53 in 0 : vector<3x32xbf16>, vector<5x32xbf16> -> vector<8x32xbf16>
    %c0_42 = arith.constant 0 : index
    %c2240 = arith.constant 2240 : index
    %56 = vector.load %arg5[%c0_42, %c2240] : memref<32x4352xbf16, #tpu.memory_space<vmem>>, vector<32x352xbf16>
    %cst_43 = arith.constant dense<0.000000e+00> : vector<8x352xf32>
    %57 = tpu.matmul %55, %56, %cst_43 {dimension_numbers = #tpu.dot_dimension_numbers<[1], [0], [0], [1], [0, 0, 1, 1], [], []>} : vector<8x32xbf16>, vector<32x352xbf16>, vector<8x352xf32> -> vector<8x352xf32>
    %c0_44 = arith.constant 0 : index
    %c160 = arith.constant 160 : index
    %58 = vector.load %arg20[%c0_44, %c160] : memref<8x512xf32, #tpu.memory_space<vmem>>, vector<8x352xf32>
    %59 = arith.addf %58, %57 : vector<8x352xf32>
    %c0_45 = arith.constant 0 : index
    %c160_46 = arith.constant 160 : index
    %60 = vector.load %arg20[%c0_45, %c160_46] : memref<8x512xf32, #tpu.memory_space<vmem>>, vector<8x352xf32>
    tpu.vector_store %arg20[%c0_45, %c160_46], %59 {strides = array<i32>} : memref<8x512xf32, #tpu.memory_space<vmem>>, vector<8x352xf32>,
    %cst_47 = arith.constant 0.000000e+00 : bf16
    %61 = vector.broadcast %cst_47 : bf16 to vector<6x32xbf16>
    %62 = vector.extract_strided_slice %17 {offsets = [6, 0], sizes = [2, 32], strides = [1, 1]} : vector<8x32xbf16> to vector<2x32xbf16>
    %63 = tpu.concatenate %62, %61 in 0 : vector<2x32xbf16>, vector<6x32xbf16> -> vector<8x32xbf16>
    %c0_48 = arith.constant 0 : index
    %c2592 = arith.constant 2592 : index
    %64 = vector.load %arg5[%c0_48, %c2592] : memref<32x4352xbf16, #tpu.memory_space<vmem>>, vector<32x320xbf16>
    %cst_49 = arith.constant dense<0.000000e+00> : vector<8x320xf32>
    %65 = tpu.matmul %63, %64, %cst_49 {dimension_numbers = #tpu.dot_dimension_numbers<[1], [0], [0], [1], [0, 0, 1, 1], [], []>} : vector<8x32xbf16>, vector<32x320xbf16>, vector<8x320xf32> -> vector<8x320xf32>
    %c0_50 = arith.constant 0 : index
    %c192 = arith.constant 192 : index
    %66 = vector.load %arg20[%c0_50, %c192] : memref<8x512xf32, #tpu.memory_space<vmem>>, vector<8x320xf32>
    %67 = arith.addf %66, %65 : vector<8x320xf32>
    %c0_51 = arith.constant 0 : index
    %c192_52 = arith.constant 192 : index
    %68 = vector.load %arg20[%c0_51, %c192_52] : memref<8x512xf32, #tpu.memory_space<vmem>>, vector<8x320xf32>
    tpu.vector_store %arg20[%c0_51, %c192_52], %67 {strides = array<i32>} : memref<8x512xf32, #tpu.memory_space<vmem>>, vector<8x320xf32>,
    %cst_53 = arith.constant 0.000000e+00 : bf16
    %69 = vector.broadcast %cst_53 : bf16 to vector<7x32xbf16>
    %70 = vector.extract_strided_slice %17 {offsets = [7, 0], sizes = [1, 32], strides = [1, 1]} : vector<8x32xbf16> to vector<1x32xbf16>
    %71 = tpu.concatenate %70, %69 in 0 : vector<1x32xbf16>, vector<7x32xbf16> -> vector<8x32xbf16>
    %c0_54 = arith.constant 0 : index
    %c2912 = arith.constant 2912 : index
    %72 = vector.load %arg5[%c0_54, %c2912] : memref<32x4352xbf16, #tpu.memory_space<vmem>>, vector<32x288xbf16>
    %cst_55 = arith.constant dense<0.000000e+00> : vector<8x288xf32>
    %73 = tpu.matmul %71, %72, %cst_55 {dimension_numbers = #tpu.dot_dimension_numbers<[1], [0], [0], [1], [0, 0, 1, 1], [], []>} : vector<8x32xbf16>, vector<32x288xbf16>, vector<8x288xf32> -> vector<8x288xf32>
    %c0_56 = arith.constant 0 : index
    %c224 = arith.constant 224 : index
    %74 = vector.load %arg20[%c0_56, %c224] : memref<8x512xf32, #tpu.memory_space<vmem>>, vector<8x288xf32>
    %75 = arith.addf %74, %73 : vector<8x288xf32>
    %c0_57 = arith.constant 0 : index
    %c224_58 = arith.constant 224 : index
    %76 = vector.load %arg20[%c0_57, %c224_58] : memref<8x512xf32, #tpu.memory_space<vmem>>, vector<8x288xf32>
    tpu.vector_store %arg20[%c0_57, %c224_58], %75 {strides = array<i32>} : memref<8x512xf32, #tpu.memory_space<vmem>>, vector<8x288xf32>,
    %c0_59 = arith.constant 0 : index
    %c0_60 = arith.constant 0 : index
    %77 = vector.load %arg20[%c0_59, %c0_60] : memref<8x512xf32, #tpu.memory_space<vmem>>, vector<8x512xf32>
    %c0_61 = arith.constant 0 : index
    %c0_62 = arith.constant 0 : index
    %78 = vector.load %arg6[%c0_61, %c0_62] : memref<1x512xf32, #tpu.memory_space<vmem>>, vector<1x512xf32>
    %79 = vector.broadcast %78 : vector<1x512xf32> to vector<8x512xf32>
    %80 = arith.addf %77, %79 : vector<8x512xf32>
    %cst_63 = arith.constant 0.000000e+00 : f32
    %81 = vector.broadcast %cst_63 : f32 to vector<8x512xf32>
    %82 = arith.maximumf %80, %81 : vector<8x512xf32>
    %c0_64 = arith.constant 0 : index
    %c0_65 = arith.constant 0 : index
    %83 = vector.load %arg7[%c0_64, %c0_65] : memref<1x512xf32, #tpu.memory_space<vmem>>, vector<1x512xf32>
    %84 = vector.broadcast %83 : vector<1x512xf32> to vector<8x512xf32>
    %85 = arith.mulf %82, %84 : vector<8x512xf32>
    %c0_66 = arith.constant 0 : index
    %c0_67 = arith.constant 0 : index
    %86 = vector.load %arg8[%c0_66, %c0_67] : memref<1x512xf32, #tpu.memory_space<vmem>>, vector<1x512xf32>
    %87 = vector.broadcast %86 : vector<1x512xf32> to vector<8x512xf32>
    %88 = arith.addf %85, %87 : vector<8x512xf32>
    %cst_68 = arith.constant 0xFF800000 : f32
    %89 = vector.broadcast %cst_68 : f32 to vector<1x512xf32>
    %90 = vector.extract_strided_slice %88 {offsets = [1, 0], sizes = [7, 512], strides = [1, 1]} : vector<8x512xf32> to vector<7x512xf32>
    %91 = tpu.concatenate %90, %89 in 0 : vector<7x512xf32>, vector<1x512xf32> -> vector<8x512xf32>
    %92 = arith.maximumf %88, %91 : vector<8x512xf32>
    %93 = arith.truncf %92 : vector<8x512xf32> to vector<8x512xbf16>
    %c0_69 = arith.constant 0 : index
    %c0_70 = arith.constant 0 : index
    %c0_71 = arith.constant 0 : index
    %94 = vector.load %arg9[%c0_69, %c0_70, %c0_71] : memref<3x512x32xbf16, #tpu.memory_space<vmem>>, vector<1x512x32xbf16>
    %95 = vector.shape_cast %94 : vector<1x512x32xbf16> to vector<512x32xbf16>
    %cst_72 = arith.constant dense<0.000000e+00> : vector<8x32xf32>
    %96 = tpu.matmul %93, %95, %cst_72 {dimension_numbers = #tpu.dot_dimension_numbers<[1], [0], [0], [1], [0, 0, 1, 1], [], []>} : vector<8x512xbf16>, vector<512x32xbf16>, vector<8x32xf32> -> vector<8x32xf32>
    %c1 = arith.constant 1 : index
    %c0_73 = arith.constant 0 : index
    %c0_74 = arith.constant 0 : index
    %97 = vector.load %arg9[%c1, %c0_73, %c0_74] : memref<3x512x32xbf16, #tpu.memory_space<vmem>>, vector<1x512x32xbf16>
    %98 = vector.shape_cast %97 : vector<1x512x32xbf16> to vector<512x32xbf16>
    %cst_75 = arith.constant dense<0.000000e+00> : vector<8x32xf32>
    %99 = tpu.matmul %93, %98, %cst_75 {dimension_numbers = #tpu.dot_dimension_numbers<[1], [0], [0], [1], [0, 0, 1, 1], [], []>} : vector<8x512xbf16>, vector<512x32xbf16>, vector<8x32xf32> -> vector<8x32xf32>
    %cst_76 = arith.constant 0.000000e+00 : f32
    %100 = vector.broadcast %cst_76 : f32 to vector<1x32xf32>
    %101 = vector.extract_strided_slice %99 {offsets = [1, 0], sizes = [7, 32], strides = [1, 1]} : vector<8x32xf32> to vector<7x32xf32>
    %102 = tpu.concatenate %101, %100 in 0 : vector<7x32xf32>, vector<1x32xf32> -> vector<8x32xf32>
    %103 = arith.addf %96, %102 : vector<8x32xf32>
    %c2 = arith.constant 2 : index
    %c0_77 = arith.constant 0 : index
    %c0_78 = arith.constant 0 : index
    %104 = vector.load %arg9[%c2, %c0_77, %c0_78] : memref<3x512x32xbf16, #tpu.memory_space<vmem>>, vector<1x512x32xbf16>
    %105 = vector.shape_cast %104 : vector<1x512x32xbf16> to vector<512x32xbf16>
    %cst_79 = arith.constant dense<0.000000e+00> : vector<8x32xf32>
    %106 = tpu.matmul %93, %105, %cst_79 {dimension_numbers = #tpu.dot_dimension_numbers<[1], [0], [0], [1], [0, 0, 1, 1], [], []>} : vector<8x512xbf16>, vector<512x32xbf16>, vector<8x32xf32> -> vector<8x32xf32>
    %cst_80 = arith.constant 0.000000e+00 : f32
    %107 = vector.broadcast %cst_80 : f32 to vector<2x32xf32>
    %108 = vector.extract_strided_slice %106 {offsets = [2, 0], sizes = [6, 32], strides = [1, 1]} : vector<8x32xf32> to vector<6x32xf32>
    %109 = tpu.concatenate %108, %107 in 0 : vector<6x32xf32>, vector<2x32xf32> -> vector<8x32xf32>
    %110 = arith.addf %103, %109 : vector<8x32xf32>
    %c0_81 = arith.constant 0 : index
    %c0_82 = arith.constant 0 : index
    %111 = vector.load %arg10[%c0_81, %c0_82] : memref<1x32xf32, #tpu.memory_space<vmem>>, vector<1x32xf32>
    %112 = vector.broadcast %111 : vector<1x32xf32> to vector<8x32xf32>
    %113 = arith.addf %110, %112 : vector<8x32xf32>
    %cst_83 = arith.constant 0.000000e+00 : f32
    %114 = vector.broadcast %cst_83 : f32 to vector<8x32xf32>
    %115 = arith.maximumf %113, %114 : vector<8x32xf32>
    %c0_84 = arith.constant 0 : index
    %c0_85 = arith.constant 0 : index
    %116 = vector.load %arg11[%c0_84, %c0_85] : memref<1x32xf32, #tpu.memory_space<vmem>>, vector<1x32xf32>
    %117 = vector.broadcast %116 : vector<1x32xf32> to vector<8x32xf32>
    %118 = arith.mulf %115, %117 : vector<8x32xf32>
    %c0_86 = arith.constant 0 : index
    %c0_87 = arith.constant 0 : index
    %119 = vector.load %arg12[%c0_86, %c0_87] : memref<1x32xf32, #tpu.memory_space<vmem>>, vector<1x32xf32>
    %120 = vector.broadcast %119 : vector<1x32xf32> to vector<8x32xf32>
    %121 = arith.addf %118, %120 : vector<8x32xf32>
    %122 = arith.truncf %121 : vector<8x32xf32> to vector<8x32xbf16>
    %c0_88 = arith.constant 0 : index
    %c0_89 = arith.constant 0 : index
    %c0_90 = arith.constant 0 : index
    %123 = vector.load %arg13[%c0_88, %c0_89, %c0_90] : memref<3x32x32xbf16, #tpu.memory_space<vmem>>, vector<1x32x32xbf16>
    %124 = vector.shape_cast %123 : vector<1x32x32xbf16> to vector<32x32xbf16>
    %cst_91 = arith.constant dense<0.000000e+00> : vector<8x32xf32>
    %125 = tpu.matmul %122, %124, %cst_91 {dimension_numbers = #tpu.dot_dimension_numbers<[1], [0], [0], [1], [0, 0, 1, 1], [], []>} : vector<8x32xbf16>, vector<32x32xbf16>, vector<8x32xf32> -> vector<8x32xf32>
    %c1_92 = arith.constant 1 : index
    %c0_93 = arith.constant 0 : index
    %c0_94 = arith.constant 0 : index
    %126 = vector.load %arg13[%c1_92, %c0_93, %c0_94] : memref<3x32x32xbf16, #tpu.memory_space<vmem>>, vector<1x32x32xbf16>
    %127 = vector.shape_cast %126 : vector<1x32x32xbf16> to vector<32x32xbf16>
    %cst_95 = arith.constant dense<0.000000e+00> : vector<8x32xf32>
    %128 = tpu.matmul %122, %127, %cst_95 {dimension_numbers = #tpu.dot_dimension_numbers<[1], [0], [0], [1], [0, 0, 1, 1], [], []>} : vector<8x32xbf16>, vector<32x32xbf16>, vector<8x32xf32> -> vector<8x32xf32>
    %cst_96 = arith.constant 0.000000e+00 : f32
    %129 = vector.broadcast %cst_96 : f32 to vector<1x32xf32>
    %130 = vector.extract_strided_slice %128 {offsets = [1, 0], sizes = [7, 32], strides = [1, 1]} : vector<8x32xf32> to vector<7x32xf32>
    %131 = tpu.concatenate %130, %129 in 0 : vector<7x32xf32>, vector<1x32xf32> -> vector<8x32xf32>
    %132 = arith.addf %125, %131 : vector<8x32xf32>
    %c2_97 = arith.constant 2 : index
    %c0_98 = arith.constant 0 : index
    %c0_99 = arith.constant 0 : index
    %133 = vector.load %arg13[%c2_97, %c0_98, %c0_99] : memref<3x32x32xbf16, #tpu.memory_space<vmem>>, vector<1x32x32xbf16>
    %134 = vector.shape_cast %133 : vector<1x32x32xbf16> to vector<32x32xbf16>
    %cst_100 = arith.constant dense<0.000000e+00> : vector<8x32xf32>
    %135 = tpu.matmul %122, %134, %cst_100 {dimension_numbers = #tpu.dot_dimension_numbers<[1], [0], [0], [1], [0, 0, 1, 1], [], []>} : vector<8x32xbf16>, vector<32x32xbf16>, vector<8x32xf32> -> vector<8x32xf32>
    %cst_101 = arith.constant 0.000000e+00 : f32
    %136 = vector.broadcast %cst_101 : f32 to vector<2x32xf32>
    %137 = vector.extract_strided_slice %135 {offsets = [2, 0], sizes = [6, 32], strides = [1, 1]} : vector<8x32xf32> to vector<6x32xf32>
    %138 = tpu.concatenate %137, %136 in 0 : vector<6x32xf32>, vector<2x32xf32> -> vector<8x32xf32>
    %139 = arith.addf %132, %138 : vector<8x32xf32>
    %c0_102 = arith.constant 0 : index
    %c0_103 = arith.constant 0 : index
    %140 = vector.load %arg14[%c0_102, %c0_103] : memref<1x32xf32, #tpu.memory_space<vmem>>, vector<1x32xf32>
    %141 = vector.broadcast %140 : vector<1x32xf32> to vector<8x32xf32>
    %142 = arith.addf %139, %141 : vector<8x32xf32>
    %c0_104 = arith.constant 0 : index
    %c0_105 = arith.constant 0 : index
    %143 = vector.load %arg15[%c0_104, %c0_105] : memref<1x32xf32, #tpu.memory_space<vmem>>, vector<1x32xf32>
    %144 = vector.broadcast %143 : vector<1x32xf32> to vector<8x32xf32>
    %145 = arith.mulf %142, %144 : vector<8x32xf32>
    %c0_106 = arith.constant 0 : index
    %c0_107 = arith.constant 0 : index
    %146 = vector.load %arg16[%c0_106, %c0_107] : memref<1x32xf32, #tpu.memory_space<vmem>>, vector<1x32xf32>
    %147 = vector.broadcast %146 : vector<1x32xf32> to vector<8x32xf32>
    %148 = arith.addf %145, %147 : vector<8x32xf32>
    %149 = arith.addf %148, %16 : vector<8x32xf32>
    %150 = arith.truncf %149 : vector<8x32xf32> to vector<8x32xbf16>
    %c0_108 = arith.constant 0 : index
    %c0_109 = arith.constant 0 : index
    %c0_110 = arith.constant 0 : index
    %151 = vector.load %arg17[%c0_108, %c0_109, %c0_110] : memref<4x32x64xbf16, #tpu.memory_space<vmem>>, vector<1x32x64xbf16>
    %152 = vector.shape_cast %151 : vector<1x32x64xbf16> to vector<32x64xbf16>
    %cst_111 = arith.constant dense<0.000000e+00> : vector<8x64xf32>
    %153 = tpu.matmul %150, %152, %cst_111 {dimension_numbers = #tpu.dot_dimension_numbers<[1], [0], [0], [1], [0, 0, 1, 1], [], []>} : vector<8x32xbf16>, vector<32x64xbf16>, vector<8x64xf32> -> vector<8x64xf32>
    %c0_112 = arith.constant 0 : index
    %c0_113 = arith.constant 0 : index
    %154 = vector.load %arg18[%c0_112, %c0_113] : memref<4x64xf32, #tpu.memory_space<vmem>>, vector<1x64xf32>
    %155 = vector.broadcast %154 : vector<1x64xf32> to vector<8x64xf32>
    %156 = arith.addf %153, %155 : vector<8x64xf32>
    %157 = vector.extract_strided_slice %156 {offsets = [0, 0], sizes = [8, 32], strides = [1, 1]} : vector<8x64xf32> to vector<8x32xf32>
    %158 = arith.negf %157 : vector<8x32xf32>
    %159 = math.exp %158 : vector<8x32xf32>
    %cst_114 = arith.constant 1.000000e+00 : f32
    %160 = vector.broadcast %cst_114 : f32 to vector<8x32xf32>
    %161 = arith.addf %160, %159 : vector<8x32xf32>
    %162 = arith.divf %160, %161 : vector<8x32xf32>
    %163 = vector.extract_strided_slice %156 {offsets = [0, 32], sizes = [8, 32], strides = [1, 1]} : vector<8x64xf32> to vector<8x32xf32>
    %cst_115 = arith.constant 0.000000e+00 : f32
    %164 = vector.broadcast %cst_115 : f32 to vector<8x32xf32>
    %165 = arith.maximumf %163, %164 : vector<8x32xf32>
    %166 = arith.mulf %162, %165 : vector<8x32xf32>
    %cst_116 = arith.constant 1.000000e+00 : f32
    %167 = vector.broadcast %cst_116 : f32 to vector<8x32xf32>
    %168 = arith.subf %167, %162 : vector<8x32xf32>
    %169 = arith.mulf %168, %149 : vector<8x32xf32>
    %170 = arith.addf %166, %169 : vector<8x32xf32>
    %171 = arith.truncf %170 : vector<8x32xf32> to vector<8x32xbf16>
    %c1_117 = arith.constant 1 : index
    %c0_118 = arith.constant 0 : index
    %c0_119 = arith.constant 0 : index
    %172 = vector.load %arg17[%c1_117, %c0_118, %c0_119] : memref<4x32x64xbf16, #tpu.memory_space<vmem>>, vector<1x32x64xbf16>
    %173 = vector.shape_cast %172 : vector<1x32x64xbf16> to vector<32x64xbf16>
    %cst_120 = arith.constant dense<0.000000e+00> : vector<8x64xf32>
    %174 = tpu.matmul %171, %173, %cst_120 {dimension_numbers = #tpu.dot_dimension_numbers<[1], [0], [0], [1], [0, 0, 1, 1], [], []>} : vector<8x32xbf16>, vector<32x64xbf16>, vector<8x64xf32> -> vector<8x64xf32>
    %c1_121 = arith.constant 1 : index
    %c0_122 = arith.constant 0 : index
    %175 = vector.load %arg18[%c1_121, %c0_122] : memref<4x64xf32, #tpu.memory_space<vmem>>, vector<1x64xf32>
    %176 = vector.broadcast %175 : vector<1x64xf32> to vector<8x64xf32>
    %177 = arith.addf %174, %176 : vector<8x64xf32>
    %178 = vector.extract_strided_slice %177 {offsets = [0, 0], sizes = [8, 32], strides = [1, 1]} : vector<8x64xf32> to vector<8x32xf32>
    %179 = arith.negf %178 : vector<8x32xf32>
    %180 = math.exp %179 : vector<8x32xf32>
    %cst_123 = arith.constant 1.000000e+00 : f32
    %181 = vector.broadcast %cst_123 : f32 to vector<8x32xf32>
    %182 = arith.addf %181, %180 : vector<8x32xf32>
    %183 = arith.divf %181, %182 : vector<8x32xf32>
    %184 = vector.extract_strided_slice %177 {offsets = [0, 32], sizes = [8, 32], strides = [1, 1]} : vector<8x64xf32> to vector<8x32xf32>
    %cst_124 = arith.constant 0.000000e+00 : f32
    %185 = vector.broadcast %cst_124 : f32 to vector<8x32xf32>
    %186 = arith.maximumf %184, %185 : vector<8x32xf32>
    %187 = arith.mulf %183, %186 : vector<8x32xf32>
    %cst_125 = arith.constant 1.000000e+00 : f32
    %188 = vector.broadcast %cst_125 : f32 to vector<8x32xf32>
    %189 = arith.subf %188, %183 : vector<8x32xf32>
    %190 = arith.mulf %189, %170 : vector<8x32xf32>
    %191 = arith.addf %187, %190 : vector<8x32xf32>
    %192 = arith.truncf %191 : vector<8x32xf32> to vector<8x32xbf16>
    %c2_126 = arith.constant 2 : index
    %c0_127 = arith.constant 0 : index
    %c0_128 = arith.constant 0 : index
    %193 = vector.load %arg17[%c2_126, %c0_127, %c0_128] : memref<4x32x64xbf16, #tpu.memory_space<vmem>>, vector<1x32x64xbf16>
    %194 = vector.shape_cast %193 : vector<1x32x64xbf16> to vector<32x64xbf16>
    %cst_129 = arith.constant dense<0.000000e+00> : vector<8x64xf32>
    %195 = tpu.matmul %192, %194, %cst_129 {dimension_numbers = #tpu.dot_dimension_numbers<[1], [0], [0], [1], [0, 0, 1, 1], [], []>} : vector<8x32xbf16>, vector<32x64xbf16>, vector<8x64xf32> -> vector<8x64xf32>
    %c2_130 = arith.constant 2 : index
    %c0_131 = arith.constant 0 : index
    %196 = vector.load %arg18[%c2_130, %c0_131] : memref<4x64xf32, #tpu.memory_space<vmem>>, vector<1x64xf32>
    %197 = vector.broadcast %196 : vector<1x64xf32> to vector<8x64xf32>
    %198 = arith.addf %195, %197 : vector<8x64xf32>
    %199 = vector.extract_strided_slice %198 {offsets = [0, 0], sizes = [8, 32], strides = [1, 1]} : vector<8x64xf32> to vector<8x32xf32>
    %200 = arith.negf %199 : vector<8x32xf32>
    %201 = math.exp %200 : vector<8x32xf32>
    %cst_132 = arith.constant 1.000000e+00 : f32
    %202 = vector.broadcast %cst_132 : f32 to vector<8x32xf32>
    %203 = arith.addf %202, %201 : vector<8x32xf32>
    %204 = arith.divf %202, %203 : vector<8x32xf32>
    %205 = vector.extract_strided_slice %198 {offsets = [0, 32], sizes = [8, 32], strides = [1, 1]} : vector<8x64xf32> to vector<8x32xf32>
    %cst_133 = arith.constant 0.000000e+00 : f32
    %206 = vector.broadcast %cst_133 : f32 to vector<8x32xf32>
    %207 = arith.maximumf %205, %206 : vector<8x32xf32>
    %208 = arith.mulf %204, %207 : vector<8x32xf32>
    %cst_134 = arith.constant 1.000000e+00 : f32
    %209 = vector.broadcast %cst_134 : f32 to vector<8x32xf32>
    %210 = arith.subf %209, %204 : vector<8x32xf32>
    %211 = arith.mulf %210, %191 : vector<8x32xf32>
    %212 = arith.addf %208, %211 : vector<8x32xf32>
    %213 = arith.truncf %212 : vector<8x32xf32> to vector<8x32xbf16>
    %c3 = arith.constant 3 : index
    %c0_135 = arith.constant 0 : index
    %c0_136 = arith.constant 0 : index
    %214 = vector.load %arg17[%c3, %c0_135, %c0_136] : memref<4x32x64xbf16, #tpu.memory_space<vmem>>, vector<1x32x64xbf16>
    %215 = vector.shape_cast %214 : vector<1x32x64xbf16> to vector<32x64xbf16>
    %cst_137 = arith.constant dense<0.000000e+00> : vector<8x64xf32>
    %216 = tpu.matmul %213, %215, %cst_137 {dimension_numbers = #tpu.dot_dimension_numbers<[1], [0], [0], [1], [0, 0, 1, 1], [], []>} : vector<8x32xbf16>, vector<32x64xbf16>, vector<8x64xf32> -> vector<8x64xf32>
    %c3_138 = arith.constant 3 : index
    %c0_139 = arith.constant 0 : index
    %217 = vector.load %arg18[%c3_138, %c0_139] : memref<4x64xf32, #tpu.memory_space<vmem>>, vector<1x64xf32>
    %218 = vector.broadcast %217 : vector<1x64xf32> to vector<8x64xf32>
    %219 = arith.addf %216, %218 : vector<8x64xf32>
    %220 = vector.extract_strided_slice %219 {offsets = [0, 0], sizes = [8, 32], strides = [1, 1]} : vector<8x64xf32> to vector<8x32xf32>
    %221 = arith.negf %220 : vector<8x32xf32>
    %222 = math.exp %221 : vector<8x32xf32>
    %cst_140 = arith.constant 1.000000e+00 : f32
    %223 = vector.broadcast %cst_140 : f32 to vector<8x32xf32>
    %224 = arith.addf %223, %222 : vector<8x32xf32>
    %225 = arith.divf %223, %224 : vector<8x32xf32>
    %226 = vector.extract_strided_slice %219 {offsets = [0, 32], sizes = [8, 32], strides = [1, 1]} : vector<8x64xf32> to vector<8x32xf32>
    %cst_141 = arith.constant 0.000000e+00 : f32
    %227 = vector.broadcast %cst_141 : f32 to vector<8x32xf32>
    %228 = arith.maximumf %226, %227 : vector<8x32xf32>
    %229 = arith.mulf %225, %228 : vector<8x32xf32>
    %cst_142 = arith.constant 1.000000e+00 : f32
    %230 = vector.broadcast %cst_142 : f32 to vector<8x32xf32>
    %231 = arith.subf %230, %225 : vector<8x32xf32>
    %232 = arith.mulf %231, %212 : vector<8x32xf32>
    %233 = arith.addf %229, %232 : vector<8x32xf32>
    %c0_143 = arith.constant 0 : index
    %c0_144 = arith.constant 0 : index
    %234 = vector.load %arg19[%c0_143, %c0_144] : memref<8x32xf32, #tpu.memory_space<vmem>>, vector<8x32xf32>
    tpu.vector_store %arg19[%c0_143, %c0_144], %233 {strides = array<i32>} : memref<8x32xf32, #tpu.memory_space<vmem>>, vector<8x32xf32>,
    return
  }
}

</mosaic_0001>

<bundles_post_ra>
// kernel: encoder_forward.3
= control target key start
LH: loop header
LB: loop body
LE: loop exit
PB: predicated region body
PF: predicated region fallthrough
CT: control target
= control target key end

     0   :  { %15 = vsyncpa [#allocation6], 0  ;;  %s1927_s0 = inlined_call_operand.vmem [shape: f32[8,32], index: 0, kind: input, shape index: {}]   ;;  %s1928_s1 = inlined_call_operand.vmem [shape: bf16[32,256], index: 1, kind: input, shape index: {}]   ;;  %s1929_s2 = inlined_call_operand.vmem [shape: f32[1,256], index: 2, kind: input, shape index: {}]   ;;  %s1930_s3 = inlined_call_operand.vmem [shape: bf16[32,128], index: 3, kind: input, shape index: {}]   ;;  %s1931_s4 = inlined_call_operand.vmem [shape: bf16[32,128], index: 4, kind: input, shape index: {}]   ;;  %s1932_s5 = inlined_call_operand.vmem [shape: f32[2,32], index: 5, kind: input, shape index: {}]   ;;  %s1933_s6 = inlined_call_operand.vmem [shape: f32[2,32], index: 6, kind: input, shape index: {}]   ;;  %s1934_s7 = inlined_call_operand.hbm [shape: f32[8,64], index: 7, kind: output, shape index: {0}]   ;;  %s1935_s8 = inlined_call_operand.hbm [shape: f32[2,32], index: 8, kind: output, shape index: {1}]   ;;  %s1936_s9 = inlined_call_operand.hbm [shape: f32[2,32], index: 9, kind: output, shape index: {2}]  }
   0x1   :  { %v1302_v0 = vld [vmem:[%s1928_s1 + $0x14] sm:$0xf]  ;;  %v1246_v1 = vld [vmem:[%s1928_s1 + $0x18] sm:$0xf0]  ;;  %v1583_v2 = vld [vmem:[%s1931_s4 + $0x8] sm:$0xff] }
   0x2   :  { %v1249_v3 = vor.u32 %v1302_v0, %v1246_v1  ;;  %v1300_v4 = vld [vmem:[%s1928_s1 + $0x4] sm:$0xf]  ;;  %v1238_v5 = vld [vmem:[%s1928_s1 + $0x8] sm:$0xf0]  ;;  %162 = vmatpush.bf16.msra.mxu3 %v1583_v2  ;;  %v106_v8 = vld [vmem:[%s1932_s5 + $0x1] sm:$0x1] }
   0x3   :  { %v1594_v6 = vld [vmem:[%s1931_s4] sm:$0xff]  ;;  %v1244_v9 = vld [vmem:[%s1928_s1 + $0x10] sm:$0xf]  ;;  %v1241_v10 = vor.u32 %v1300_v4, %v1238_v5  ;;  %v1303_v11 = vld [vmem:[%s1928_s1 + $0x14] sm:$0xf0]  ;;  %v140_v16 = vpack.c.bf16 %v106_v8, %v106_v8 }
   0x4   :  { %v32_v7 = vld [vmem:[%s1927_s0] sm:$0xff]  ;;  %87 = vmatpush.bf16.msra.mxu1 %v1249_v3  ;;  %v1301_v13 = vld [vmem:[%s1928_s1 + $0x4] sm:$0xf0]  ;;  %v1245_v14 = vor.u32 %v1303_v11, %v1244_v9 }
   0x5   :  { %v1236_v12 = vld [vmem:[%s1928_s1] sm:$0xf]  ;;  %v1618_v15 = vld [vmem:[%s1930_s3 + $0x8] sm:$0xff] }
   0x6   :  { %v107_v17 = vld [vmem:[%s1933_s6 + $0x1] sm:$0x1] }
   0x7   :  { %16 = vsyncpa [#allocation8], 0  ;;  %163 = vmatpush.bf16.msra.mxu3 %v1594_v6  ;;  %v33_v18 = vpack.c.bf16 %v32_v7, %v32_v7  ;;  %vm64_vm0 = vcmask 261120   ;;  %74 = vmatpush.bf16.msra.mxu0 %v1245_v14  ;;  %v1237_v19 = vor.u32 %v1301_v13, %v1236_v12  ;;  %v1628_v20 = vld [vmem:[%s1930_s3] sm:$0xff]  ;;  %s1518_s17 = smov 32   ;;  %s1521_s20 = smov [#allocation7]  }
   0x8   :  { %88 = vmatpush.bf16.msra.mxu1 %v1241_v10  ;;  %131 = vmatpush.bf16.msra.mxu2 %v1618_v15  ;;  %v104_v21 = vld [vmem:[%s1932_s5] sm:$0x1]  ;;  %s1203_s21 = sshll.u32 %s1521_s20, 4  ;;  %s1205_s24 = sshll.u32 %s1935_s8, 4  ;;  %s1204_s21 = int_to_ptr.vmem [resolvable:$true] %s1203_s21  ;;  %s1206_s24 = int_to_ptr.hbm [resolvable:$true] %s1205_s24 }
   0x9   :  { %232 = vrot.lane.b32.xlu1 %v107_v17, %s1518_s17  ;;  %v109_v22 = vpack.c.bf16 %v104_v21, %v104_v21  ;;  %v105_v23 = vld [vmem:[%s1933_s6] sm:$0x1]  ;;  %s1520_s6 = smov 96   ;;  %s1522_s25 = smov [#allocation9]  }
   0xa   :  { %1269 = vmatmul.msk.bf16.vlgmr.msra.gmra.mxu3 %vm64_vm0, %v140_v16  ;;  %191 = vrot.lane.b32.xlu2 %v105_v23, %s1518_s17  ;;  %v38_v24 = vld [vmem:[%s1929_s2] sm:$0x3]  ;;  %s1519_s2 = smov 64   ;;  %s1214_s26 = sshll.u32 %s1522_s25, 4  ;;  %s1215_s26 = int_to_ptr.vmem [resolvable:$true] %s1214_s26 }
   0xb   :  { %1251 = vmatmul.msk.bf16.vlgmr.msra.gmra.mxu1 %vm64_vm0, %v33_v18  ;;  %75 = vmatpush.bf16.msra.mxu0 %v1237_v19  ;;  %v41_v25 = vperm.slane %v38_v24, 1  ;;  %v40_v27 = vperm.slane %v38_v24, 0  ;;  %s1216_s4 = sshll.u32 %s1936_s9, 4  ;;  %s1523_s8 = smov [#allocation5]   ;;  %s1217_s4 = int_to_ptr.hbm [resolvable:$true] %s1216_s4 }
   0xc   :  { %299 = vmatpush.bf16.msrb.mxu1 %v1583_v2  ;;  %132 = vmatpush.bf16.msra.mxu2 %v1628_v20  ;;  %s1192_s29 = sshll.u32 %s1523_s8, 4  ;;  %s1194_s10 = sshll.u32 %s1934_s7, 4  ;;  %s1193_s29 = int_to_ptr.vmem [resolvable:$true] %s1192_s29  ;;  %s1195_s10 = int_to_ptr.hbm [resolvable:$true] %s1194_s10 }
   0xd   :  { %427 = vmatpush.bf16.msrb.mxu3 %v1583_v2 }
   0xe   :  { %1250 = vmatmul.msk.bf16.vlgmr.msra.gmra.mxu0 %vm64_vm0, %v33_v18 }
   0xf   :  { %277 = vmatpush.bf16.msrb.mxu0 %v1618_v15  ;;  %1260 = vmatmul.msk.bf16.vlgmr.msra.gmra.mxu2 %vm64_vm0, %v109_v22 }
  0x10   :  { %300 = vmatpush.bf16.msrb.mxu1 %v1594_v6  ;;  %405 = vmatpush.bf16.msrb.mxu2 %v1618_v15 }
  0x11   :  { %428 = vmatpush.bf16.msrb.mxu3 %v1594_v6 }
  0x13   :  { %278 = vmatpush.bf16.msrb.mxu0 %v1628_v20 }
  0x14   :  { %555 = vmatpush.bf16.msra.mxu1 %v1583_v2  ;;  %406 = vmatpush.bf16.msrb.mxu2 %v1628_v20 }
  0x15   :  { %683 = vmatpush.bf16.msra.mxu3 %v1583_v2 }
  0x17   :  { %533 = vmatpush.bf16.msra.mxu0 %v1618_v15 }
  0x18   :  { %661 = vmatpush.bf16.msra.mxu2 %v1618_v15  ;;  %556 = vmatpush.bf16.msra.mxu1 %v1594_v6 }
  0x19   :  { %684 = vmatpush.bf16.msra.mxu3 %v1594_v6 }
  0x1b   :  { %534 = vmatpush.bf16.msra.mxu0 %v1628_v20 }
  0x1c   :  { %662 = vmatpush.bf16.msra.mxu2 %v1628_v20 }
  0x64   :  { %v192_v11 = vpop.permute.xlu2 %191 }
  0x7b   :  { %v233_v16 = vpop.permute.xlu1 %232 }
  0x88   :  { %v90_v26 = vpop.f32.mrf.mxu1 }
  0x89   :  { %v91_v28 = vadd.f32 %v90_v26, %v41_v25 }
  0x8b   :  { %95 = vst [vmem:[#allocation2 + $0x8] sm:$0xff] %v91_v28  ;;  %v77_v29 = vpop.f32.mrf.mxu0 }
  0x8c   :  { %v78_v30 = vadd.f32 %v77_v29, %v40_v27 }
  0x8d   :  { %v165_v31 = vpop.f32.mrf.mxu3 }
  0x8e   :  { %94 = vst [vmem:[#allocation2] sm:$0xff] %v78_v30 }
  0x90   :  { %v92_v32 = vpop.f32.mrf.mxu1 }
  0x92   :  { %v139_v33 = vld [vmem:[#allocation2 + $0xf] ss:$0 sm:$0xff]  ;;  %v134_v34 = vpop.f32.mrf.mxu2 }
  0x93   :  { %v169_v35 = vadd.f32 %v165_v31, %v139_v33  ;;  %v79_v36 = vpop.f32.mrf.mxu0  ;;  %v285_v31 = vld [vmem:[#allocation2 + $0xe] ss:$0 sm:$0xff] }
  0x95   :  { %1314 = vtanh.f32 %v169_v35  ;;  %v167_v37 = vpop.f32.mrf.mxu3  ;;  %v108_v38 = vld [vmem:[#allocation2] ss:$0 sm:$0xff]  ;;  %v1271_v43 = vmul.f32 -1.442695, %v169_v35 }
  0x96   :  { %v138_v39 = vadd.f32 %v134_v34, %v108_v38  ;;  %v263_v34 = vld [vmem:[#allocation2 + $0x1] ss:$0 sm:$0xff] }
  0x98   :  { %1316 = vtanh.f32 %v138_v39  ;;  %v1270_v44 = vmul.f32 -1.442695, %v138_v39 }
  0x99   :  { %1318 = vpow2.f32 %v1271_v43 }
  0x9a   :  { %v136_v40 = vpop.f32.mrf.mxu2  ;;  %1320 = vpow2.f32 %v1270_v44 }
  0x9b   :  { %v1315_v41 = vpop.eup %1314 }
  0x9c   :  { %237 = vrot.lane.b32.xlu0 %v1315_v41, %s1519_s2 }
  0x9e   :  { %v1317_v42 = vpop.eup %1316 }
  0x9f   :  { %v1319_v45 = vpop.eup %1318 }
  0xa0   :  { %v214_v46 = vadd.f32 1.0, %v1319_v45  ;;  %v1321_v47 = vpop.eup %1320 }
  0xa1   :  { %v173_v48 = vadd.f32 1.0, %v1321_v47 }
  0xa2   :  { %1322 = vrcp.f32 %v214_v46  ;;  %v226_v57 = vand.u32 2147483648, %v214_v46  ;;  %vm220_vm2 = vweird.f32 %v214_v46  ;;  %v224_v58 = vand.u32 2147483647, %v214_v46 }
  0xa3   :  { %1324 = vrcp.f32 %v173_v48  ;;  %vm179_vm5 = vweird.f32 %v173_v48  ;;  %v185_v63 = vand.u32 2147483648, %v173_v48  ;;  %v183_v3 = vand.u32 2147483647, %v173_v48 }
  0xa4   :  { %196 = vrot.lane.b32.xlu0 %v1317_v42, %s1519_s2  ;;  %v227_v61 = vor.u32 1.1754944e-38, %v226_v57  ;;  %vm225_vm4 = vcmp.eq.f32.partialorder %v224_v58, 8.507059e+37 }
  0xa5   :  { %v186_v5 = vor.u32 1.1754944e-38, %v185_v63  ;;  %vm184_vm8 = vcmp.eq.f32.partialorder %v183_v3, 8.507059e+37 }
  0xa8   :  { %v1323_v49 = vpop.eup %1322 }
  0xa9   :  { %v216_v50 = vmul.f32 %v1323_v49, %v214_v46  ;;  %v1325_v52 = vpop.eup %1324  ;;  %vm221_vm1 = vweird.f32 %v1323_v49 }
  0xaa   :  { %v175_v54 = vmul.f32 %v1325_v52, %v173_v48  ;;  %vm222_vm3 = vmor %vm220_vm2, %vm221_vm1  ;;  %vm180_vm6 = vweird.f32 %v1325_v52 }
  0xab   :  { %v217_v51 = vsub.f32 1.0, %v216_v50  ;;  %vm181_vm7 = vmor %vm179_vm5, %vm180_vm6 }
  0xac   :  { %v176_v56 = vsub.f32 1.0, %v175_v54 }
  0xad   :  { %v218_v53 = vmul.f32 %v1323_v49, %v217_v51 }
  0xae   :  { %v177_v60 = vmul.f32 %v1325_v52, %v176_v56 }
  0xaf   :  { %v219_v55 = vadd.f32 %v1323_v49, %v218_v53 }
  0xb0   :  { %v178_v1 = vadd.f32 %v1325_v52, %v177_v60 }
  0xb1   :  { %v223_v59 = vsel %vm222_vm3, %v1323_v49, %v219_v55 }
  0xb2   :  { %v228_v62 = vsel %vm225_vm4, %v227_v61, %v223_v59  ;;  %v182_v7 = vsel %vm181_vm7, %v1325_v52, %v178_v1 }
  0xb3   :  { %v187_v8 = vsel %vm184_vm8, %v186_v5, %v182_v7  ;;  %v235_v18 = vmul.f32 %v233_v16, %v228_v62 }
  0xb4   :  { %v194_v12 = vmul.f32 %v192_v11, %v187_v8 }
 0x10e   :  { %v238_v0 = vpop.permute.xlu0 %237 }
 0x10f   :  { %v240_v4 = vmul.f32 %v238_v0, %v228_v62 }
 0x111   :  { %242 = vrot.lane.b32.xlu1 %v240_v4, %s1518_s17 }
 0x116   :  { %v197_v9 = vpop.permute.xlu0 %196 }
 0x117   :  { %v199_v10 = vmul.f32 %v197_v9, %v187_v8 }
 0x119   :  { %201 = vrot.lane.b32.xlu2 %v199_v10, %s1518_s17 }
 0x173   :  { %v202_v13 = vpop.permute.xlu2 %201 }
 0x174   :  { %v1666_v14 = vadd.f32 %v202_v13, %v194_v12 }
 0x176   :  { %1326 = vtanh.f32 %v1666_v14 }
 0x17c   :  { %v1327_v17 = vpop.eup %1326 }
 0x17d   :  { %207 = vrot.lane.b32.xlu1 %v1327_v17, %s1519_s2 }
 0x183   :  { %v243_v19 = vpop.permute.xlu1 %242 }
 0x184   :  { %v1670_v21 = vadd.f32 %v243_v19, %v235_v18 }
 0x186   :  { %1328 = vtanh.f32 %v1670_v21 }
 0x18c   :  { %v1329_v22 = vpop.eup %1328 }
 0x18d   :  { %248 = vrot.lane.b32.xlu0 %v1329_v22, %s1519_s2 }
 0x1ef   :  { %v208_v23 = vpop.permute.xlu1 %207 }
 0x1f0   :  { %v1674_v24 = vmul.f32 %v208_v23, %v187_v8 }
 0x1f2   :  { %v264_v25 = vpack.c.bf16 %v1674_v24, %v1674_v24 }
 0x1f4   :  { %266 = vrot.lane.b32.xlu0 %v264_v25, %s1518_s17 }
 0x1ff   :  { %v249_v26 = vpop.permute.xlu0 %248 }
 0x200   :  { %v1679_v27 = vmul.f32 %v249_v26, %v228_v62 }
 0x202   :  { %v286_v28 = vpack.c.bf16 %v1679_v27, %v1679_v27 }
 0x204   :  { %288 = vrot.lane.b32.xlu2 %v286_v28, %s1518_s17 }
 0x25e   :  { %v289_v29 = vpop.permute.xlu2 %288 }
 0x25f   :  { %1273 = vmatmul.msk.bf16.vlgmr.msrb.gmra.mxu1 %vm64_vm0, %v289_v29  ;;  %v391_v29 = vld [vmem:[#allocation2 + $0x2] ss:$0 sm:$0xff] }
 0x260   :  { %811 = vmatpush.bf16.msrb.mxu1 %v1583_v2 }
 0x264   :  { %812 = vmatpush.bf16.msrb.mxu1 %v1594_v6 }
 0x266   :  { %v267_v30 = vpop.permute.xlu0 %266 }
 0x267   :  { %1272 = vmatmul.msk.bf16.vlgmr.msrb.gmra.mxu0 %vm64_vm0, %v267_v30 }
 0x268   :  { %789 = vmatpush.bf16.msrb.mxu0 %v1618_v15 }
 0x26c   :  { %790 = vmatpush.bf16.msrb.mxu0 %v1628_v20 }
 0x2dc   :  { %v302_v32 = vpop.f32.mrf.mxu1 }
 0x2dd   :  { %v306_v33 = vadd.f32 %v302_v32, %v285_v31 }
 0x2df   :  { %1330 = vtanh.f32 %v306_v33  ;;  %v1275_v44 = vmul.f32 -1.442695, %v306_v33 }
 0x2e4   :  { %v280_v35 = vpop.f32.mrf.mxu0  ;;  %v304_v36 = vpop.f32.mrf.mxu1 }
 0x2e5   :  { %v1331_v37 = vpop.eup %1330  ;;  %v284_v38 = vadd.f32 %v280_v35, %v263_v34  ;;  %v413_v34 = vld [vmem:[#allocation2 + $0xd] ss:$0 sm:$0xff] }
 0x2e6   :  { %366 = vrot.lane.b32.xlu1 %v1331_v37, %s1519_s2 }
 0x2e7   :  { %1332 = vtanh.f32 %v284_v38  ;;  %v1274_v41 = vmul.f32 -1.442695, %v284_v38 }
 0x2e9   :  { %1334 = vpow2.f32 %v1274_v41 }
 0x2ec   :  { %v282_v39 = vpop.f32.mrf.mxu0 }
 0x2ed   :  { %v1333_v40 = vpop.eup %1332 }
 0x2ee   :  { %329 = vrot.lane.b32.xlu2 %v1333_v40, %s1519_s2 }
 0x2ef   :  { %v1335_v42 = vpop.eup %1334 }
 0x2f0   :  { %v310_v43 = vadd.f32 1.0, %v1335_v42 }
 0x2f2   :  { %1336 = vrcp.f32 %v310_v43  ;;  %v322_v53 = vand.u32 2147483648, %v310_v43  ;;  %vm316_vm10 = vweird.f32 %v310_v43  ;;  %v320_v54 = vand.u32 2147483647, %v310_v43 }
 0x2f3   :  { %1338 = vpow2.f32 %v1275_v44 }
 0x2f4   :  { %v323_v57 = vor.u32 1.1754944e-38, %v322_v53  ;;  %vm321_vm12 = vcmp.eq.f32.partialorder %v320_v54, 8.507059e+37 }
 0x2f8   :  { %v1337_v45 = vpop.eup %1336 }
 0x2f9   :  { %v1339_v46 = vpop.eup %1338  ;;  %v312_v47 = vmul.f32 %v1337_v45, %v310_v43  ;;  %vm317_vm9 = vweird.f32 %v1337_v45 }
 0x2fa   :  { %v347_v48 = vadd.f32 1.0, %v1339_v46  ;;  %vm318_vm11 = vmor %vm316_vm10, %vm317_vm9 }
 0x2fb   :  { %v313_v49 = vsub.f32 1.0, %v312_v47 }
 0x2fc   :  { %1340 = vrcp.f32 %v347_v48  ;;  %v359_v0 = vand.u32 2147483648, %v347_v48  ;;  %vm353_vm14 = vweird.f32 %v347_v48  ;;  %v357_v1 = vand.u32 2147483647, %v347_v48 }
 0x2fd   :  { %v314_v50 = vmul.f32 %v1337_v45, %v313_v49 }
 0x2fe   :  { %v360_v4 = vor.u32 1.1754944e-38, %v359_v0  ;;  %vm358_vm1 = vcmp.eq.f32.partialorder %v357_v1, 8.507059e+37 }
 0x2ff   :  { %v315_v51 = vadd.f32 %v1337_v45, %v314_v50 }
 0x301   :  { %v319_v55 = vsel %vm318_vm11, %v1337_v45, %v315_v51 }
 0x302   :  { %v1341_v52 = vpop.eup %1340  ;;  %v324_v59 = vsel %vm321_vm12, %v323_v57, %v319_v55 }
 0x303   :  { %v349_v56 = vmul.f32 %v1341_v52, %v347_v48  ;;  %vm354_vm13 = vweird.f32 %v1341_v52  ;;  %v327_v9 = vmul.f32 %v324_v59, %v1666_v14 }
 0x304   :  { %vm355_vm15 = vmor %vm353_vm14, %vm354_vm13 }
 0x305   :  { %v350_v61 = vsub.f32 1.0, %v349_v56 }
 0x307   :  { %v351_v62 = vmul.f32 %v1341_v52, %v350_v61 }
 0x309   :  { %v352_v63 = vadd.f32 %v1341_v52, %v351_v62 }
 0x30b   :  { %v356_v3 = vsel %vm355_vm15, %v1341_v52, %v352_v63 }
 0x30c   :  { %v361_v5 = vsel %vm358_vm1, %v360_v4, %v356_v3 }
 0x30d   :  { %v364_v13 = vmul.f32 %v361_v5, %v1670_v21 }
 0x348   :  { %v330_v58 = vpop.permute.xlu2 %329 }
 0x349   :  { %v332_v60 = vmul.f32 %v330_v58, %v324_v59 }
 0x34b   :  { %334 = vrot.lane.b32.xlu1 %v332_v60, %s1518_s17 }
 0x358   :  { %v367_v7 = vpop.permute.xlu1 %366 }
 0x359   :  { %v369_v8 = vmul.f32 %v367_v7, %v361_v5 }
 0x35b   :  { %371 = vrot.lane.b32.xlu0 %v369_v8, %s1518_s17 }
 0x3bd   :  { %v335_v10 = vpop.permute.xlu1 %334 }
 0x3be   :  { %v1695_v11 = vadd.f32 %v335_v10, %v327_v9 }
 0x3c0   :  { %1342 = vtanh.f32 %v1695_v11 }
 0x3c6   :  { %v1343_v12 = vpop.eup %1342 }
 0x3c7   :  { %340 = vrot.lane.b32.xlu0 %v1343_v12, %s1519_s2 }
 0x3cd   :  { %v372_v16 = vpop.permute.xlu0 %371 }
 0x3ce   :  { %v1700_v17 = vadd.f32 %v372_v16, %v364_v13 }
 0x3d0   :  { %1344 = vtanh.f32 %v1700_v17 }
 0x3d6   :  { %v1345_v18 = vpop.eup %1344 }
 0x3d7   :  { %377 = vrot.lane.b32.xlu2 %v1345_v18, %s1519_s2 }
 0x431   :  { %v378_v19 = vpop.permute.xlu2 %377 }
 0x432   :  { %v1704_v14 = vmul.f32 %v378_v19, %v361_v5 }
 0x434   :  { %v414_v22 = vpack.c.bf16 %v1704_v14, %v1704_v14 }
 0x436   :  { %416 = vrot.lane.b32.xlu1 %v414_v22, %s1518_s17 }
 0x439   :  { %v341_v23 = vpop.permute.xlu0 %340 }
 0x43a   :  { %v1709_v25 = vmul.f32 %v341_v23, %v324_v59 }
 0x43c   :  { %v392_v21 = vpack.c.bf16 %v1709_v25, %v1709_v25 }
 0x43e   :  { %394 = vrot.lane.b32.xlu2 %v392_v21, %s1518_s17 }
 0x498   :  { %v395_v26 = vpop.permute.xlu2 %394 }
 0x499   :  { %1276 = vmatmul.msk.bf16.vlgmr.msrb.gmra.mxu2 %vm64_vm0, %v395_v26 }
 0x49a   :  { %917 = vmatpush.bf16.msrb.mxu2 %v1618_v15 }
 0x49e   :  { %918 = vmatpush.bf16.msrb.mxu2 %v1628_v20 }
 0x4a8   :  { %v417_v28 = vpop.permute.xlu1 %416 }
 0x4a9   :  { %1277 = vmatmul.msk.bf16.vlgmr.msrb.gmra.mxu3 %vm64_vm0, %v417_v28 }
 0x4aa   :  { %939 = vmatpush.bf16.msrb.mxu3 %v1583_v2 }
 0x4ae   :  { %940 = vmatpush.bf16.msrb.mxu3 %v1594_v6 }
 0x51c   :  { %v408_v30 = vpop.f32.mrf.mxu2 }
 0x51d   :  { %v412_v31 = vadd.f32 %v408_v30, %v391_v29  ;;  %v519_v29 = vld [vmem:[#allocation2 + $0x3] ss:$0 sm:$0xff] }
 0x51f   :  { %1346 = vtanh.f32 %v412_v31  ;;  %v1278_v39 = vmul.f32 -1.442695, %v412_v31 }
 0x524   :  { %v410_v32 = vpop.f32.mrf.mxu2 }
 0x525   :  { %v1347_v33 = vpop.eup %1346 }
 0x526   :  { %457 = vrot.lane.b32.xlu1 %v1347_v33, %s1519_s2 }
 0x52c   :  { %v430_v35 = vpop.f32.mrf.mxu3 }
 0x52d   :  { %v434_v36 = vadd.f32 %v430_v35, %v413_v34  ;;  %v541_v34 = vld [vmem:[#allocation2 + $0xc] ss:$0 sm:$0xff] }
 0x52f   :  { %1348 = vtanh.f32 %v434_v36  ;;  %v1279_v42 = vmul.f32 -1.442695, %v434_v36 }
 0x530   :  { %1350 = vpow2.f32 %v1278_v39 }
 0x534   :  { %v432_v37 = vpop.f32.mrf.mxu3 }
 0x535   :  { %v1349_v38 = vpop.eup %1348 }
 0x536   :  { %494 = vrot.lane.b32.xlu0 %v1349_v38, %s1519_s2  ;;  %v1351_v40 = vpop.eup %1350 }
 0x537   :  { %v438_v41 = vadd.f32 1.0, %v1351_v40 }
 0x539   :  { %1352 = vrcp.f32 %v438_v41  ;;  %v450_v51 = vand.u32 2147483648, %v438_v41  ;;  %vm444_vm3 = vweird.f32 %v438_v41  ;;  %v448_v52 = vand.u32 2147483647, %v438_v41 }
 0x53a   :  { %1354 = vpow2.f32 %v1279_v42 }
 0x53b   :  { %v451_v55 = vor.u32 1.1754944e-38, %v450_v51  ;;  %vm449_vm5 = vcmp.eq.f32.partialorder %v448_v52, 8.507059e+37 }
 0x53f   :  { %v1353_v43 = vpop.eup %1352 }
 0x540   :  { %v1355_v44 = vpop.eup %1354  ;;  %v440_v45 = vmul.f32 %v1353_v43, %v438_v41  ;;  %vm445_vm2 = vweird.f32 %v1353_v43 }
 0x541   :  { %v475_v46 = vadd.f32 1.0, %v1355_v44  ;;  %vm446_vm4 = vmor %vm444_vm3, %vm445_vm2 }
 0x542   :  { %v441_v47 = vsub.f32 1.0, %v440_v45 }
 0x543   :  { %1356 = vrcp.f32 %v475_v46  ;;  %v487_v62 = vand.u32 2147483648, %v475_v46  ;;  %vm481_vm7 = vweird.f32 %v475_v46  ;;  %v485_v63 = vand.u32 2147483647, %v475_v46 }
 0x544   :  { %v442_v48 = vmul.f32 %v1353_v43, %v441_v47 }
 0x545   :  { %v488_v1 = vor.u32 1.1754944e-38, %v487_v62  ;;  %vm486_vm9 = vcmp.eq.f32.partialorder %v485_v63, 8.507059e+37 }
 0x546   :  { %v443_v49 = vadd.f32 %v1353_v43, %v442_v48 }
 0x548   :  { %v447_v53 = vsel %vm446_vm4, %v1353_v43, %v443_v49 }
 0x549   :  { %v1357_v50 = vpop.eup %1356  ;;  %v452_v56 = vsel %vm449_vm5, %v451_v55, %v447_v53 }
 0x54a   :  { %v477_v54 = vmul.f32 %v1357_v50, %v475_v46  ;;  %vm482_vm6 = vweird.f32 %v1357_v50  ;;  %v455_v10 = vmul.f32 %v452_v56, %v1695_v11 }
 0x54b   :  { %vm483_vm8 = vmor %vm481_vm7, %vm482_vm6 }
 0x54c   :  { %v478_v59 = vsub.f32 1.0, %v477_v54 }
 0x54e   :  { %v479_v60 = vmul.f32 %v1357_v50, %v478_v59 }
 0x550   :  { %v480_v61 = vadd.f32 %v1357_v50, %v479_v60 }
 0x552   :  { %v484_v0 = vsel %vm483_vm8, %v1357_v50, %v480_v61 }
 0x553   :  { %v489_v4 = vsel %vm486_vm9, %v488_v1, %v484_v0 }
 0x554   :  { %v492_v7 = vmul.f32 %v489_v4, %v1700_v17 }
 0x598   :  { %v458_v57 = vpop.permute.xlu1 %457 }
 0x599   :  { %v460_v58 = vmul.f32 %v458_v57, %v452_v56 }
 0x59b   :  { %462 = vrot.lane.b32.xlu0 %v460_v58, %s1518_s17 }
 0x5a8   :  { %v495_v3 = vpop.permute.xlu0 %494 }
 0x5a9   :  { %v497_v5 = vmul.f32 %v495_v3, %v489_v4 }
 0x5ab   :  { %499 = vrot.lane.b32.xlu2 %v497_v5, %s1518_s17 }
 0x605   :  { %v500_v8 = vpop.permute.xlu2 %499 }
 0x606   :  { %v1725_v9 = vadd.f32 %v500_v8, %v492_v7 }
 0x608   :  { %1358 = vtanh.f32 %v1725_v9 }
 0x60d   :  { %v463_v12 = vpop.permute.xlu0 %462 }
 0x60e   :  { %v1359_v13 = vpop.eup %1358  ;;  %v1729_v16 = vadd.f32 %v463_v12, %v455_v10 }
 0x60f   :  { %505 = vrot.lane.b32.xlu1 %v1359_v13, %s1519_s2 }
 0x610   :  { %1360 = vtanh.f32 %v1729_v16 }
 0x616   :  { %v1361_v18 = vpop.eup %1360 }
 0x617   :  { %468 = vrot.lane.b32.xlu2 %v1361_v18, %s1519_s2 }
 0x671   :  { %v469_v19 = vpop.permute.xlu2 %468 }
 0x672   :  { %v1734_v17 = vmul.f32 %v469_v19, %v452_v56 }
 0x674   :  { %v520_v22 = vpack.c.bf16 %v1734_v17, %v1734_v17 }
 0x676   :  { %522 = vrot.lane.b32.xlu1 %v520_v22, %s1518_s17 }
 0x681   :  { %v506_v11 = vpop.permute.xlu1 %505 }
 0x682   :  { %v1739_v23 = vmul.f32 %v506_v11, %v489_v4 }
 0x684   :  { %v542_v21 = vpack.c.bf16 %v1739_v23, %v1739_v23 }
 0x686   :  { %544 = vrot.lane.b32.xlu0 %v542_v21, %s1518_s17 }
 0x6e8   :  { %v523_v26 = vpop.permute.xlu1 %522 }
 0x6e9   :  { %1280 = vmatmul.msk.bf16.vlgmr.msra.gmra.mxu0 %vm64_vm0, %v523_v26  ;;  %v669_v26 = vld [vmem:[#allocation2 + $0xb] ss:$0 sm:$0xff] }
 0x6ea   :  { %1045 = vmatpush.bf16.msra.mxu0 %v1618_v15 }
 0x6ee   :  { %1046 = vmatpush.bf16.msra.mxu0 %v1628_v20 }
 0x6f8   :  { %v545_v28 = vpop.permute.xlu0 %544 }
 0x6f9   :  { %1281 = vmatmul.msk.bf16.vlgmr.msra.gmra.mxu1 %vm64_vm0, %v545_v28 }
 0x6fa   :  { %1067 = vmatpush.bf16.msra.mxu1 %v1583_v2 }
 0x6fe   :  { %1068 = vmatpush.bf16.msra.mxu1 %v1594_v6 }
 0x766   :  { %v536_v30 = vpop.f32.mrf.mxu0 }
 0x767   :  { %v540_v31 = vadd.f32 %v536_v30, %v519_v29  ;;  %v647_v30 = vld [vmem:[#allocation2 + $0x4] ss:$0 sm:$0xff] }
 0x769   :  { %1362 = vtanh.f32 %v540_v31  ;;  %v1282_v2 = vmul.f32 -1.442695, %v540_v31 }
 0x76e   :  { %v538_v32 = vpop.f32.mrf.mxu0 }
 0x76f   :  { %v1363_v33 = vpop.eup %1362 }
 0x770   :  { %585 = vrot.lane.b32.xlu0 %v1363_v33, %s1519_s2 }
 0x776   :  { %v558_v35 = vpop.f32.mrf.mxu1 }
 0x777   :  { %v562_v15 = vadd.f32 %v558_v35, %v541_v34 }
 0x779   :  { %1364 = vtanh.f32 %v562_v15  ;;  %v1283_v37 = vmul.f32 -1.442695, %v562_v15 }
 0x77b   :  { %1366 = vpow2.f32 %v1283_v37 }
 0x77c   :  { %1368 = vpow2.f32 %v1282_v2 }
 0x77e   :  { %v560_v20 = vpop.f32.mrf.mxu1 }
 0x77f   :  { %v1365_v36 = vpop.eup %1364 }
 0x780   :  { %622 = vrot.lane.b32.xlu2 %v1365_v36, %s1519_s2 }
 0x781   :  { %v1367_v6 = vpop.eup %1366 }
 0x782   :  { %v603_v38 = vadd.f32 1.0, %v1367_v6  ;;  %v1369_v39 = vpop.eup %1368 }
 0x783   :  { %v566_v40 = vadd.f32 1.0, %v1369_v39 }
 0x784   :  { %1370 = vrcp.f32 %v603_v38  ;;  %v615_v49 = vand.u32 2147483648, %v603_v38  ;;  %vm609_vm11 = vweird.f32 %v603_v38  ;;  %v613_v50 = vand.u32 2147483647, %v603_v38 }
 0x785   :  { %1372 = vrcp.f32 %v566_v40  ;;  %v578_v58 = vand.u32 2147483648, %v566_v40  ;;  %vm572_vm15 = vweird.f32 %v566_v40  ;;  %v576_v59 = vand.u32 2147483647, %v566_v40 }
 0x786   :  { %v616_v53 = vor.u32 1.1754944e-38, %v615_v49  ;;  %vm614_vm13 = vcmp.eq.f32.partialorder %v613_v50, 8.507059e+37 }
 0x787   :  { %v579_v61 = vor.u32 1.1754944e-38, %v578_v58  ;;  %vm577_vm2 = vcmp.eq.f32.partialorder %v576_v59, 8.507059e+37 }
 0x78a   :  { %v1371_v41 = vpop.eup %1370 }
 0x78b   :  { %v605_v42 = vmul.f32 %v1371_v41, %v603_v38  ;;  %v1373_v44 = vpop.eup %1372  ;;  %vm610_vm10 = vweird.f32 %v1371_v41 }
 0x78c   :  { %v568_v46 = vmul.f32 %v1373_v44, %v566_v40  ;;  %vm611_vm12 = vmor %vm609_vm11, %vm610_vm10  ;;  %vm573_vm14 = vweird.f32 %v1373_v44 }
 0x78d   :  { %v606_v43 = vsub.f32 1.0, %v605_v42  ;;  %vm574_vm1 = vmor %vm572_vm15, %vm573_vm14 }
 0x78e   :  { %v569_v48 = vsub.f32 1.0, %v568_v46 }
 0x78f   :  { %v607_v45 = vmul.f32 %v1371_v41, %v606_v43 }
 0x790   :  { %v570_v52 = vmul.f32 %v1373_v44, %v569_v48 }
 0x791   :  { %v608_v47 = vadd.f32 %v1371_v41, %v607_v45 }
 0x792   :  { %v571_v57 = vadd.f32 %v1373_v44, %v570_v52 }
 0x793   :  { %v612_v51 = vsel %vm611_vm12, %v1371_v41, %v608_v47 }
 0x794   :  { %v617_v55 = vsel %vm614_vm13, %v616_v53, %v612_v51  ;;  %v575_v60 = vsel %vm574_vm1, %v1373_v44, %v571_v57 }
 0x795   :  { %v580_v63 = vsel %vm577_vm2, %v579_v61, %v575_v60  ;;  %v620_v7 = vmul.f32 %v617_v55, %v1725_v9 }
 0x796   :  { %v583_v1 = vmul.f32 %v580_v63, %v1729_v16 }
 0x7da   :  { %v623_v54 = vpop.permute.xlu2 %622 }
 0x7db   :  { %v625_v56 = vmul.f32 %v623_v54, %v617_v55 }
 0x7dd   :  { %627 = vrot.lane.b32.xlu1 %v625_v56, %s1518_s17 }
 0x7e2   :  { %v586_v62 = vpop.permute.xlu0 %585 }
 0x7e3   :  { %v588_v0 = vmul.f32 %v586_v62, %v580_v63 }
 0x7e5   :  { %590 = vrot.lane.b32.xlu2 %v588_v0, %s1518_s17 }
 0x83f   :  { %v591_v3 = vpop.permute.xlu2 %590 }
 0x840   :  { %v1755_v4 = vadd.f32 %v591_v3, %v583_v1 }
 0x842   :  { %1374 = vtanh.f32 %v1755_v4 }
 0x848   :  { %v1375_v5 = vpop.eup %1374 }
 0x849   :  { %596 = vrot.lane.b32.xlu1 %v1375_v5, %s1519_s2 }
 0x84f   :  { %v628_v8 = vpop.permute.xlu1 %627 }
 0x850   :  { %v1760_v10 = vadd.f32 %v628_v8, %v620_v7 }
 0x852   :  { %1376 = vtanh.f32 %v1760_v10 }
 0x858   :  { %v1377_v12 = vpop.eup %1376 }
 0x859   :  { %633 = vrot.lane.b32.xlu0 %v1377_v12, %s1519_s2 }
 0x8bb   :  { %v597_v13 = vpop.permute.xlu1 %596 }
 0x8bc   :  { %v1764_v16 = vmul.f32 %v597_v13, %v580_v63 }
 0x8be   :  { %v648_v18 = vpack.c.bf16 %v1764_v16, %v1764_v16 }
 0x8c0   :  { %650 = vrot.lane.b32.xlu0 %v648_v18, %s1518_s17 }
 0x8cb   :  { %v634_v19 = vpop.permute.xlu0 %633 }
 0x8cc   :  { %v1769_v22 = vmul.f32 %v634_v19, %v617_v55 }
 0x8ce   :  { %v670_v9 = vpack.c.bf16 %v1769_v22, %v1769_v22 }
 0x8d0   :  { %672 = vrot.lane.b32.xlu2 %v670_v9, %s1518_s17 }
 0x92a   :  { %v673_v11 = vpop.permute.xlu2 %672 }
 0x92b   :  { %1285 = vmatmul.msk.bf16.vlgmr.msra.gmra.mxu3 %vm64_vm0, %v673_v11 }
 0x932   :  { %v651_v21 = vpop.permute.xlu0 %650 }
 0x933   :  { %1284 = vmatmul.msk.bf16.vlgmr.msra.gmra.mxu2 %vm64_vm0, %v651_v21 }
 0x9ae   :  { %v686_v28 = vpop.f32.mrf.mxu3 }
 0x9af   :  { %v690_v29 = vadd.f32 %v686_v28, %v669_v26  ;;  %v775_v26 = vld [vmem:[#allocation2 + $0x5] ss:$0 sm:$0xff] }
 0x9b1   :  { %1378 = vtanh.f32 %v690_v29  ;;  %v1287_v2 = vmul.f32 -1.442695, %v690_v29 }
 0x9b6   :  { %v664_v31 = vpop.f32.mrf.mxu2  ;;  %v688_v32 = vpop.f32.mrf.mxu3 }
 0x9b7   :  { %v1379_v33 = vpop.eup %1378  ;;  %v668_v34 = vadd.f32 %v664_v31, %v647_v30  ;;  %v797_v32 = vld [vmem:[#allocation2 + $0xa] ss:$0 sm:$0xff] }
 0x9b8   :  { %750 = vrot.lane.b32.xlu1 %v1379_v33, %s1519_s2 }
 0x9b9   :  { %1380 = vtanh.f32 %v668_v34  ;;  %v1286_v20 = vmul.f32 -1.442695, %v668_v34 }
 0x9bb   :  { %1382 = vpow2.f32 %v1286_v20 }
 0x9be   :  { %v666_v35 = vpop.f32.mrf.mxu2 }
 0x9bf   :  { %v1381_v15 = vpop.eup %1380 }
 0x9c0   :  { %713 = vrot.lane.b32.xlu2 %v1381_v15, %s1519_s2 }
 0x9c1   :  { %v1383_v36 = vpop.eup %1382 }
 0x9c2   :  { %v694_v37 = vadd.f32 1.0, %v1383_v36 }
 0x9c4   :  { %1384 = vrcp.f32 %v694_v37  ;;  %v706_v45 = vand.u32 2147483648, %v694_v37  ;;  %vm700_vm4 = vweird.f32 %v694_v37  ;;  %v704_v46 = vand.u32 2147483647, %v694_v37 }
 0x9c5   :  { %1386 = vpow2.f32 %v1287_v2 }
 0x9c6   :  { %v707_v49 = vor.u32 1.1754944e-38, %v706_v45  ;;  %vm705_vm6 = vcmp.eq.f32.partialorder %v704_v46, 8.507059e+37 }
 0x9ca   :  { %v1385_v6 = vpop.eup %1384 }
 0x9cb   :  { %v1387_v38 = vpop.eup %1386  ;;  %v696_v39 = vmul.f32 %v1385_v6, %v694_v37  ;;  %vm701_vm3 = vweird.f32 %v1385_v6 }
 0x9cc   :  { %v731_v40 = vadd.f32 1.0, %v1387_v38  ;;  %vm702_vm5 = vmor %vm700_vm4, %vm701_vm3 }
 0x9cd   :  { %v697_v41 = vsub.f32 1.0, %v696_v39 }
 0x9ce   :  { %1388 = vrcp.f32 %v731_v40  ;;  %v743_v56 = vand.u32 2147483648, %v731_v40  ;;  %vm737_vm8 = vweird.f32 %v731_v40  ;;  %v741_v57 = vand.u32 2147483647, %v731_v40 }
 0x9cf   :  { %v698_v42 = vmul.f32 %v1385_v6, %v697_v41 }
 0x9d0   :  { %v744_v59 = vor.u32 1.1754944e-38, %v743_v56  ;;  %vm742_vm10 = vcmp.eq.f32.partialorder %v741_v57, 8.507059e+37 }
 0x9d1   :  { %v699_v43 = vadd.f32 %v1385_v6, %v698_v42 }
 0x9d3   :  { %v703_v47 = vsel %vm702_vm5, %v1385_v6, %v699_v43 }
 0x9d4   :  { %v1389_v44 = vpop.eup %1388  ;;  %v708_v51 = vsel %vm705_vm6, %v707_v49, %v703_v47 }
 0x9d5   :  { %v733_v48 = vmul.f32 %v1389_v44, %v731_v40  ;;  %vm738_vm7 = vweird.f32 %v1389_v44  ;;  %v711_v63 = vmul.f32 %v708_v51, %v1755_v4 }
 0x9d6   :  { %vm739_vm9 = vmor %vm737_vm8, %vm738_vm7 }
 0x9d7   :  { %v734_v53 = vsub.f32 1.0, %v733_v48 }
 0x9d9   :  { %v735_v54 = vmul.f32 %v1389_v44, %v734_v53 }
 0x9db   :  { %v736_v55 = vadd.f32 %v1389_v44, %v735_v54 }
 0x9dd   :  { %v740_v58 = vsel %vm739_vm9, %v1389_v44, %v736_v55 }
 0x9de   :  { %v745_v60 = vsel %vm742_vm10, %v744_v59, %v740_v58 }
 0x9df   :  { %v748_v5 = vmul.f32 %v745_v60, %v1760_v10 }
 0xa1a   :  { %v714_v50 = vpop.permute.xlu2 %713 }
 0xa1b   :  { %v716_v52 = vmul.f32 %v714_v50, %v708_v51 }
 0xa1d   :  { %718 = vrot.lane.b32.xlu1 %v716_v52, %s1518_s17 }
 0xa2a   :  { %v751_v61 = vpop.permute.xlu1 %750 }
 0xa2b   :  { %v753_v62 = vmul.f32 %v751_v61, %v745_v60 }
 0xa2d   :  { %755 = vrot.lane.b32.xlu0 %v753_v62, %s1518_s17 }
 0xa8f   :  { %v719_v0 = vpop.permute.xlu1 %718 }
 0xa90   :  { %v1781_v1 = vadd.f32 %v719_v0, %v711_v63 }
 0xa92   :  { %1390 = vtanh.f32 %v1781_v1 }
 0xa98   :  { %v1391_v3 = vpop.eup %1390 }
 0xa99   :  { %724 = vrot.lane.b32.xlu0 %v1391_v3, %s1519_s2 }
 0xa9f   :  { %v756_v7 = vpop.permute.xlu0 %755 }
 0xaa0   :  { %v1786_v8 = vadd.f32 %v756_v7, %v748_v5 }
 0xaa2   :  { %1392 = vtanh.f32 %v1786_v8 }
 0xaa8   :  { %v1393_v12 = vpop.eup %1392 }
 0xaa9   :  { %761 = vrot.lane.b32.xlu2 %v1393_v12, %s1519_s2 }
 0xb03   :  { %v762_v13 = vpop.permute.xlu2 %761 }
 0xb04   :  { %v1790_v4 = vmul.f32 %v762_v13, %v745_v60 }
 0xb06   :  { %v798_v18 = vpack.c.bf16 %v1790_v4, %v1790_v4 }
 0xb08   :  { %800 = vrot.lane.b32.xlu1 %v798_v18, %s1518_s17 }
 0xb0b   :  { %v725_v19 = vpop.permute.xlu0 %724 }
 0xb0c   :  { %v1795_v9 = vmul.f32 %v725_v19, %v708_v51 }
 0xb0e   :  { %v776_v10 = vpack.c.bf16 %v1795_v9, %v1795_v9 }
 0xb10   :  { %778 = vrot.lane.b32.xlu2 %v776_v10, %s1518_s17 }
 0xb6a   :  { %v779_v11 = vpop.permute.xlu2 %778 }
 0xb6b   :  { %1288 = vmatmul.msk.bf16.vlgmr.msrb.gmra.mxu0 %vm64_vm0, %v779_v11 }
 0xb7a   :  { %v801_v21 = vpop.permute.xlu1 %800 }
 0xb7b   :  { %1289 = vmatmul.msk.bf16.vlgmr.msrb.gmra.mxu1 %vm64_vm0, %v801_v21 }
 0xbe8   :  { %v792_v28 = vpop.f32.mrf.mxu0 }
 0xbe9   :  { %v796_v29 = vadd.f32 %v792_v28, %v775_v26 }
 0xbeb   :  { %1394 = vtanh.f32 %v796_v29  ;;  %v1290_v20 = vmul.f32 -1.442695, %v796_v29  ;;  %v903_v29 = vld [vmem:[#allocation2 + $0x6] ss:$0 sm:$0xff] }
 0xbf0   :  { %v794_v30 = vpop.f32.mrf.mxu0 }
 0xbf1   :  { %v1395_v31 = vpop.eup %1394 }
 0xbf2   :  { %841 = vrot.lane.b32.xlu1 %v1395_v31, %s1519_s2 }
 0xbf8   :  { %v814_v33 = vpop.f32.mrf.mxu1 }
 0xbf9   :  { %v818_v34 = vadd.f32 %v814_v33, %v797_v32 }
 0xbfb   :  { %1396 = vtanh.f32 %v818_v34  ;;  %v1291_v2 = vmul.f32 -1.442695, %v818_v34  ;;  %v925_v34 = vld [vmem:[#allocation2 + $0x9] ss:$0 sm:$0xff] }
 0xbfc   :  { %1398 = vpow2.f32 %v1290_v20 }
 0xc00   :  { %v816_v35 = vpop.f32.mrf.mxu1 }
 0xc01   :  { %v1397_v15 = vpop.eup %1396 }
 0xc02   :  { %878 = vrot.lane.b32.xlu0 %v1397_v15, %s1519_s2  ;;  %v1399_v36 = vpop.eup %1398 }
 0xc03   :  { %v822_v37 = vadd.f32 1.0, %v1399_v36 }
 0xc05   :  { %1400 = vrcp.f32 %v822_v37  ;;  %v834_v45 = vand.u32 2147483648, %v822_v37  ;;  %vm828_vm12 = vweird.f32 %v822_v37  ;;  %v832_v46 = vand.u32 2147483647, %v822_v37 }
 0xc06   :  { %1402 = vpow2.f32 %v1291_v2 }
 0xc07   :  { %v835_v49 = vor.u32 1.1754944e-38, %v834_v45  ;;  %vm833_vm14 = vcmp.eq.f32.partialorder %v832_v46, 8.507059e+37 }
 0xc0b   :  { %v1401_v6 = vpop.eup %1400 }
 0xc0c   :  { %v1403_v38 = vpop.eup %1402  ;;  %v824_v39 = vmul.f32 %v1401_v6, %v822_v37  ;;  %vm829_vm11 = vweird.f32 %v1401_v6 }
 0xc0d   :  { %v859_v40 = vadd.f32 1.0, %v1403_v38  ;;  %vm830_vm13 = vmor %vm828_vm12, %vm829_vm11 }
 0xc0e   :  { %v825_v41 = vsub.f32 1.0, %v824_v39 }
 0xc0f   :  { %1404 = vrcp.f32 %v859_v40  ;;  %v871_v56 = vand.u32 2147483648, %v859_v40  ;;  %vm865_vm1 = vweird.f32 %v859_v40  ;;  %v869_v57 = vand.u32 2147483647, %v859_v40 }
 0xc10   :  { %v826_v42 = vmul.f32 %v1401_v6, %v825_v41 }
 0xc11   :  { %v872_v59 = vor.u32 1.1754944e-38, %v871_v56  ;;  %vm870_vm3 = vcmp.eq.f32.partialorder %v869_v57, 8.507059e+37 }
 0xc12   :  { %v827_v43 = vadd.f32 %v1401_v6, %v826_v42 }
 0xc14   :  { %v831_v47 = vsel %vm830_vm13, %v1401_v6, %v827_v43 }
 0xc15   :  { %v1405_v44 = vpop.eup %1404  ;;  %v836_v50 = vsel %vm833_vm14, %v835_v49, %v831_v47 }
 0xc16   :  { %v861_v48 = vmul.f32 %v1405_v44, %v859_v40  ;;  %vm866_vm15 = vweird.f32 %v1405_v44  ;;  %v839_v5 = vmul.f32 %v836_v50, %v1781_v1 }
 0xc17   :  { %vm867_vm2 = vmor %vm865_vm1, %vm866_vm15 }
 0xc18   :  { %v862_v53 = vsub.f32 1.0, %v861_v48 }
 0xc1a   :  { %v863_v54 = vmul.f32 %v1405_v44, %v862_v53 }
 0xc1c   :  { %v864_v55 = vadd.f32 %v1405_v44, %v863_v54 }
 0xc1e   :  { %v868_v58 = vsel %vm867_vm2, %v1405_v44, %v864_v55 }
 0xc1f   :  { %v873_v61 = vsel %vm870_vm3, %v872_v59, %v868_v58 }
 0xc20   :  { %v876_v63 = vmul.f32 %v873_v61, %v1786_v8 }
 0xc64   :  { %v842_v51 = vpop.permute.xlu1 %841 }
 0xc65   :  { %v844_v52 = vmul.f32 %v842_v51, %v836_v50 }
 0xc67   :  { %846 = vrot.lane.b32.xlu0 %v844_v52, %s1518_s17 }
 0xc74   :  { %v879_v60 = vpop.permute.xlu0 %878 }
 0xc75   :  { %v881_v62 = vmul.f32 %v879_v60, %v873_v61 }
 0xc77   :  { %883 = vrot.lane.b32.xlu2 %v881_v62, %s1518_s17 }
 0xcd1   :  { %v884_v0 = vpop.permute.xlu2 %883 }
 0xcd2   :  { %v1807_v3 = vadd.f32 %v884_v0, %v876_v63 }
 0xcd4   :  { %1406 = vtanh.f32 %v1807_v3 }
 0xcd9   :  { %v847_v7 = vpop.permute.xlu0 %846 }
 0xcda   :  { %v1407_v12 = vpop.eup %1406  ;;  %v1811_v13 = vadd.f32 %v847_v7, %v839_v5 }
 0xcdb   :  { %889 = vrot.lane.b32.xlu1 %v1407_v12, %s1519_s2 }
 0xcdc   :  { %1408 = vtanh.f32 %v1811_v13 }
 0xce2   :  { %v1409_v18 = vpop.eup %1408 }
 0xce3   :  { %852 = vrot.lane.b32.xlu2 %v1409_v18, %s1519_s2 }
 0xd3d   :  { %v853_v19 = vpop.permute.xlu2 %852 }
 0xd3e   :  { %v1816_v8 = vmul.f32 %v853_v19, %v836_v50 }
 0xd40   :  { %v904_v10 = vpack.c.bf16 %v1816_v8, %v1816_v8 }
 0xd42   :  { %906 = vrot.lane.b32.xlu1 %v904_v10, %s1518_s17 }
 0xd4d   :  { %v890_v1 = vpop.permute.xlu1 %889 }
 0xd4e   :  { %v1821_v11 = vmul.f32 %v890_v1, %v873_v61 }
 0xd50   :  { %v926_v21 = vpack.c.bf16 %v1821_v11, %v1821_v11 }
 0xd52   :  { %928 = vrot.lane.b32.xlu0 %v926_v21, %s1518_s17 }
 0xdb4   :  { %v907_v26 = vpop.permute.xlu1 %906 }
 0xdb5   :  { %1292 = vmatmul.msk.bf16.vlgmr.msrb.gmra.mxu2 %vm64_vm0, %v907_v26 }
 0xdc4   :  { %v929_v28 = vpop.permute.xlu0 %928 }
 0xdc5   :  { %1293 = vmatmul.msk.bf16.vlgmr.msrb.gmra.mxu3 %vm64_vm0, %v929_v28 }
 0xe38   :  { %v920_v30 = vpop.f32.mrf.mxu2 }
 0xe39   :  { %v924_v31 = vadd.f32 %v920_v30, %v903_v29 }
 0xe3b   :  { %1410 = vtanh.f32 %v924_v31  ;;  %v1294_v2 = vmul.f32 -1.442695, %v924_v31 }
 0xe40   :  { %v922_v32 = vpop.f32.mrf.mxu2 }
 0xe41   :  { %v1411_v33 = vpop.eup %1410 }
 0xe42   :  { %969 = vrot.lane.b32.xlu0 %v1411_v33, %s1519_s2  ;;  %v1053_v33 = vld [vmem:[#allocation2 + $0x8] ss:$0 sm:$0xff] }
 0xe48   :  { %v942_v35 = vpop.f32.mrf.mxu3 }
 0xe49   :  { %v946_v15 = vadd.f32 %v942_v35, %v925_v34 }
 0xe4b   :  { %1412 = vtanh.f32 %v946_v15  ;;  %v1295_v37 = vmul.f32 -1.442695, %v946_v15  ;;  %v1031_v15 = vld [vmem:[#allocation2 + $0x7] ss:$0 sm:$0xff] }
 0xe4d   :  { %1414 = vpow2.f32 %v1295_v37 }
 0xe4e   :  { %1416 = vpow2.f32 %v1294_v2 }
 0xe50   :  { %v944_v20 = vpop.f32.mrf.mxu3 }
 0xe51   :  { %v1413_v36 = vpop.eup %1412 }
 0xe52   :  { %1006 = vrot.lane.b32.xlu2 %v1413_v36, %s1519_s2 }
 0xe53   :  { %v1415_v6 = vpop.eup %1414 }
 0xe54   :  { %v987_v38 = vadd.f32 1.0, %v1415_v6  ;;  %v1417_v39 = vpop.eup %1416 }
 0xe55   :  { %v950_v40 = vadd.f32 1.0, %v1417_v39 }
 0xe56   :  { %1418 = vrcp.f32 %v987_v38  ;;  %v999_v49 = vand.u32 2147483648, %v987_v38  ;;  %vm993_vm5 = vweird.f32 %v987_v38  ;;  %v997_v50 = vand.u32 2147483647, %v987_v38 }
 0xe57   :  { %1420 = vrcp.f32 %v950_v40  ;;  %v962_v58 = vand.u32 2147483648, %v950_v40  ;;  %vm956_vm9 = vweird.f32 %v950_v40  ;;  %v960_v59 = vand.u32 2147483647, %v950_v40 }
 0xe58   :  { %v1000_v53 = vor.u32 1.1754944e-38, %v999_v49  ;;  %vm998_vm7 = vcmp.eq.f32.partialorder %v997_v50, 8.507059e+37 }
 0xe59   :  { %v963_v61 = vor.u32 1.1754944e-38, %v962_v58  ;;  %vm961_vm11 = vcmp.eq.f32.partialorder %v960_v59, 8.507059e+37 }
 0xe5c   :  { %v1419_v41 = vpop.eup %1418 }
 0xe5d   :  { %v989_v42 = vmul.f32 %v1419_v41, %v987_v38  ;;  %v1421_v44 = vpop.eup %1420  ;;  %vm994_vm4 = vweird.f32 %v1419_v41 }
 0xe5e   :  { %v952_v46 = vmul.f32 %v1421_v44, %v950_v40  ;;  %vm995_vm6 = vmor %vm993_vm5, %vm994_vm4  ;;  %vm957_vm8 = vweird.f32 %v1421_v44  ;;  %vm256_vm5 = vcmask 253952  }
 0xe5f   :  { %v990_v43 = vsub.f32 1.0, %v989_v42  ;;  %vm958_vm10 = vmor %vm956_vm9, %vm957_vm8  ;;  %vm1166_vm8 = vcmask 523264  }
 0xe60   :  { %v953_v48 = vsub.f32 1.0, %v952_v46 }
 0xe61   :  { %v991_v45 = vmul.f32 %v1419_v41, %v990_v43 }
 0xe62   :  { %v954_v52 = vmul.f32 %v1421_v44, %v953_v48 }
 0xe63   :  { %v992_v47 = vadd.f32 %v1419_v41, %v991_v45 }
 0xe64   :  { %v955_v57 = vadd.f32 %v1421_v44, %v954_v52 }
 0xe65   :  { %v996_v51 = vsel %vm995_vm6, %v1419_v41, %v992_v47  ;;  %vm1170_vm6 = vcmask 1040384  }
 0xe66   :  { %v1001_v55 = vsel %vm998_vm7, %v1000_v53, %v996_v51  ;;  %v959_v60 = vsel %vm958_vm10, %v1421_v44, %v955_v57  ;;  %vm1176_vm7 = vcmask 254976  }
 0xe67   :  { %v964_v63 = vsel %vm961_vm11, %v963_v61, %v959_v60  ;;  %v1004_v19 = vmul.f32 %v1001_v55, %v1807_v3 }
 0xe68   :  { %v967_v5 = vmul.f32 %v964_v63, %v1811_v13 }
 0xeac   :  { %v1007_v54 = vpop.permute.xlu2 %1006 }
 0xead   :  { %v1009_v56 = vmul.f32 %v1007_v54, %v1001_v55 }
 0xeaf   :  { %1011 = vrot.lane.b32.xlu1 %v1009_v56, %s1518_s17 }
 0xeb4   :  { %v970_v62 = vpop.permute.xlu0 %969 }
 0xeb5   :  { %v972_v0 = vmul.f32 %v970_v62, %v964_v63 }
 0xeb7   :  { %974 = vrot.lane.b32.xlu2 %v972_v0, %s1518_s17 }
 0xf11   :  { %v975_v7 = vpop.permute.xlu2 %974 }
 0xf12   :  { %v1833_v12 = vadd.f32 %v975_v7, %v967_v5 }
 0xf14   :  { %1422 = vtanh.f32 %v1833_v12 }
 0xf1a   :  { %v1423_v18 = vpop.eup %1422 }
 0xf1b   :  { %980 = vrot.lane.b32.xlu1 %v1423_v18, %s1519_s2 }
 0xf21   :  { %v1012_v10 = vpop.permute.xlu1 %1011 }
 0xf22   :  { %v1838_v1 = vadd.f32 %v1012_v10, %v1004_v19 }
 0xf24   :  { %1424 = vtanh.f32 %v1838_v1 }
 0xf2a   :  { %v1425_v21 = vpop.eup %1424 }
 0xf2b   :  { %1017 = vrot.lane.b32.xlu0 %v1425_v21, %s1519_s2 }
 0xf8d   :  { %v981_v26 = vpop.permute.xlu1 %980 }
 0xf8e   :  { %v1842_v13 = vmul.f32 %v981_v26, %v964_v63 }
 0xf90   :  { %v1032_v28 = vpack.c.bf16 %v1842_v13, %v1842_v13 }
 0xf92   :  { %1034 = vrot.lane.b32.xlu0 %v1032_v28, %s1518_s17 }
 0xf9d   :  { %v1018_v29 = vpop.permute.xlu0 %1017 }
 0xf9e   :  { %v1847_v30 = vmul.f32 %v1018_v29, %v1001_v55 }
 0xfa0   :  { %v1054_v3 = vpack.c.bf16 %v1847_v30, %v1847_v30 }
 0xfa2   :  { %1056 = vrot.lane.b32.xlu2 %v1054_v3, %s1518_s17 }
 0xffc   :  { %v1057_v31 = vpop.permute.xlu2 %1056 }
 0xffd   :  { %1297 = vmatmul.msk.bf16.vlgmr.msra.gmra.mxu1 %vm64_vm0, %v1057_v31 }
0x1004   :  { %v1035_v32 = vpop.permute.xlu0 %1034 }
0x1005   :  { %1296 = vmatmul.msk.bf16.vlgmr.msra.gmra.mxu0 %vm64_vm0, %v1035_v32 }
0x107a   :  { %v1070_v34 = vpop.f32.mrf.mxu1 }
0x107b   :  { %v1074_v35 = vadd.f32 %v1070_v34, %v1053_v33 }
0x107d   :  { %1426 = vtanh.f32 %v1074_v35  ;;  %v1299_v42 = vmul.f32 -1.442695, %v1074_v35 }
0x1082   :  { %v1048_v20 = vpop.f32.mrf.mxu0  ;;  %v1072_v36 = vpop.f32.mrf.mxu1 }
0x1083   :  { %v1427_v37 = vpop.eup %1426  ;;  %v1052_v2 = vadd.f32 %v1048_v20, %v1031_v15 }
0x1084   :  { %1134 = vrot.lane.b32.xlu1 %v1427_v37, %s1519_s2 }
0x1085   :  { %1428 = vtanh.f32 %v1052_v2  ;;  %v1298_v39 = vmul.f32 -1.442695, %v1052_v2 }
0x1087   :  { %1430 = vpow2.f32 %v1298_v39 }
0x108a   :  { %v1050_v6 = vpop.f32.mrf.mxu0 }
0x108b   :  { %v1429_v38 = vpop.eup %1428 }
0x108c   :  { %1097 = vrot.lane.b32.xlu2 %v1429_v38, %s1519_s2 }
0x108d   :  { %v1431_v40 = vpop.eup %1430 }
0x108e   :  { %v1078_v41 = vadd.f32 1.0, %v1431_v40 }
0x1090   :  { %1432 = vrcp.f32 %v1078_v41  ;;  %v1090_v51 = vand.u32 2147483648, %v1078_v41  ;;  %vm1084_vm13 = vweird.f32 %v1078_v41  ;;  %v1088_v52 = vand.u32 2147483647, %v1078_v41 }
0x1091   :  { %1434 = vpow2.f32 %v1299_v42 }
0x1092   :  { %v1091_v55 = vor.u32 1.1754944e-38, %v1090_v51  ;;  %vm1089_vm15 = vcmp.eq.f32.partialorder %v1088_v52, 8.507059e+37 }
0x1096   :  { %v1433_v43 = vpop.eup %1432 }
0x1097   :  { %v1435_v44 = vpop.eup %1434  ;;  %v1080_v45 = vmul.f32 %v1433_v43, %v1078_v41  ;;  %vm1085_vm12 = vweird.f32 %v1433_v43 }
0x1098   :  { %v1115_v46 = vadd.f32 1.0, %v1435_v44  ;;  %vm1086_vm14 = vmor %vm1084_vm13, %vm1085_vm12 }
0x1099   :  { %v1081_v47 = vsub.f32 1.0, %v1080_v45 }
0x109a   :  { %1436 = vrcp.f32 %v1115_v46  ;;  %v1127_v62 = vand.u32 2147483648, %v1115_v46  ;;  %vm1121_vm2 = vweird.f32 %v1115_v46  ;;  %v1125_v63 = vand.u32 2147483647, %v1115_v46 }
0x109b   :  { %v1082_v48 = vmul.f32 %v1433_v43, %v1081_v47 }
0x109c   :  { %v1128_v5 = vor.u32 1.1754944e-38, %v1127_v62  ;;  %vm1126_vm4 = vcmp.eq.f32.partialorder %v1125_v63, 8.507059e+37 }
0x109d   :  { %v1083_v49 = vadd.f32 %v1433_v43, %v1082_v48 }
0x109f   :  { %v1087_v53 = vsel %vm1086_vm14, %v1433_v43, %v1083_v49 }
0x10a0   :  { %v1437_v50 = vpop.eup %1436  ;;  %v1856_v57 = vsel %vm1089_vm15, %v1091_v55, %v1087_v53 }
0x10a1   :  { %v1117_v54 = vmul.f32 %v1437_v50, %v1115_v46  ;;  %vm1122_vm1 = vweird.f32 %v1437_v50 }
0x10a2   :  { %vm1123_vm3 = vmor %vm1121_vm2, %vm1122_vm1 }
0x10a3   :  { %v1118_v59 = vsub.f32 1.0, %v1117_v54 }
0x10a5   :  { %v1119_v60 = vmul.f32 %v1437_v50, %v1118_v59 }
0x10a7   :  { %v1120_v61 = vadd.f32 %v1437_v50, %v1119_v60 }
0x10a9   :  { %v1124_v0 = vsel %vm1123_vm3, %v1437_v50, %v1120_v61 }
0x10aa   :  { %v1129_v7 = vsel %vm1126_vm4, %v1128_v5, %v1124_v0 }
0x10e6   :  { %v1098_v56 = vpop.permute.xlu2 %1097 }
0x10e7   :  { %v1100_v58 = vmul.f32 %v1098_v56, %v1856_v57 }
0x10e9   :  { %1102 = vrot.lane.b32.xlu1 %v1100_v58, %s1518_s17 }
0x10f1   :  { %259 = vrot.lane.b32.xlu1 %v1679_v27, %s1518_s17  ;;  %v1095_v27 = vmul.f32 %v1856_v57, %v1833_v12 }
0x10f6   :  { %v1135_v18 = vpop.permute.xlu1 %1134 }
0x10f7   :  { %v1137_v19 = vmul.f32 %v1135_v18, %v1129_v7 }
0x10f9   :  { %643 = vrot.lane.b32.xlu1 %v1769_v22, %s1518_s17  ;;  %1139 = vrot.lane.b32.xlu0 %v1137_v19, %s1518_s17 }
0x1101   :  { %1027 = vrot.lane.b32.xlu1 %v1847_v30, %s1518_s17  ;;  %515 = vrot.lane.b32.xlu0 %v1739_v23, %s1518_s17  ;;  %v1132_v23 = vmul.f32 %v1129_v7, %v1838_v1 }
0x1109   :  { %382 = vrot.lane.b32.xlu1 %v1709_v25, %s1518_s17 }
0x1111   :  { %766 = vrot.lane.b32.xlu1 %v1795_v9, %s1518_s17 }
0x115b   :  { %v1103_v10 = vpop.permute.xlu1 %1102 }
0x115c   :  { %v1105_v21 = vadd.f32 %v1103_v10, %v1095_v27 }
0x115e   :  { %1438 = vtanh.f32 %v1105_v21 }
0x1163   :  { %v260_v22 = vpop.permute.xlu1 %259 }
0x1164   :  { %v1439_v26 = vpop.eup %1438  ;;  %262 = vst.msk [vmem:[#allocation4 + $0x7] sm:$0x1] %vm256_vm5, %v260_v22 }
0x1165   :  { %1108 = vrot.lane.b32.xlu0 %v1439_v26, %s1519_s2 }
0x116b   :  { %v1140_v28 = vpop.permute.xlu0 %1139  ;;  %v644_v25 = vpop.permute.xlu1 %643 }
0x116c   :  { %v1142_v29 = vadd.f32 %v1140_v28, %v1132_v23  ;;  %646 = vst.msk [vmem:[#allocation4 + $0x4] sm:$0x1] %vm256_vm5, %v644_v25 }
0x116d   :  { %899 = vrot.lane.b32.xlu0 %v1821_v11, %s1518_s17 }
0x116e   :  { %1440 = vtanh.f32 %v1142_v29  ;;  %v1179_v9 = vrot.slane %v1142_v29, 7 }
0x1170   :  { %v1181_v12 = vsel %vm1170_vm6, %v1105_v21, %v1179_v9 }
0x1173   :  { %v516_v30 = vpop.permute.xlu0 %515  ;;  %v1028_v3 = vpop.permute.xlu1 %1027 }
0x1174   :  { %v1441_v31 = vpop.eup %1440  ;;  %518 = vst.msk [vmem:[#allocation4 + $0x5] sm:$0x1] %vm256_vm5, %v516_v30 }
0x1175   :  { %1030 = vst.msk [vmem:[#allocation4 + $0x1] sm:$0x1] %vm256_vm5, %v1028_v3  ;;  %1145 = vrot.lane.b32.xlu2 %v1441_v31, %s1519_s2  ;;  %253 = vrot.lane.b32.xlu0 %v1674_v24, %s1518_s17 }
0x117b   :  { %v383_v1 = vpop.permute.xlu1 %382 }
0x117c   :  { %385 = vst.msk [vmem:[#allocation3 + $0x1] sm:$0x1] %vm256_vm5, %v383_v1 }
0x117d   :  { %387 = vrot.lane.b32.xlu2 %v1704_v14, %s1518_s17  ;;  %638 = vrot.lane.b32.xlu0 %v1764_v16, %s1518_s17 }
0x1183   :  { %v767_v11 = vpop.permute.xlu1 %766 }
0x1184   :  { %769 = vst.msk [vmem:[#allocation3 + $0x4] sm:$0x1] %vm256_vm5, %v767_v11 }
0x1185   :  { %771 = vrot.lane.b32.xlu2 %v1790_v4, %s1518_s17  ;;  %1022 = vrot.lane.b32.xlu0 %v1842_v13, %s1518_s17 }
0x11cf   :  { %v1146_v32 = vpop.permute.xlu2 %1145 }
0x11d0   :  { %v1148_v24 = vmul.f32 %v1146_v32, %v1129_v7 }
0x11d2   :  { %1155 = vrot.lane.b32.xlu2 %v1148_v24, %s1518_s17  ;;  %v1168_v35 = vrot.slane %v1148_v24, 7 }
0x11d7   :  { %v388_v33 = vpop.permute.xlu2 %387  ;;  %v1109_v34 = vpop.permute.xlu0 %1108 }
0x11d8   :  { %390 = vst.msk [vmem:[#allocation4 + $0x6] sm:$0x1] %vm256_vm5, %v388_v33  ;;  %v1111_v14 = vmul.f32 %v1109_v34, %v1856_v57 }
0x11da   :  { %510 = vrot.lane.b32.xlu2 %v1734_v17, %s1518_s17  ;;  %1150 = vrot.lane.b32.xlu1 %v1111_v14, %s1518_s17  ;;  %v1171_v16 = vsel %vm1170_vm6, %v1111_v14, %v1168_v35 }
0x11db   :  { %1173 = vrot.lane.b32.xlu0 %v1171_v16, %s1518_s17 }
0x11df   :  { %v772_v4 = vpop.permute.xlu2 %771  ;;  %v900_v13 = vpop.permute.xlu0 %899 }
0x11e0   :  { %774 = vst.msk [vmem:[#allocation4 + $0x3] sm:$0x1] %vm256_vm5, %v772_v4 }
0x11e1   :  { %902 = vst.msk [vmem:[#allocation4 + $0x2] sm:$0x1] %vm256_vm5, %v900_v13 }
0x11e2   :  { %894 = vrot.lane.b32.xlu2 %v1816_v8, %s1518_s17  ;;  %1183 = vrot.lane.b32.xlu1 %v1181_v12, %s1520_s6 }
0x11e7   :  { %v254_v15 = vpop.permute.xlu0 %253 }
0x11e8   :  { %257 = vst.msk [vmem:[#allocation3] sm:$0x1] %vm256_vm5, %v254_v15 }
0x11ef   :  { %v639_v17 = vpop.permute.xlu0 %638 }
0x11f0   :  { %641 = vst.msk [vmem:[#allocation3 + $0x3] sm:$0x1] %vm256_vm5, %v639_v17 }
0x11f7   :  { %v1023_v20 = vpop.permute.xlu0 %1022 }
0x11f8   :  { %1025 = vst.msk [vmem:[#allocation3 + $0x6] sm:$0x1] %vm256_vm5, %v1023_v20 }
0x122c   :  { %v1156_v36 = vpop.permute.xlu2 %1155 }
0x122d   :  { %1158 = vst.msk [vmem:[#allocation4] sm:$0x1] %vm256_vm5, %v1156_v36 }
0x1234   :  { %v511_v37 = vpop.permute.xlu2 %510  ;;  %v1160_v2 = vld [vmem:[#allocation4] sm:$0xff] }
0x1235   :  { %513 = vst.msk [vmem:[#allocation3 + $0x2] sm:$0x1] %vm256_vm5, %v511_v37  ;;  %1162 = vrot.lane.b32.xlu2 %v1160_v2, %s1518_s17 }
0x123c   :  { %v895_v8 = vpop.permute.xlu2 %894 }
0x123d   :  { %897 = vst.msk [vmem:[#allocation3 + $0x5] sm:$0x1] %vm256_vm5, %v895_v8 }
0x124c   :  { %v1151_v6 = vpop.permute.xlu1 %1150 }
0x124d   :  { %1153 = vst.msk [vmem:[#allocation3 + $0x7] sm:$0x1] %vm256_vm5, %v1151_v6  ;;  %v1174_v38 = vpop.permute.xlu0 %1173 }
0x124e   :  { %1177 = vst.msk [vmem:[#allocation7] sm:$0x3] %vm1176_vm7, %v1174_v38 }
0x124f   :  { %1208 = dma.vmem_to_hbm [thread:$0]  %s1204_s21, 32, %s1206_s24, [#allocation8]  }
0x1254   :  { %v1184_v39 = vpop.permute.xlu1 %1183  ;;  %v1159_v41 = vld [vmem:[#allocation3] sm:$0xff] }
0x1255   :  { %1186 = vst.msk [vmem:[#allocation9] sm:$0x3] %vm1176_vm7, %v1184_v39 }
0x1256   :  { %1219 = dma.vmem_to_hbm [thread:$0]  %s1215_s26, 32, %s1217_s4, [#allocation8]  }
0x128f   :  { %v1163_v40 = vpop.permute.xlu2 %1162 }
0x1290   :  { %v1165_v42 = vsel %vm64_vm0, %v1159_v41, %v1163_v40 }
0x1291   :  { %1167 = vst.msk [vmem:[#allocation5] sm:$0xff] %vm1166_vm8, %v1165_v42 }
0x1292   :  { %1197 = dma.vmem_to_hbm [thread:$0]  %s1193_s29, 128, %s1195_s10, [#allocation6]  }
0x1293   :  { %1514 = dma.done.wait [#allocation6], 128  }
0x1294   :  { %1515 = vsyncadd [#allocation6], 4294967168 }
0x1295   :  { %1516 = dma.done.wait [#allocation8], 64  }
0x1296   :  { %1517 = vsyncadd [#allocation8], 4294967232 }
0x1297   :  { %1232 = vsyncpa [#allocation6], 1 }
0x1298   :  { %1233 = vsyncpa [#allocation8], 1 }

// kernel: encoder_forward.2
= control target key start
LH: loop header
LB: loop body
LE: loop exit
PB: predicated region body
PF: predicated region fallthrough
CT: control target
= control target key end

     0   :  { %s3769_s30 = smov 32   ;;  %vm85_vm0 = vcmask 261120   ;;  %s3770_s22 = smov 96   ;;  %vm260_vm1 = vcmask 1043456   ;;  %vm261_vm2 = vsmask.f32 3328  ;;  %s5009_s1 = inlined_call_operand.vmem [shape: bf16[32,32], index: 1, kind: input, shape index: {}]   ;;  %s5010_s0 = inlined_call_operand.vmem [shape: f32[8,32], index: 0, kind: input, shape index: {}]   ;;  %s5011_s5 = inlined_call_operand.vmem [shape: bf16[32,4352], index: 5, kind: input, shape index: {}]   ;;  %s5012_s2 = inlined_call_operand.vmem [shape: f32[1,32], index: 2, kind: input, shape index: {}]   ;;  %s5013_s3 = inlined_call_operand.vmem [shape: bf16[32,32], index: 3, kind: input, shape index: {}]   ;;  %s5014_s4 = inlined_call_operand.vmem [shape: f32[1,32], index: 4, kind: input, shape index: {}]   ;;  %s5015_s9 = inlined_call_operand.vmem [shape: bf16[3,512,32], index: 9, kind: input, shape index: {}]   ;;  %s5016_s6 = inlined_call_operand.vmem [shape: f32[1,512], index: 6, kind: input, shape index: {}]   ;;  %s5017_s7 = inlined_call_operand.vmem [shape: f32[1,512], index: 7, kind: input, shape index: {}]   ;;  %s5018_s8 = inlined_call_operand.vmem [shape: f32[1,512], index: 8, kind: input, shape index: {}]   ;;  %s5019_s10 = inlined_call_operand.vmem [shape: f32[1,32], index: 10, kind: input, shape index: {}]   ;;  %s5020_s11 = inlined_call_operand.vmem [shape: f32[1,32], index: 11, kind: input, shape index: {}]   ;;  %s5021_s12 = inlined_call_operand.vmem [shape: f32[1,32], index: 12, kind: input, shape index: {}]   ;;  %s5022_s13 = inlined_call_operand.vmem [shape: bf16[3,32,32], index: 13, kind: input, shape index: {}]   ;;  %s5023_s14 = inlined_call_operand.vmem [shape: f32[1,32], index: 14, kind: input, shape index: {}]   ;;  %s5024_s15 = inlined_call_operand.vmem [shape: f32[1,32], index: 15, kind: input, shape index: {}]   ;;  %s5025_s16 = inlined_call_operand.vmem [shape: f32[1,32], index: 16, kind: input, shape index: {}]   ;;  %s5026_s18 = inlined_call_operand.vmem [shape: f32[4,64], index: 18, kind: input, shape index: {}]   ;;  %s5027_s17 = inlined_call_operand.vmem [shape: bf16[4,32,64], index: 17, kind: input, shape index: {}]   ;;  %s5028_s19 = inlined_call_operand.vmem [shape: f32[8,32], index: 19, kind: output, shape index: {}]  }
   0x1   :  { %5031 = sst [smem:[#allocation3_spill]] %s5009_s1  ;;  %v3565_v19 = vld [vmem:[%s5013_s3 + $0x8] sm:$0xff]  ;;  %v3564_v20 = vld [vmem:[%s5013_s3] sm:$0xff]  ;;  %s3771_s21 = smov 64   ;;  %vm262_vm3 = vmand %vm260_vm1, %vm261_vm2  ;;  %vm646_vm4 = vcmask 785408   ;;  %vm400_vm5 = vcmask 1042432  }
   0x2   :  { %5032 = sst [smem:[#allocation4_spill]] %s5010_s0  ;;  %133 = vmatpush.bf16.msra.mxu1 %v3565_v19  ;;  %vm565_vm6 = vcmask 523264   ;;  %vm587_vm7 = vsmask.f32 2304  ;;  %vm877_vm9 = vsmask.f32 1280 }
   0x3   :  { %5033 = sst [smem:[#allocation5_spill]] %s5011_s5  ;;  %vm588_vm8 = vmand %vm400_vm5, %vm587_vm7  ;;  %vm750_vm10 = vcmask 1041408   ;;  %vm1014_vm12 = vcmask 1040384   ;;  %vm1140_vm13 = vsmask.f32 256  ;;  %vm394_vm15 = vcmask 1047808  }
   0x4   :  { %5034 = sst [smem:[#allocation6_spill]] %s5012_s2  ;;  %vm878_vm11 = vmand %vm750_vm10, %vm877_vm9  ;;  %vm577_vm1 = vcmask 1048064   ;;  %vm744_vm2 = vcmask 1048320  }
   0x5   :  { %5035 = sst [smem:[#allocation7_spill]] %s5023_s14  ;;  %vm1141_vm14 = vmand %vm1014_vm12, %vm1140_vm13 }
   0x6   :  { %s5036_s20 = sld [smem:[#allocation3_spill]]  ;;  %134 = vmatpush.bf16.msra.mxu1 %v3564_v20 }
   0x7   :  { %s5037_s14 = sld [smem:[#allocation5_spill]] }
   0x8   :  { %s5038_s28 = sld [smem:[#allocation4_spill]] }
   0x9   :  { %s5039_s24 = sld [smem:[#allocation6_spill]] }
   0xa   :  { %s5040_s0 = sld [smem:[#allocation7_spill]] }
   0xc   :  { %v3563_v0 = vld [vmem:[%s5036_s20 + $0x8] sm:$0xff]  ;;  %v3562_v4 = vld [vmem:[%s5036_s20] sm:$0xff] }
   0xd   :  { %v2781_v1 = vld [vmem:[%s5037_s14 + $0x12c] sm:$0xf]  ;;  %v3589_v2 = vld [vmem:[%s5037_s14 + $0x1b0] sm:$0xf0]  ;;  %95 = vmatpush.bf16.msra.mxu0 %v3563_v0  ;;  %v3590_v7 = vld [vmem:[%s5037_s14 + $0x1b8] sm:$0xf0] }
   0xe   :  { %v2789_v3 = vld [vmem:[%s5037_s14 + $0x134] sm:$0xf]  ;;  %v63_v5 = vld [vmem:[%s5038_s28] sm:$0xff]  ;;  %v2782_v6 = vor.u32 %v3589_v2, %v2781_v1  ;;  %v3587_v10 = vld [vmem:[%s5037_s14 + $0x130] sm:$0xf] }
   0xf   :  { %v2790_v8 = vor.u32 %v3590_v7, %v2789_v3  ;;  %v64_v9 = vpack.c.bf16 %v63_v5, %v63_v5  ;;  %v2783_v11 = vld [vmem:[%s5037_s14 + $0x1b4] sm:$0xf0]  ;;  %v2761_v12 = vld [vmem:[%s5037_s14 + $0x1c] sm:$0xf]  ;;  %v3584_v13 = vld [vmem:[%s5037_s14 + $0xa0] sm:$0xf0] }
  0x10   :  { %468 = vrot.lane.b32.xlu0 %v2782_v6, %s3769_s30  ;;  %v2786_v14 = vor.u32 %v3587_v10, %v2783_v11  ;;  %v2762_v15 = vor.u32 %v3584_v13, %v2761_v12  ;;  %v3588_v16 = vld [vmem:[%s5037_s14 + $0x138] sm:$0xf]  ;;  %v2791_v17 = vld [vmem:[%s5037_s14 + $0x1bc] sm:$0xf0]  ;;  %v2797_v21 = vld [vmem:[%s5037_s14 + $0x13c] sm:$0xf] }
  0x11   :  { %472 = vrot.lane.b32.xlu1 %v2790_v8, %s3769_s30  ;;  %96 = vmatpush.bf16.msra.mxu0 %v3562_v4  ;;  %v2794_v18 = vor.u32 %v3588_v16, %v2791_v17  ;;  %v3591_v22 = vld [vmem:[%s5037_s14 + $0x1c0] sm:$0xf0]  ;;  %v3596_v24 = vld [vmem:[%s5037_s14 + $0x140] sm:$0xf]  ;;  %v2823_v25 = vld [vmem:[%s5037_s14 + $0x1c4] sm:$0xf0] }
  0x12   :  { %v2798_v23 = vor.u32 %v3591_v22, %v2797_v21  ;;  %v3583_v26 = vld [vmem:[%s5037_s14 + $0x28] sm:$0xf]  ;;  %v2826_v27 = vor.u32 %v3596_v24, %v2823_v25  ;;  %v2771_v28 = vld [vmem:[%s5037_s14 + $0xac] sm:$0xf0]  ;;  %v3582_v29 = vld [vmem:[%s5037_s14 + $0x20] sm:$0xf] }
  0x13   :  { %v2763_v30 = vld [vmem:[%s5037_s14 + $0xa4] sm:$0xf0]  ;;  %v2774_v32 = vor.u32 %v3583_v26, %v2771_v28  ;;  %v2777_v33 = vld [vmem:[%s5037_s14 + $0x2c] sm:$0xf]  ;;  %v3586_v34 = vld [vmem:[%s5037_s14 + $0xb0] sm:$0xf0] }
  0x14   :  { %2677 = vmatmul.msk.bf16.vlgmr.msra.gmra.mxu0 %vm85_vm0, %v64_v9  ;;  %v2766_v31 = vor.u32 %v3582_v29, %v2763_v30  ;;  %v2769_v35 = vld [vmem:[%s5037_s14 + $0x24] sm:$0xf]  ;;  %v3585_v36 = vld [vmem:[%s5037_s14 + $0xa8] sm:$0xf0]  ;;  %v2778_v37 = vor.u32 %v3586_v34, %v2777_v33  ;;  %v3594_v40 = vld [vmem:[%s5037_s14 + $0xb0] sm:$0xf0] }
  0x15   :  { %v2770_v38 = vor.u32 %v3585_v36, %v2769_v35  ;;  %v2805_v39 = vld [vmem:[%s5037_s14 + $0x2c] sm:$0xf]  ;;  %v2813_v42 = vld [vmem:[%s5037_s14 + $0x34] sm:$0xf]  ;;  %v3595_v43 = vld [vmem:[%s5037_s14 + $0xb8] sm:$0xf0] }
  0x16   :  { %460 = vrot.lane.b32.xlu2 %v2766_v31, %s3769_s30  ;;  %v2806_v41 = vor.u32 %v3594_v40, %v2805_v39  ;;  %v2821_v44 = vld [vmem:[%s5037_s14 + $0x13c] sm:$0xf]  ;;  %v3598_v45 = vld [vmem:[%s5037_s14 + $0x1c0] sm:$0xf0]  ;;  %v2814_v46 = vor.u32 %v3595_v43, %v2813_v42  ;;  %v3597_v48 = vld [vmem:[%s5037_s14 + $0x148] sm:$0xf] }
  0x17   :  { %v2822_v47 = vor.u32 %v3598_v45, %v2821_v44  ;;  %v2831_v49 = vld [vmem:[%s5037_s14 + $0x1cc] sm:$0xf0]  ;;  %v3604_v51 = vld [vmem:[%s5037_s14 + $0x14c] sm:$0xf]  ;;  %v2859_v52 = vld [vmem:[%s5037_s14 + $0x1d0] sm:$0xf0] }
  0x18   :  { %470 = vrot.lane.b32.xlu0 %v2786_v14, %s3769_s30  ;;  %v2834_v50 = vor.u32 %v3597_v48, %v2831_v49  ;;  %v3741_v53 = vld [vmem:[%s5039_s24] ss:$0 sm:$0xff]  ;;  %v2829_v54 = vld [vmem:[%s5037_s14 + $0x144] sm:$0xf]  ;;  %v3599_v55 = vld [vmem:[%s5037_s14 + $0x1c8] sm:$0xf0]  ;;  %v2862_v56 = vor.u32 %v3604_v51, %v2859_v52 }
  0x19   :  { %458 = vrot.lane.b32.xlu1 %v2762_v15, %s3769_s30  ;;  %v2830_v58 = vor.u32 %v3599_v55, %v2829_v54  ;;  %v3593_v60 = vld [vmem:[%s5037_s14 + $0x38] sm:$0xf]  ;;  %v2815_v61 = vld [vmem:[%s5037_s14 + $0xbc] sm:$0xf0]  ;;  %v3592_v3 = vld [vmem:[%s5037_s14 + $0x30] sm:$0xf] }
  0x1a   :  { %v2818_v63 = vor.u32 %v3593_v60, %v2815_v61  ;;  %v2841_v0 = vld [vmem:[%s5037_s14 + $0x38] sm:$0xf]  ;;  %v3602_v1 = vld [vmem:[%s5037_s14 + $0xbc] sm:$0xf0]  ;;  %v3600_v8 = vld [vmem:[%s5037_s14 + $0x3c] sm:$0xf] }
  0x1b   :  { %v2807_v4 = vld [vmem:[%s5037_s14 + $0xb4] sm:$0xf0]  ;;  %v2842_v5 = vor.u32 %v3602_v1, %v2841_v0  ;;  %v2843_v9 = vld [vmem:[%s5037_s14 + $0xc0] sm:$0xf0]  ;;  %v3605_v11 = vld [vmem:[%s5037_s14 + $0x154] sm:$0xf] }
  0x1c   :  { %v2810_v7 = vor.u32 %v3592_v3, %v2807_v4  ;;  %v2846_v10 = vor.u32 %v3600_v8, %v2843_v9  ;;  %v2867_v12 = vld [vmem:[%s5037_s14 + $0x1d8] sm:$0xf0]  ;;  %v2857_v13 = vld [vmem:[%s5037_s14 + $0x148] sm:$0xf]  ;;  %v3606_v14 = vld [vmem:[%s5037_s14 + $0x1cc] sm:$0xf0] }
  0x1d   :  { %v2870_v15 = vor.u32 %v3605_v11, %v2867_v12  ;;  %v2858_v16 = vor.u32 %v3606_v14, %v2857_v13  ;;  %v2892_v17 = vld [vmem:[%s5037_s14 + $0x154] sm:$0xf]  ;;  %v2900_v20 = vld [vmem:[%s5037_s14 + $0x15c] sm:$0xf]  ;;  %v3615_v21 = vld [vmem:[%s5037_s14 + $0x1e0] sm:$0xf0] }
  0x1e   :  { %462 = vrot.lane.b32.xlu2 %v2770_v38, %s3769_s30  ;;  %v2865_v22 = vld [vmem:[%s5037_s14 + $0x150] sm:$0xf]  ;;  %v2901_v24 = vor.u32 %v3615_v21, %v2900_v20  ;;  %v3601_v26 = vld [vmem:[%s5037_s14 + $0x44] sm:$0xf]  ;;  %v3610_v30 = vld [vmem:[%s5037_s14 + $0xc8] sm:$0xf0] }
  0x1f   :  { %v2876_v29 = vld [vmem:[%s5037_s14 + $0x44] sm:$0xf]  ;;  %v2849_v31 = vld [vmem:[%s5037_s14 + $0x40] sm:$0xf]  ;;  %v3608_v35 = vld [vmem:[%s5037_s14 + $0x48] sm:$0xf] }
  0x20   :  { %474 = vrot.lane.b32.xlu0 %v2794_v18, %s3769_s30  ;;  %v3614_v18 = vld [vmem:[%s5037_s14 + $0x1d8] sm:$0xf0]  ;;  %v2877_v33 = vor.u32 %v3610_v30, %v2876_v29  ;;  %v2878_v36 = vld [vmem:[%s5037_s14 + $0xcc] sm:$0xf0]  ;;  %v2886_v38 = vld [vmem:[%s5037_s14 + $0xd4] sm:$0xf0] }
  0x21   :  { %476 = vrot.lane.b32.xlu1 %v2798_v23, %s3769_s30  ;;  %v2893_v19 = vor.u32 %v3614_v18, %v2892_v17  ;;  %v3607_v23 = vld [vmem:[%s5037_s14 + $0x1d4] sm:$0xf0]  ;;  %v2881_v39 = vor.u32 %v3608_v35, %v2878_v36  ;;  %v2923_v44 = vld [vmem:[%s5037_s14 + $0x160] sm:$0xf]  ;;  %v3620_v45 = vld [vmem:[%s5037_s14 + $0x1e4] sm:$0xf0] }
  0x22   :  { %v2866_v25 = vor.u32 %v3607_v23, %v2865_v22  ;;  %v3612_v40 = vld [vmem:[%s5037_s14 + $0x158] sm:$0xf]  ;;  %v2924_v48 = vor.u32 %v3620_v45, %v2923_v44  ;;  %v3613_v49 = vld [vmem:[%s5037_s14 + $0x160] sm:$0xf]  ;;  %v2950_v55 = vld [vmem:[%s5037_s14 + $0x168] sm:$0xf] }
  0x23   :  { %v3617_v54 = vld [vmem:[%s5037_s14 + $0xd4] sm:$0xf0]  ;;  %v3623_v1 = vld [vmem:[%s5037_s14 + $0xdc] sm:$0xf0]  ;;  %v3619_v3 = vld [vmem:[%s5037_s14 + $0x164] sm:$0xf] }
  0x24   :  { %v2938_v0 = vld [vmem:[%s5037_s14 + $0x58] sm:$0xf]  ;;  %v2925_v4 = vld [vmem:[%s5037_s14 + $0x1e8] sm:$0xf0]  ;;  %v2940_v8 = vld [vmem:[%s5037_s14 + $0xe0] sm:$0xf0] }
  0x25   :  { %v2946_v9 = vld [vmem:[%s5037_s14 + $0x60] sm:$0xf]  ;;  %v3572_v11 = vld [vmem:[%s5037_s14 + $0x194] sm:$0xf0]  ;;  %v3570_v12 = vld [vmem:[%s5037_s14 + $0x114] sm:$0xf] }
  0x26   :  { %638 = vrot.lane.b32.xlu2 %v2822_v47, %s3770_s22  ;;  %v3621_v47 = vld [vmem:[%s5037_s14 + $0x1ec] sm:$0xf0]  ;;  %v2707_v14 = vld [vmem:[%s5037_s14 + $0x198] sm:$0xf0]  ;;  %v3624_v17 = vld [vmem:[%s5037_s14 + $0xe4] sm:$0xf0] }
  0x27   :  { %v3571_v21 = vld [vmem:[%s5037_s14 + $0x11c] sm:$0xf]  ;;  %v2715_v22 = vld [vmem:[%s5037_s14 + $0x1a0] sm:$0xf0]  ;;  %v3616_v23 = vld [vmem:[%s5037_s14 + $0x54] sm:$0xf]  ;;  %v2947_v29 = vor.u32 %v3624_v17, %v2946_v9 }
  0x28   :  { %640 = vrot.lane.b32.xlu0 %v2826_v27, %s3770_s22  ;;  %v2851_v27 = vld [vmem:[%s5037_s14 + $0xc8] sm:$0xf0]  ;;  %v3568_v44 = vld [vmem:[%s5037_s14 + $0x84] sm:$0xf0]  ;;  %v3566_v45 = vld [vmem:[%s5037_s14 + $0x4] sm:$0xf] }
  0x29   :  { %464 = vrot.lane.b32.xlu1 %v2774_v32, %s3769_s30  ;;  %v2854_v28 = vor.u32 %v3601_v26, %v2851_v27  ;;  %v3603_v32 = vld [vmem:[%s5037_s14 + $0xc4] sm:$0xf0]  ;;  %v3574_v9 = vld [vmem:[%s5037_s14 + $0x14] sm:$0xf] }
  0x2a   :  { %v2850_v34 = vor.u32 %v3603_v32, %v2849_v31  ;;  %v2919_v31 = vld [vmem:[%s5037_s14 + $0x58] sm:$0xf]  ;;  %v3618_v32 = vld [vmem:[%s5037_s14 + $0xdc] sm:$0xf0] }
  0x2b   :  { %v2920_v35 = vor.u32 %v3618_v32, %v2919_v31 }
  0x2e   :  { %642 = vrot.lane.b32.xlu2 %v2830_v58, %s3770_s22  ;;  %v2884_v58 = vld [vmem:[%s5037_s14 + $0x4c] sm:$0xf] }
  0x30   :  { %466 = vrot.lane.b32.xlu0 %v2778_v37, %s3769_s30  ;;  %v3609_v37 = vld [vmem:[%s5037_s14 + $0x50] sm:$0xf] }
  0x31   :  { %630 = vrot.lane.b32.xlu1 %v2806_v41, %s3770_s22  ;;  %v2894_v41 = vld [vmem:[%s5037_s14 + $0x1dc] sm:$0xf0]  ;;  %v2889_v42 = vor.u32 %v3609_v37, %v2886_v38  ;;  %v2958_v37 = vld [vmem:[%s5037_s14 + $0x170] sm:$0xf]  ;;  %v3627_v38 = vld [vmem:[%s5037_s14 + $0x1f4] sm:$0xf0] }
  0x32   :  { %v2897_v43 = vor.u32 %v3612_v40, %v2894_v41 }
  0x36   :  { %632 = vrot.lane.b32.xlu2 %v2810_v7, %s3770_s22  ;;  %v3622_v7 = vld [vmem:[%s5037_s14 + $0x5c] sm:$0xf] }
  0x37   :  { %v2943_v18 = vor.u32 %v3622_v7, %v2940_v8 }
  0x38   :  { %634 = vrot.lane.b32.xlu0 %v2814_v46, %s3770_s22  ;;  %v2931_v46 = vld [vmem:[%s5037_s14 + $0x168] sm:$0xf] }
  0x39   :  { %644 = vrot.lane.b32.xlu1 %v2834_v50, %s3770_s22  ;;  %v2902_v50 = vld [vmem:[%s5037_s14 + $0x1e4] sm:$0xf0]  ;;  %v2932_v51 = vor.u32 %v3621_v47, %v2931_v46 }
  0x3a   :  { %v2905_v52 = vor.u32 %v3613_v49, %v2902_v50  ;;  %v2691_v49 = vld [vmem:[%s5037_s14 + $0x88] sm:$0xf0]  ;;  %v2697_v50 = vld [vmem:[%s5037_s14 + $0x8] sm:$0xf] }
  0x3e   :  { %801 = vrot.lane.b32.xlu2 %v2858_v16, %s3771_s21  ;;  %v3573_v16 = vld [vmem:[%s5037_s14 + $0x19c] sm:$0xf0] }
  0x40   :  { %803 = vrot.lane.b32.xlu0 %v2862_v56, %s3771_s21  ;;  %v3626_v56 = vld [vmem:[%s5037_s14 + $0x1ec] sm:$0xf0] }
  0x41   :  { %636 = vrot.lane.b32.xlu1 %v2818_v63, %s3770_s22  ;;  %v2951_v60 = vor.u32 %v3626_v56, %v2950_v55  ;;  %v2952_v63 = vld [vmem:[%s5037_s14 + $0x1f0] sm:$0xf0]  ;;  %v3567_v55 = vld [vmem:[%s5037_s14 + $0xc] sm:$0xf] }
  0x42   :  { %v2699_v56 = vld [vmem:[%s5037_s14 + $0x90] sm:$0xf0] }
  0x46   :  { %805 = vrot.lane.b32.xlu2 %v2866_v25, %s3771_s21  ;;  %v2718_v25 = vor.u32 %v3571_v21, %v2715_v22 }
  0x48   :  { %793 = vrot.lane.b32.xlu0 %v2842_v5, %s3771_s21  ;;  %v2939_v5 = vor.u32 %v3623_v1, %v2938_v0  ;;  %238 = vmatpush.bf16.msrb.mxu1 %v2718_v25  ;;  %v2749_v0 = vld [vmem:[%s5037_s14 + $0x128] sm:$0xf]  ;;  %v3581_v1 = vld [vmem:[%s5037_s14 + $0x1ac] sm:$0xf0] }
  0x49   :  { %795 = vrot.lane.b32.xlu1 %v2846_v10, %s3771_s21  ;;  %v2705_v10 = vld [vmem:[%s5037_s14 + $0x110] sm:$0xf] }
  0x4a   :  { %v2706_v13 = vor.u32 %v3572_v11, %v2705_v10  ;;  %v2727_v10 = vld [vmem:[%s5037_s14 + $0x98] sm:$0xf0]  ;;  %v2733_v11 = vld [vmem:[%s5037_s14 + $0x18] sm:$0xf] }
  0x4c   :  { %199 = vmatpush.bf16.msra.mxu2 %v2706_v13  ;;  %v3577_v13 = vld [vmem:[%s5037_s14 + $0x9c] sm:$0xf0] }
  0x4e   :  { %797 = vrot.lane.b32.xlu2 %v2850_v34, %s3771_s21 }
  0x50   :  { %807 = vrot.lane.b32.xlu0 %v2870_v15, %s3771_s21  ;;  %v2713_v15 = vld [vmem:[%s5037_s14 + $0x118] sm:$0xf] }
  0x51   :  { %928 = vrot.lane.b32.xlu1 %v2893_v19, %s3771_s21  ;;  %v2710_v19 = vor.u32 %v3570_v12, %v2707_v14  ;;  %v2714_v20 = vor.u32 %v3573_v16, %v2713_v15  ;;  %v2730_v12 = vor.u32 %v3574_v9, %v2727_v10  ;;  %v3575_v14 = vld [vmem:[%s5037_s14 + $0x1c] sm:$0xf]  ;;  %v2735_v15 = vld [vmem:[%s5037_s14 + $0xa0] sm:$0xf0]  ;;  %v2734_v16 = vor.u32 %v3577_v13, %v2733_v11 }
  0x52   :  { %v2738_v17 = vor.u32 %v3575_v14, %v2735_v15 }
  0x53   :  { %212 = vmatpush.bf16.msra.mxu3 %v2710_v19  ;;  %225 = vmatpush.bf16.msrb.mxu0 %v2714_v20 }
  0x56   :  { %930 = vrot.lane.b32.xlu2 %v2897_v43, %s3771_s21  ;;  %v2689_v43 = vld [vmem:[%s5037_s14] sm:$0xf] }
  0x58   :  { %932 = vrot.lane.b32.xlu0 %v2901_v24, %s3771_s21  ;;  %v2913_v24 = vld [vmem:[%s5037_s14 + $0xd8] sm:$0xf0] }
  0x59   :  { %799 = vrot.lane.b32.xlu1 %v2854_v28, %s3771_s21  ;;  %v2916_v30 = vor.u32 %v3616_v23, %v2913_v24 }
  0x5e   :  { %934 = vrot.lane.b32.xlu2 %v2905_v52, %s3771_s21 }
  0x60   :  { %920 = vrot.lane.b32.xlu0 %v2877_v33, %s3771_s21 }
  0x61   :  { %922 = vrot.lane.b32.xlu1 %v2881_v39, %s3771_s21  ;;  %v2959_v39 = vor.u32 %v3627_v38, %v2958_v37 }
  0x68   :  { %926 = vrot.lane.b32.xlu0 %v2889_v42, %s3771_s21 }
  0x69   :  { %1057 = vrot.lane.b32.xlu1 %v2924_v48, %s3770_s22  ;;  %v2690_v48 = vor.u32 %v3568_v44, %v2689_v43 }
  0x6b   :  { %200 = vmatpush.bf16.msra.mxu2 %v2690_v48 }
  0x70   :  { %1061 = vrot.lane.b32.xlu0 %v2932_v51, %s3770_s22  ;;  %v4223_v27 = vpop.permute.xlu2 %460  ;;  %v3569_v51 = vld [vmem:[%s5037_s14 + $0x8c] sm:$0xf0] }
  0x78   :  { %1183 = vrot.lane.b32.xlu0 %v2951_v60, %s3769_s30  ;;  %v4238_v34 = vpop.permute.xlu2 %462  ;;  %v3578_v60 = vld [vmem:[%s5037_s14 + $0x124] sm:$0xf] }
  0x80   :  { %1177 = vrot.lane.b32.xlu0 %v2939_v5, %s3769_s30  ;;  %v4251_v41 = vpop.permute.xlu2 %638  ;;  %v2725_v5 = vld [vmem:[%s5037_s14 + $0x10] sm:$0xf] }
  0x82   :  { %v4225_v28 = vpop.permute.xlu0 %468 }
  0x83   :  { %v4221_v26 = vpop.permute.xlu1 %472 }
  0x88   :  { %1181 = vrot.lane.b32.xlu0 %v2947_v29, %s3769_s30  ;;  %v4278_v52 = vpop.permute.xlu2 %642 }
  0x8a   :  { %v4240_v36 = vpop.permute.xlu0 %470 }
  0x8b   :  { %v4236_v33 = vpop.permute.xlu1 %458  ;;  %v484_v48 = vsel %vm85_vm0, %v4240_v36, %v4221_v26 }
  0x90   :  { %v4336_v20 = vpop.permute.xlu2 %632 }
  0x91   :  { %v98_v57 = vpop.f32.mrf.mxu0 }
  0x92   :  { %v99_v59 = vadd.f32 %v3741_v53, %v98_v57  ;;  %v2911_v53 = vld [vmem:[%s5037_s14 + $0x50] sm:$0xf]  ;;  %v4253_v42 = vpop.permute.xlu0 %474 }
  0x93   :  { %v2912_v57 = vor.u32 %v3617_v54, %v2911_v53  ;;  %v4249_v40 = vpop.permute.xlu1 %476  ;;  %v2694_v53 = vor.u32 %v3566_v45, %v2691_v49  ;;  %v2698_v54 = vor.u32 %v3569_v51, %v2697_v50  ;;  %v483_v45 = vsel %vm85_vm0, %v4225_v28, %v4240_v36 }
  0x94   :  { %v102_v62 = vmax.f32 %v99_v59, 0.0  ;;  %v3611_v59 = vld [vmem:[%s5037_s14 + $0xd0] sm:$0xf0]  ;;  %v485_v50 = vsel %vm85_vm0, %v4221_v26, %v4253_v42  ;;  %v486_v51 = vsel %vm85_vm0, %v4253_v42, %v4249_v40  ;;  %v479_v26 = vsel %vm85_vm0, %v4236_v33, %v4223_v27 }
  0x95   :  { %1051 = vrot.lane.b32.xlu1 %v2912_v57, %s3770_s22  ;;  %v2885_v61 = vor.u32 %v3611_v59, %v2884_v58  ;;  %v2741_v57 = vld [vmem:[%s5037_s14 + $0x120] sm:$0xf]  ;;  %v2702_v58 = vor.u32 %v3567_v55, %v2699_v56  ;;  %v3580_v59 = vld [vmem:[%s5037_s14 + $0x1a4] sm:$0xf0]  ;;  %213 = vmatpush.bf16.msra.mxu3 %v2694_v53  ;;  %v480_v40 = vsel %vm85_vm0, %v4223_v27, %v4238_v34 }
  0x96   :  { %v103_v2 = vpack.c.bf16 %v102_v62, %v102_v62  ;;  %v3625_v62 = vld [vmem:[%s5037_s14 + $0x16c] sm:$0xf]  ;;  %226 = vmatpush.bf16.msrb.mxu0 %v2698_v54 }
  0x97   :  { %924 = vrot.lane.b32.xlu2 %v2885_v61, %s3771_s21  ;;  %v2743_v61 = vld [vmem:[%s5037_s14 + $0x1a8] sm:$0xf0]  ;;  %239 = vmatpush.bf16.msrb.mxu1 %v2702_v58 }
  0x98   :  { %2686 = vmatmul.msk.bf16.vlgmr.msra.gmra.mxu1 %vm85_vm0, %v103_v2  ;;  %v2955_v2 = vor.u32 %v3625_v62, %v2952_v63  ;;  %v2742_v62 = vor.u32 %v3580_v59, %v2741_v57  ;;  %v2746_v63 = vor.u32 %v3578_v60, %v2743_v61  ;;  %v4340_v23 = vpop.permute.xlu2 %801 }
  0x99   :  { %v100_v6 = vpop.f32.mrf.mxu0 }
  0x9a   :  { %v2928_v6 = vor.u32 %v3619_v3, %v2925_v4  ;;  %v4265_v46 = vpop.permute.xlu0 %640  ;;  %v2750_v3 = vor.u32 %v3581_v1, %v2749_v0  ;;  %v2751_v4 = vld [vmem:[%s5037_s14 + $0x1b0] sm:$0xf0]  ;;  %321 = vmatpush.bf16.msrb.mxu2 %v2742_v62  ;;  %334 = vmatpush.bf16.msrb.mxu3 %v2746_v63 }
  0x9b   :  { %v4267_v47 = vpop.permute.xlu1 %464  ;;  %v650_v61 = vsel %vm646_vm4, %v4251_v41, %v4265_v46  ;;  %v651_v62 = vsel %vm646_vm4, %v4265_v46, %v4278_v52 }
  0x9c   :  { %347 = vmatpush.bf16.msra.mxu0 %v2750_v3  ;;  %v481_v42 = vsel %vm85_vm0, %v4238_v34, %v4267_v47 }
  0x9d   :  { %1185 = vrot.lane.b32.xlu1 %v2955_v2, %s3769_s30  ;;  %v3579_v2 = vld [vmem:[%s5037_s14 + $0x12c] sm:$0xf] }
  0x9e   :  { %v2754_v7 = vor.u32 %v3579_v2, %v2751_v4  ;;  %335 = vmatpush.bf16.msrb.mxu3 %v2730_v12 }
  0x9f   :  { %1059 = vrot.lane.b32.xlu2 %v2928_v6, %s3770_s22  ;;  %v3576_v6 = vld [vmem:[%s5037_s14 + $0x94] sm:$0xf0] }
  0xa0   :  { %v2726_v8 = vor.u32 %v3576_v6, %v2725_v5  ;;  %360 = vmatpush.bf16.msra.mxu1 %v2754_v7  ;;  %348 = vmatpush.bf16.msra.mxu0 %v2734_v16  ;;  %v4344_v25 = vpop.permute.xlu2 %805 }
  0xa2   :  { %322 = vmatpush.bf16.msrb.mxu2 %v2726_v8 }
  0xa3   :  { %v4334_v19 = vpop.permute.xlu1 %630 }
  0xa4   :  { %361 = vmatpush.bf16.msra.mxu1 %v2738_v17  ;;  %v647_v46 = vsel %vm646_vm4, %v4334_v19, %v4336_v20 }
  0xa5   :  { %1179 = vrot.lane.b32.xlu1 %v2943_v18, %s3769_s30  ;;  %v467_v18 = vpop.permute.xlu0 %466 }
  0xa6   :  { %v482_v54 = vsel %vm85_vm0, %v4267_v47, %v467_v18 }
  0xa7   :  { %1053 = vrot.lane.b32.xlu2 %v2916_v30, %s3770_s22  ;;  %v3742_v30 = vld [vmem:[%s5014_s4] ss:$0 sm:$0xff] }
  0xa8   :  { %v4353_v37 = vpop.permute.xlu2 %797 }
  0xab   :  { %v645_v22 = vpop.permute.xlu1 %644 }
  0xac   :  { %v652_v34 = vsel %vm646_vm4, %v4278_v52, %v645_v22 }
  0xad   :  { %v4338_v21 = vpop.permute.xlu0 %634 }
  0xae   :  { %v648_v0 = vsel %vm646_vm4, %v4336_v20, %v4338_v21 }
  0xaf   :  { %1055 = vrot.lane.b32.xlu2 %v2920_v35, %s3770_s22 }
  0xb0   :  { %v4379_v36 = vpop.permute.xlu2 %930 }
  0xb3   :  { %v4346_v29 = vpop.permute.xlu1 %636 }
  0xb4   :  { %v649_v41 = vsel %vm646_vm4, %v4338_v21, %v4346_v29 }
  0xb5   :  { %v4342_v24 = vpop.permute.xlu0 %803 }
  0xb6   :  { %v813_v8 = vsel %vm565_vm6, %v4340_v23, %v4342_v24  ;;  %v814_v9 = vsel %vm565_vm6, %v4342_v24, %v4344_v25 }
  0xb7   :  { %1187 = vrot.lane.b32.xlu2 %v2959_v39, %s3769_s30 }
  0xb8   :  { %v4402_v59 = vpop.permute.xlu2 %934 }
  0xbb   :  { %v4357_v39 = vpop.permute.xlu1 %795 }
  0xbc   :  { %v811_v12 = vsel %vm565_vm6, %v4357_v39, %v4353_v37 }
  0xbd   :  { %v4351_v35 = vpop.permute.xlu0 %793 }
  0xbe   :  { %v810_v11 = vsel %vm565_vm6, %v4351_v35, %v4357_v39 }
  0xc3   :  { %v929_v56 = vpop.permute.xlu1 %928 }
  0xc4   :  { %v939_v7 = vsel %vm565_vm6, %v929_v56, %v4379_v36 }
  0xc5   :  { %v808_v28 = vpop.permute.xlu0 %807 }
  0xc6   :  { %v815_v6 = vsel %vm565_vm6, %v4344_v25, %v808_v28 }
  0xcb   :  { %v800_v47 = vpop.permute.xlu1 %799 }
  0xcc   :  { %v812_v14 = vsel %vm565_vm6, %v4353_v37, %v800_v47 }
  0xcd   :  { %v4399_v33 = vpop.permute.xlu0 %932 }
  0xce   :  { %v941_v23 = vsel %vm565_vm6, %v4399_v33, %v4402_v59 }
  0xd3   :  { %v923_v52 = vpop.permute.xlu1 %922 }
  0xd5   :  { %v921_v63 = vpop.permute.xlu0 %920 }
  0xd6   :  { %v936_v15 = vsel %vm565_vm6, %v921_v63, %v923_v52 }
  0xdb   :  { %v1058_v10 = vpop.permute.xlu1 %1057 }
  0xdd   :  { %v927_v2 = vpop.permute.xlu0 %926 }
  0xe5   :  { %v1062_v13 = vpop.permute.xlu0 %1061 }
  0xed   :  { %v1184_v21 = vpop.permute.xlu0 %1183 }
  0xf1   :  { %v925_v1 = vpop.permute.xlu2 %924 }
  0xf9   :  { %v1060_v4 = vpop.permute.xlu2 %1059 }
  0xfa   :  { %v1066_v25 = vsel %vm646_vm4, %v1060_v4, %v1062_v13 }
 0x101   :  { %v1054_v18 = vpop.permute.xlu2 %1053 }
 0x107   :  { %v1052_v20 = vpop.permute.xlu1 %1051 }
 0x108   :  { %v1063_v35 = vsel %vm646_vm4, %v1052_v20, %v1054_v18 }
 0x10f   :  { %v1186_v39 = vpop.permute.xlu1 %1185 }
 0x110   :  { %v1191_v28 = vsel %vm85_vm0, %v1184_v21, %v1186_v39 }
 0x115   :  { %v136_v31 = vpop.f32.mrf.mxu1 }
 0x116   :  { %v137_v32 = vadd.f32 %v3742_v30, %v136_v31  ;;  %v1056_v30 = vpop.permute.xlu2 %1055  ;;  %v937_v31 = vsel %vm565_vm6, %v923_v52, %v925_v1 }
 0x117   :  { %v1064_v37 = vsel %vm646_vm4, %v1054_v18, %v1056_v30 }
 0x118   :  { %v4355_v38 = vmax.f32 %v137_v32, 0.0  ;;  %v938_v32 = vsel %vm565_vm6, %v925_v1, %v927_v2 }
 0x11a   :  { %v141_v43 = vpack.c.bf16 %v4355_v38, %v4355_v38 }
 0x11c   :  { %v250_v44 = vunpack.c.l.b16 %v141_v43  ;;  %2719 = vmatmul.msk.bf16.vlgmr.msra.gmra.mxu2 %vm85_vm0, %v141_v43  ;;  %2720 = vmatmul.msk.bf16.vlgmr.msra.gmra.mxu3 %vm85_vm0, %v141_v43 }
 0x11d   :  { %2721 = vmatmul.msk.bf16.vlgmr.msrb.gmra.mxu0 %vm85_vm0, %v141_v43  ;;  %2722 = vmatmul.msk.bf16.vlgmr.msrb.gmra.mxu1 %vm85_vm0, %v141_v43  ;;  %v138_v49 = vpop.f32.mrf.mxu1  ;;  %v1178_v43 = vpop.permute.xlu0 %1177 }
 0x11e   :  { %v4377_v53 = vpack.c.b16 %v250_v44, %v250_v44  ;;  %503 = vmatpush.bf16.msra.mxu2 %v483_v45  ;;  %516 = vmatpush.bf16.msra.mxu3 %v484_v48 }
 0x11f   :  { %529 = vmatpush.bf16.msrb.mxu0 %v485_v50  ;;  %542 = vmatpush.bf16.msrb.mxu1 %v486_v51  ;;  %v1188_v50 = vpop.permute.xlu2 %1187 }
 0x120   :  { %v4384_v55 = vshll.u32 %v4377_v53, 16  ;;  %v4397_v58 = vshrl.u32 %v4377_v53, 16  ;;  %v399_v3 = vrot.slane %v4377_v53, 1  ;;  %v749_v48 = vrot.slane %v4377_v53, 2 }
 0x121   :  { %v1013_v56 = vrot.slane %v4377_v53, 3 }
 0x122   :  { %504 = vmatpush.bf16.msra.mxu2 %v479_v26  ;;  %517 = vmatpush.bf16.msra.mxu3 %v480_v40  ;;  %v257_v57 = vrot.slane %v4384_v55, 1  ;;  %v403_v5 = vsel %vm400_vm5, %v399_v3, 0  ;;  %v582_v16 = vrot.slane %v4397_v58, 1  ;;  %v583_v17 = vrot.slane %v4384_v55, 2  ;;  %v1180_v26 = vpop.permute.xlu1 %1179 }
 0x123   :  { %530 = vmatpush.bf16.msrb.mxu0 %v481_v42  ;;  %543 = vmatpush.bf16.msrb.mxu1 %v482_v54  ;;  %v872_v44 = vrot.slane %v4397_v58, 2  ;;  %v873_v45 = vrot.slane %v4384_v55, 3  ;;  %v752_v51 = vsel %vm750_vm10, %v749_v48, 0  ;;  %v1192_v54 = vsel %vm85_vm0, %v1186_v39, %v1188_v50 }
 0x124   :  { %v258_v27 = vor.u32 %v257_v57, %v4397_v58  ;;  %v584_v19 = vor.u32 %v583_v17, %v582_v16  ;;  %v1189_v40 = vsel %vm85_vm0, %v1178_v43, %v1180_v26  ;;  %v1016_v57 = vsel %vm1014_vm12, %v1013_v56, 0  ;;  %v3664_v56 = vld [vmem:[%s5015_s9 + $0x120] sm:$0xff] }
 0x125   :  { %v874_v49 = vor.u32 %v873_v45, %v872_v44  ;;  %v1182_v55 = vpop.permute.xlu0 %1181 }
 0x126   :  { %v263_v60 = vsel %vm262_vm3, %v258_v27, 0  ;;  %v589_v24 = vsel %vm588_vm8, %v584_v19, 0  ;;  %v1190_v42 = vsel %vm85_vm0, %v1180_v26, %v1182_v55  ;;  %v3666_v26 = vld [vmem:[%s5015_s9 + $0x130] sm:$0xff]  ;;  %vm1326_vm3 = vcmask 1046528  }
 0x12c   :  { %2755 = vmatmul.msk.bf16.vlgmr.msrb.gmra.mxu2 %vm85_vm0, %v263_v60  ;;  %2756 = vmatmul.msk.bf16.vlgmr.msrb.gmra.mxu3 %vm85_vm0, %v263_v60 }
 0x12d   :  { %2757 = vmatmul.msk.bf16.vlgmr.msra.gmra.mxu0 %vm85_vm0, %v263_v60  ;;  %2758 = vmatmul.msk.bf16.vlgmr.msra.gmra.mxu1 %vm85_vm0, %v263_v60 }
 0x12e   :  { %670 = vmatpush.bf16.msrb.mxu2 %v650_v61  ;;  %683 = vmatpush.bf16.msrb.mxu3 %v651_v62 }
 0x12f   :  { %696 = vmatpush.bf16.msra.mxu0 %v652_v34  ;;  %709 = vmatpush.bf16.msra.mxu1 %v645_v22  ;;  %v940_v22 = vsel %vm565_vm6, %v4379_v36, %v4399_v33  ;;  %v879_v36 = vsel %vm878_vm11, %v874_v49, 0  ;;  %v1137_v33 = vrot.slane %v4397_v58, 3 }
 0x131   :  { %v1142_v27 = vsel %vm1141_vm14, %v1137_v33, 0  ;;  %v3662_v33 = vld [vmem:[%s5015_s9 + $0x110] sm:$0xff] }
 0x132   :  { %671 = vmatpush.bf16.msrb.mxu2 %v647_v46  ;;  %684 = vmatpush.bf16.msrb.mxu3 %v648_v0 }
 0x133   :  { %697 = vmatpush.bf16.msra.mxu0 %v649_v41  ;;  %710 = vmatpush.bf16.msra.mxu1 %v4346_v29  ;;  %v1065_v29 = vsel %vm646_vm4, %v1058_v10, %v1060_v4 }
 0x13c   :  { %2799 = vmatmul.msk.bf16.vlgmr.msra.gmra.mxu2 %vm85_vm0, %v403_v5  ;;  %2800 = vmatmul.msk.bf16.vlgmr.msra.gmra.mxu3 %vm85_vm0, %v403_v5 }
 0x13d   :  { %2801 = vmatmul.msk.bf16.vlgmr.msrb.gmra.mxu0 %vm85_vm0, %v403_v5  ;;  %2802 = vmatmul.msk.bf16.vlgmr.msrb.gmra.mxu1 %vm85_vm0, %v403_v5 }
 0x13e   :  { %830 = vmatpush.bf16.msra.mxu2 %v813_v8  ;;  %843 = vmatpush.bf16.msra.mxu3 %v814_v9 }
 0x13f   :  { %856 = vmatpush.bf16.msrb.mxu0 %v815_v6  ;;  %957 = vmatpush.bf16.msrb.mxu1 %v939_v7 }
 0x142   :  { %831 = vmatpush.bf16.msra.mxu2 %v810_v11  ;;  %844 = vmatpush.bf16.msra.mxu3 %v811_v12 }
 0x143   :  { %857 = vmatpush.bf16.msrb.mxu0 %v812_v14  ;;  %958 = vmatpush.bf16.msrb.mxu1 %v936_v15 }
 0x14c   :  { %2835 = vmatmul.msk.bf16.vlgmr.msrb.gmra.mxu2 %vm85_vm0, %v589_v24  ;;  %2836 = vmatmul.msk.bf16.vlgmr.msrb.gmra.mxu3 %vm85_vm0, %v589_v24 }
 0x14d   :  { %2837 = vmatmul.msk.bf16.vlgmr.msra.gmra.mxu0 %vm85_vm0, %v589_v24  ;;  %2838 = vmatmul.msk.bf16.vlgmr.msra.gmra.mxu1 %vm85_vm0, %v589_v24 }
 0x14e   :  { %970 = vmatpush.bf16.msrb.mxu2 %v940_v22  ;;  %983 = vmatpush.bf16.msrb.mxu3 %v941_v23 }
 0x14f   :  { %1081 = vmatpush.bf16.msra.mxu0 %v1065_v29  ;;  %1094 = vmatpush.bf16.msra.mxu1 %v1066_v25 }
 0x152   :  { %971 = vmatpush.bf16.msrb.mxu2 %v937_v31  ;;  %984 = vmatpush.bf16.msrb.mxu3 %v938_v32 }
 0x153   :  { %1082 = vmatpush.bf16.msra.mxu0 %v1063_v35  ;;  %1095 = vmatpush.bf16.msra.mxu1 %v1064_v37 }
 0x15c   :  { %2871 = vmatmul.msk.bf16.vlgmr.msra.gmra.mxu2 %vm85_vm0, %v752_v51  ;;  %2872 = vmatmul.msk.bf16.vlgmr.msra.gmra.mxu3 %vm85_vm0, %v752_v51 }
 0x15d   :  { %2873 = vmatmul.msk.bf16.vlgmr.msrb.gmra.mxu0 %vm85_vm0, %v752_v51  ;;  %2906 = vmatmul.msk.bf16.vlgmr.msrb.gmra.mxu1 %vm85_vm0, %v879_v36 }
 0x15e   :  { %1107 = vmatpush.bf16.msra.mxu2 %v1062_v13  ;;  %1208 = vmatpush.bf16.msra.mxu3 %v1191_v28 }
 0x15f   :  { %1221 = vmatpush.bf16.msrb.mxu0 %v1192_v54  ;;  %1234 = vmatpush.bf16.msrb.mxu1 %v1188_v50  ;;  %v3667_v54 = vld [vmem:[%s5015_s9 + $0x138] sm:$0xff] }
 0x162   :  { %1108 = vmatpush.bf16.msra.mxu2 %v1056_v30  ;;  %1209 = vmatpush.bf16.msra.mxu3 %v1189_v40 }
 0x163   :  { %1222 = vmatpush.bf16.msrb.mxu0 %v1190_v42  ;;  %1235 = vmatpush.bf16.msrb.mxu1 %v1182_v55  ;;  %v3665_v42 = vld [vmem:[%s5015_s9 + $0x128] sm:$0xff] }
 0x16c   :  { %2907 = vmatmul.msk.bf16.vlgmr.msrb.gmra.mxu2 %vm85_vm0, %v879_v36  ;;  %2908 = vmatmul.msk.bf16.vlgmr.msrb.gmra.mxu3 %vm85_vm0, %v879_v36 }
 0x16d   :  { %2933 = vmatmul.msk.bf16.vlgmr.msra.gmra.mxu0 %vm85_vm0, %v1016_v57  ;;  %2934 = vmatmul.msk.bf16.vlgmr.msra.gmra.mxu1 %vm85_vm0, %v1016_v57 }
 0x16e   :  { %1660 = vmatpush.bf16.msrb.mxu2 %v3667_v54 }
 0x172   :  { %1661 = vmatpush.bf16.msrb.mxu2 %v3666_v26  ;;  %v3686_v26 = vld [vmem:[%s5015_s9 + $0x1d0] sm:$0xff] }
 0x176   :  { %1662 = vmatpush.bf16.msrb.mxu2 %v3665_v42  ;;  %v3651_v42 = vld [vmem:[%s5015_s9 + $0xb8] sm:$0xff] }
 0x17a   :  { %1663 = vmatpush.bf16.msrb.mxu2 %v3664_v56 }
 0x17c   :  { %2935 = vmatmul.msk.bf16.vlgmr.msra.gmra.mxu2 %vm85_vm0, %v1016_v57  ;;  %2960 = vmatmul.msk.bf16.vlgmr.msra.gmra.mxu3 %vm85_vm0, %v1142_v27  ;;  %v3663_v57 = vld [vmem:[%s5015_s9 + $0x118] sm:$0xff] }
 0x17d   :  { %2961 = vmatmul.msk.bf16.vlgmr.msrb.gmra.mxu0 %vm85_vm0, %v1142_v27  ;;  %2962 = vmatmul.msk.bf16.vlgmr.msrb.gmra.mxu1 %vm85_vm0, %v1142_v27  ;;  %v3661_v27 = vld [vmem:[%s5015_s9 + $0x108] sm:$0xff] }
 0x17e   :  { %1664 = vmatpush.bf16.msrb.mxu2 %v3663_v57 }
 0x182   :  { %1665 = vmatpush.bf16.msrb.mxu2 %v3662_v33  ;;  %v4681_v33 = vld [vmem:[%s5018_s8] sm:$0xf] }
 0x186   :  { %1666 = vmatpush.bf16.msrb.mxu2 %v3661_v27 }
 0x19a   :  { %v4491_v53 = vpop.f32.mrf.mxu0  ;;  %v4493_v59 = vpop.f32.mrf.mxu1 }
 0x19f   :  { %v4495_v60 = vpop.f32.mrf.mxu2  ;;  %v4497_v34 = vpop.f32.mrf.mxu3 }
 0x1a0   :  { %245 = vst [vmem:[#allocation2] sm:$0xff] %v4495_v60 }
 0x1a2   :  { %v230_v58 = vpop.f32.mrf.mxu0  ;;  %v243_v47 = vpop.f32.mrf.mxu1 }
 0x1a3   :  { %v3660_v58 = vld [vmem:[%s5015_s9 + $0x100] sm:$0xff]  ;;  %v3635_v47 = vld [vmem:[%s5015_s9 + $0x38] sm:$0xff] }
 0x1a4   :  { %1667 = vmatpush.bf16.msrb.mxu2 %v3660_v58 }
 0x1a7   :  { %v204_v61 = vpop.f32.mrf.mxu2  ;;  %v217_v62 = vpop.f32.mrf.mxu3 }
 0x1a8   :  { %1908 = vmatpush.bf16.msra.mxu2 %v3635_v47 }
 0x1aa   :  { %v350_v63 = vpop.f32.mrf.mxu0  ;;  %v363_v0 = vpop.f32.mrf.mxu1 }
 0x1ab   :  { %379 = vrot.lane.b32.xlu0 %v350_v63, %s3769_s30 }
 0x1af   :  { %v324_v1 = vpop.f32.mrf.mxu2  ;;  %v337_v41 = vpop.f32.mrf.mxu3 }
 0x1b0   :  { %377 = vrot.lane.b32.xlu2 %v337_v41, %s3769_s30  ;;  %375 = vrot.lane.b32.xlu1 %v324_v1, %s3769_s30  ;;  %v3633_v1 = vld [vmem:[%s5015_s9 + $0x28] sm:$0xff] }
 0x1b2   :  { %v352_v46 = vpop.f32.mrf.mxu0  ;;  %v365_v52 = vpop.f32.mrf.mxu1 }
 0x1b7   :  { %v326_v2 = vpop.f32.mrf.mxu2  ;;  %v339_v3 = vpop.f32.mrf.mxu3 }
 0x1b8   :  { %381 = vrot.lane.b32.xlu1 %v363_v0, %s3769_s30  ;;  %v3634_v0 = vld [vmem:[%s5015_s9 + $0x30] sm:$0xff]  ;;  %v3683_v2 = vld [vmem:[%s5015_s9 + $0x1b8] sm:$0xff] }
 0x1b9   :  { %1909 = vmatpush.bf16.msra.mxu2 %v3634_v0  ;;  %1686 = vmatpush.bf16.msra.mxu0 %v3683_v2  ;;  %v3650_v0 = vld [vmem:[%s5015_s9 + $0xb0] sm:$0xff]  ;;  %v3684_v2 = vld [vmem:[%s5015_s9 + $0x1c0] sm:$0xff] }
 0x1ba   :  { %v532_v4 = vpop.f32.mrf.mxu0  ;;  %v545_v5 = vpop.f32.mrf.mxu1 }
 0x1bd   :  { %1910 = vmatpush.bf16.msra.mxu2 %v3633_v1  ;;  %v3685_v1 = vld [vmem:[%s5015_s9 + $0x1c8] sm:$0xff] }
 0x1bf   :  { %v506_v6 = vpop.f32.mrf.mxu2  ;;  %v519_v7 = vpop.f32.mrf.mxu3 }
 0x1c0   :  { %559 = vrot.lane.b32.xlu0 %v519_v7, %s3771_s21  ;;  %561 = vrot.lane.b32.xlu1 %v532_v4, %s3771_s21  ;;  %v3631_v4 = vld [vmem:[%s5015_s9 + $0x18] sm:$0xff] }
 0x1c1   :  { %557 = vrot.lane.b32.xlu2 %v506_v6, %s3771_s21  ;;  %v3675_v7 = vld [vmem:[%s5015_s9 + $0x178] sm:$0xff] }
 0x1c2   :  { %v534_v8 = vpop.f32.mrf.mxu0  ;;  %v547_v9 = vpop.f32.mrf.mxu1  ;;  %1673 = vmatpush.bf16.msrb.mxu3 %v3675_v7 }
 0x1c3   :  { %v3630_v8 = vld [vmem:[%s5015_s9 + $0x10] sm:$0xff] }
 0x1c4   :  { %v3674_v9 = vld [vmem:[%s5015_s9 + $0x170] sm:$0xff] }
 0x1c6   :  { %1674 = vmatpush.bf16.msrb.mxu3 %v3674_v9  ;;  %v3642_v9 = vld [vmem:[%s5015_s9 + $0x70] sm:$0xff] }
 0x1c7   :  { %v508_v10 = vpop.f32.mrf.mxu2  ;;  %v521_v11 = vpop.f32.mrf.mxu3 }
 0x1c8   :  { %v3681_v10 = vld [vmem:[%s5015_s9 + $0x1a8] sm:$0xff]  ;;  %v3691_v11 = vld [vmem:[%s5015_s9 + $0x1f8] sm:$0xff] }
 0x1c9   :  { %563 = vrot.lane.b32.xlu2 %v545_v5, %s3771_s21  ;;  %v3682_v5 = vld [vmem:[%s5015_s9 + $0x1b0] sm:$0xff]  ;;  %1699 = vmatpush.bf16.msra.mxu1 %v3691_v11 }
 0x1ca   :  { %v699_v12 = vpop.f32.mrf.mxu0  ;;  %v712_v13 = vpop.f32.mrf.mxu1  ;;  %1687 = vmatpush.bf16.msra.mxu0 %v3682_v5  ;;  %v3659_v5 = vld [vmem:[%s5015_s9 + $0xf8] sm:$0xff] }
 0x1ce   :  { %1688 = vmatpush.bf16.msra.mxu0 %v3681_v10 }
 0x1cf   :  { %v673_v14 = vpop.f32.mrf.mxu2  ;;  %v686_v15 = vpop.f32.mrf.mxu3 }
 0x1d0   :  { %726 = vrot.lane.b32.xlu1 %v686_v15, %s3770_s22  ;;  %724 = vrot.lane.b32.xlu0 %v673_v14, %s3770_s22  ;;  %v3690_v14 = vld [vmem:[%s5015_s9 + $0x1f0] sm:$0xff] }
 0x1d1   :  { %728 = vrot.lane.b32.xlu2 %v699_v12, %s3770_s22  ;;  %v3629_v12 = vld [vmem:[%s5015_s9 + $0x8] sm:$0xff]  ;;  %1700 = vmatpush.bf16.msra.mxu1 %v3690_v14  ;;  %v3658_v14 = vld [vmem:[%s5015_s9 + $0xf0] sm:$0xff] }
 0x1d2   :  { %v701_v16 = vpop.f32.mrf.mxu0  ;;  %v714_v17 = vpop.f32.mrf.mxu1 }
 0x1d3   :  { %v3673_v17 = vld [vmem:[%s5015_s9 + $0x168] sm:$0xff] }
 0x1d4   :  { %1675 = vmatpush.bf16.msrb.mxu3 %v3673_v17 }
 0x1d7   :  { %v675_v18 = vpop.f32.mrf.mxu2  ;;  %v688_v19 = vpop.f32.mrf.mxu3 }
 0x1d8   :  { %730 = vrot.lane.b32.xlu0 %v712_v13, %s3770_s22  ;;  %v3680_v13 = vld [vmem:[%s5015_s9 + $0x1a0] sm:$0xff] }
 0x1d9   :  { %v3628_v18 = vld [vmem:[%s5015_s9] sm:$0xff]  ;;  %1689 = vmatpush.bf16.msra.mxu0 %v3680_v13 }
 0x1da   :  { %v4512_v20 = vpop.f32.mrf.mxu0  ;;  %v960_v21 = vpop.f32.mrf.mxu1  ;;  %v3648_v13 = vld [vmem:[%s5015_s9 + $0xa0] sm:$0xff] }
 0x1db   :  { %996 = vrot.lane.b32.xlu1 %v960_v21, %s3769_s30  ;;  %v3679_v21 = vld [vmem:[%s5015_s9 + $0x198] sm:$0xff] }
 0x1dd   :  { %1690 = vmatpush.bf16.msra.mxu0 %v3679_v21  ;;  %v3647_v21 = vld [vmem:[%s5015_s9 + $0x98] sm:$0xff] }
 0x1df   :  { %v4515_v22 = vpop.f32.mrf.mxu2  ;;  %v4517_v23 = vpop.f32.mrf.mxu3 }
 0x1e2   :  { %v861_v24 = vpop.f32.mrf.mxu0  ;;  %v962_v25 = vpop.f32.mrf.mxu1 }
 0x1e3   :  { %v3689_v24 = vld [vmem:[%s5015_s9 + $0x1e8] sm:$0xff] }
 0x1e4   :  { %1701 = vmatpush.bf16.msra.mxu1 %v3689_v24  ;;  %v3657_v24 = vld [vmem:[%s5015_s9 + $0xe8] sm:$0xff] }
 0x1e7   :  { %v835_v29 = vpop.f32.mrf.mxu2  ;;  %v848_v30 = vpop.f32.mrf.mxu3 }
 0x1e8   :  { %v3672_v30 = vld [vmem:[%s5015_s9 + $0x160] sm:$0xff] }
 0x1e9   :  { %1676 = vmatpush.bf16.msrb.mxu3 %v3672_v30  ;;  %v3698_v30 = vld [vmem:[%s5015_s9 + $0x230] sm:$0xff] }
 0x1ea   :  { %v1084_v31 = vpop.f32.mrf.mxu0  ;;  %v1097_v32 = vpop.f32.mrf.mxu1 }
 0x1eb   :  { %1120 = vrot.lane.b32.xlu1 %v1084_v31, %s3771_s21  ;;  %v3678_v31 = vld [vmem:[%s5015_s9 + $0x190] sm:$0xff] }
 0x1ec   :  { %1691 = vmatpush.bf16.msra.mxu0 %v3678_v31  ;;  %v3640_v31 = vld [vmem:[%s5015_s9 + $0x60] sm:$0xff] }
 0x1ef   :  { %v973_v35 = vpop.f32.mrf.mxu2  ;;  %v986_v37 = vpop.f32.mrf.mxu3 }
 0x1f0   :  { %1000 = vrot.lane.b32.xlu0 %v986_v37, %s3769_s30  ;;  %998 = vrot.lane.b32.xlu2 %v973_v35, %s3769_s30 }
 0x1f2   :  { %v1086_v39 = vpop.f32.mrf.mxu0  ;;  %v1099_v43 = vpop.f32.mrf.mxu1 }
 0x1f7   :  { %v975_v44 = vpop.f32.mrf.mxu2  ;;  %v988_v45 = vpop.f32.mrf.mxu3 }
 0x1f8   :  { %1122 = vrot.lane.b32.xlu2 %v1097_v32, %s3771_s21  ;;  %v3688_v32 = vld [vmem:[%s5015_s9 + $0x1e0] sm:$0xff] }
 0x1f9   :  { %1702 = vmatpush.bf16.msra.mxu1 %v3688_v32 }
 0x1fa   :  { %v1224_v48 = vpop.f32.mrf.mxu0  ;;  %v1237_v49 = vpop.f32.mrf.mxu1 }
 0x1ff   :  { %v1110_v50 = vpop.f32.mrf.mxu2  ;;  %v1211_v51 = vpop.f32.mrf.mxu3 }
 0x200   :  { %1247 = vrot.lane.b32.xlu1 %v1211_v51, %s3770_s22  ;;  %1249 = vrot.lane.b32.xlu2 %v1224_v48, %s3770_s22  ;;  %v3671_v48 = vld [vmem:[%s5015_s9 + $0x158] sm:$0xff]  ;;  %v4650_v51 = vld [vmem:[%s5016_s6] sm:$0xf] }
 0x201   :  { %1124 = vrot.lane.b32.xlu0 %v1110_v50, %s3771_s21  ;;  %1677 = vmatpush.bf16.msrb.mxu3 %v3671_v48  ;;  %v1270_v54 = vperm.slane %v4650_v51, 0  ;;  %v3655_v48 = vld [vmem:[%s5015_s9 + $0xd8] sm:$0xff] }
 0x202   :  { %v1226_v28 = vpop.f32.mrf.mxu0  ;;  %v1239_v36 = vpop.f32.mrf.mxu1 }
 0x203   :  { %v3670_v28 = vld [vmem:[%s5015_s9 + $0x150] sm:$0xff]  ;;  %v3687_v36 = vld [vmem:[%s5015_s9 + $0x1d8] sm:$0xff] }
 0x204   :  { %1703 = vmatpush.bf16.msra.mxu1 %v3687_v36 }
 0x205   :  { %1678 = vmatpush.bf16.msrb.mxu3 %v3670_v28  ;;  %v3638_v28 = vld [vmem:[%s5015_s9 + $0x50] sm:$0xff] }
 0x207   :  { %v1112_v55 = vpop.f32.mrf.mxu2  ;;  %v1213_v40 = vpop.f32.mrf.mxu3 }
 0x208   :  { %v4668_v55 = vld [vmem:[%s5017_s7] sm:$0xf]  ;;  %v3669_v40 = vld [vmem:[%s5015_s9 + $0x148] sm:$0xff]  ;;  %1704 = vmatpush.bf16.msra.mxu1 %v3686_v26  ;;  %v3654_v26 = vld [vmem:[%s5015_s9 + $0xd0] sm:$0xff] }
 0x209   :  { %1251 = vrot.lane.b32.xlu0 %v1237_v49, %s3770_s22  ;;  %v3677_v49 = vld [vmem:[%s5015_s9 + $0x188] sm:$0xff]  ;;  %v1288_v47 = vperm.slane %v4668_v55, 0  ;;  %1679 = vmatpush.bf16.msrb.mxu3 %v3669_v40 }
 0x20a   :  { %v4555_v63 = vpop.permute.xlu2 %377  ;;  %1692 = vmatpush.bf16.msra.mxu0 %v3677_v49  ;;  %v3637_v40 = vld [vmem:[%s5015_s9 + $0x48] sm:$0xff] }
 0x20c   :  { %1705 = vmatpush.bf16.msra.mxu1 %v3685_v1  ;;  %v3694_v1 = vld [vmem:[%s5015_s9 + $0x210] sm:$0xff] }
 0x210   :  { %1706 = vmatpush.bf16.msra.mxu1 %v3684_v2 }
 0x214   :  { %1947 = vmatpush.bf16.msrb.mxu1 %v3659_v5 }
 0x218   :  { %1948 = vmatpush.bf16.msrb.mxu1 %v3658_v14 }
 0x21b   :  { %v558_v41 = vpop.permute.xlu2 %557 }
 0x21c   :  { %1949 = vmatpush.bf16.msrb.mxu1 %v3657_v24 }
 0x21d   :  { %v4579_v6 = vpop.permute.xlu0 %379 }
 0x21e   :  { %v384_v49 = vsel %vm85_vm0, %v4555_v63, %v4579_v6 }
 0x222   :  { %v376_v61 = vpop.permute.xlu1 %375 }
 0x223   :  { %v390_v62 = vadd.f32 %v376_v61, %v4495_v60  ;;  %v3632_v60 = vld [vmem:[%s5015_s9 + $0x20] sm:$0xff]  ;;  %v383_v19 = vsel %vm85_vm0, %v376_v61, %v4555_v63  ;;  %v4676_v56 = vpop.permute.xlu2 %563 }
 0x224   :  { %1911 = vmatpush.bf16.msra.mxu2 %v3632_v60  ;;  %v391_v29 = vadd.f32 %v383_v19, %v4497_v34  ;;  %v3643_v60 = vld [vmem:[%s5015_s9 + $0x78] sm:$0xff]  ;;  %v3644_v63 = vld [vmem:[%s5015_s9 + $0x80] sm:$0xff] }
 0x225   :  { %395 = vst.msk [vmem:[#allocation2] sm:$0xff] %vm394_vm15, %v390_v62  ;;  %v3668_v62 = vld [vmem:[%s5015_s9 + $0x140] sm:$0xff] }
 0x226   :  { %1680 = vmatpush.bf16.msrb.mxu3 %v3668_v62  ;;  %v3636_v62 = vld [vmem:[%s5015_s9 + $0x40] sm:$0xff] }
 0x228   :  { %1912 = vmatpush.bf16.msra.mxu2 %v3631_v4  ;;  %v3649_v4 = vld [vmem:[%s5015_s9 + $0xa8] sm:$0xff] }
 0x22a   :  { %v4571_v3 = vpop.permute.xlu1 %381  ;;  %1921 = vmatpush.bf16.msra.mxu3 %v3643_v60 }
 0x22b   :  { %v4713_v10 = vpop.permute.xlu2 %728 }
 0x22c   :  { %v549_v46 = vld [vmem:[#allocation2] sm:$0xff]  ;;  %1913 = vmatpush.bf16.msra.mxu2 %v3630_v8 }
 0x22d   :  { %v573_v52 = vadd.f32 %v558_v41, %v549_v46  ;;  %v1302_v46 = vperm.slane %v4681_v33, 0 }
 0x22e   :  { %1922 = vmatpush.bf16.msra.mxu3 %v3642_v9 }
 0x22f   :  { %578 = vst.msk [vmem:[#allocation2] sm:$0xff] %vm577_vm1, %v573_v52 }
 0x230   :  { %1914 = vmatpush.bf16.msra.mxu2 %v3629_v12  ;;  %v3641_v12 = vld [vmem:[%s5015_s9 + $0x68] sm:$0xff] }
 0x232   :  { %v4605_v15 = vpop.permute.xlu0 %559  ;;  %v4607_v16 = vpop.permute.xlu1 %561  ;;  %1923 = vmatpush.bf16.msra.mxu3 %v3641_v12  ;;  %v3692_v12 = vld [vmem:[%s5015_s9 + $0x200] sm:$0xff] }
 0x233   :  { %v566_v25 = vsel %vm565_vm6, %v558_v41, %v4605_v15  ;;  %v567_v36 = vsel %vm565_vm6, %v4605_v15, %v4607_v16 }
 0x234   :  { %1915 = vmatpush.bf16.msra.mxu2 %v3628_v18  ;;  %v574_v35 = vadd.f32 %v566_v25, %v391_v29  ;;  %v3699_v18 = vld [vmem:[%s5015_s9 + $0x238] sm:$0xff] }
 0x236   :  { %v716_v39 = vld [vmem:[#allocation2] sm:$0xff]  ;;  %1924 = vmatpush.bf16.msra.mxu3 %v3640_v31 }
 0x242   :  { %v4635_v37 = vpop.permute.xlu1 %726  ;;  %v725_v43 = vpop.permute.xlu0 %724 }
 0x243   :  { %v733_v34 = vsel %vm646_vm4, %v725_v43, %v4635_v37  ;;  %v740_v44 = vadd.f32 %v725_v43, %v716_v39  ;;  %v3646_v39 = vld [vmem:[%s5015_s9 + $0x90] sm:$0xff]  ;;  %v3656_v43 = vld [vmem:[%s5015_s9 + $0xe0] sm:$0xff]  ;;  %v734_v15 = vsel %vm646_vm4, %v4635_v37, %v4713_v10 }
 0x244   :  { %v741_v45 = vadd.f32 %v733_v34, %v574_v35  ;;  %v3639_v34 = vld [vmem:[%s5015_s9 + $0x58] sm:$0xff]  ;;  %1950 = vmatpush.bf16.msrb.mxu1 %v3656_v43  ;;  %v1273_v43 = vperm.slane %v4650_v51, 3 }
 0x245   :  { %745 = vst.msk [vmem:[#allocation2] sm:$0xff] %vm744_vm2, %v740_v44  ;;  %v3697_v44 = vld [vmem:[%s5015_s9 + $0x228] sm:$0xff]  ;;  %1925 = vmatpush.bf16.msra.mxu3 %v3639_v34 }
 0x246   :  { %v866_v50 = vadd.f32 %v4515_v22, %v741_v45  ;;  %v3676_v22 = vld [vmem:[%s5015_s9 + $0x180] sm:$0xff]  ;;  %v3645_v45 = vld [vmem:[%s5015_s9 + $0x88] sm:$0xff] }
 0x247   :  { %1693 = vmatpush.bf16.msra.mxu0 %v3676_v22  ;;  %v392_v22 = vadd.f32 %v384_v49, %v4491_v53 }
 0x248   :  { %869 = vst [vmem:[#allocation2 + $0x8] sm:$0xff] %v866_v50  ;;  %1951 = vmatpush.bf16.msrb.mxu1 %v3655_v48  ;;  %v1289_v48 = vperm.slane %v4668_v55, 1 }
 0x249   :  { %1926 = vmatpush.bf16.msra.mxu3 %v3638_v28  ;;  %v1303_v28 = vperm.slane %v4681_v33, 1 }
 0x24a   :  { %v4743_v32 = vpop.permute.xlu2 %998 }
 0x24b   :  { %1934 = vmatpush.bf16.msrb.mxu0 %v3651_v42  ;;  %v575_v42 = vadd.f32 %v567_v36, %v392_v22 }
 0x24c   :  { %v1264_v57 = vld [vmem:[#allocation2] sm:$0xff]  ;;  %1952 = vmatpush.bf16.msrb.mxu1 %v3654_v26 }
 0x24d   :  { %v4683_v27 = vpop.permute.xlu1 %996  ;;  %v1278_v58 = vadd.f32 %v1270_v54, %v1264_v57  ;;  %v3696_v54 = vld [vmem:[%s5015_s9 + $0x220] sm:$0xff]  ;;  %v3695_v57 = vld [vmem:[%s5015_s9 + $0x218] sm:$0xff]  ;;  %1927 = vmatpush.bf16.msra.mxu3 %v3637_v40 }
 0x24e   :  { %v1007_v61 = vadd.f32 %v4683_v27, %v866_v50  ;;  %v731_v50 = vpop.permute.xlu0 %730 }
 0x24f   :  { %v1282_v41 = vmax.f32 %v1278_v58, 0.0  ;;  %1935 = vmatpush.bf16.msrb.mxu0 %v3650_v0  ;;  %v742_v58 = vadd.f32 %v734_v15, %v575_v42  ;;  %v1002_v0 = vsel %vm85_vm0, %v4683_v27, %v4743_v32  ;;  %v735_v60 = vsel %vm646_vm4, %v4713_v10, %v731_v50  ;;  %v3715_v15 = vld [vmem:[%s5015_s9 + $0x2b8] sm:$0xff] }
 0x250   :  { %1010 = vst.msk [vmem:[#allocation2 + $0x8] sm:$0xff] %vm394_vm15, %v1007_v61  ;;  %v385_v61 = vsel %vm85_vm0, %v4579_v6, %v4571_v3  ;;  %v3652_v6 = vld [vmem:[%s5015_s9 + $0xc0] sm:$0xff] }
 0x251   :  { %v1296_v52 = vmul.f32 %v1288_v47, %v1282_v41  ;;  %v3653_v47 = vld [vmem:[%s5015_s9 + $0xc8] sm:$0xff]  ;;  %v568_v41 = vsel %vm565_vm6, %v4607_v16, %v4676_v56  ;;  %v867_v3 = vadd.f32 %v4517_v23, %v742_v58  ;;  %1928 = vmatpush.bf16.msra.mxu3 %v3636_v62 }
 0x252   :  { %v1123_v53 = vpop.permute.xlu2 %1122  ;;  %1953 = vmatpush.bf16.msrb.mxu1 %v3653_v47  ;;  %v3693_v23 = vld [vmem:[%s5015_s9 + $0x208] sm:$0xff] }
 0x253   :  { %v1310_v7 = vadd.f32 %v1302_v46, %v1296_v52  ;;  %1936 = vmatpush.bf16.msrb.mxu0 %v3649_v4  ;;  %v393_v46 = vadd.f32 %v385_v61, %v4493_v59  ;;  %v1008_v52 = vadd.f32 %v1002_v0, %v867_v3  ;;  %v3723_v3 = vld [vmem:[%s5015_s9 + $0x2f8] sm:$0xff] }
 0x255   :  { %v1318_v8 = vrot.slane %v1310_v7, 1  ;;  %v576_v2 = vadd.f32 %v568_v41, %v393_v46  ;;  %v3706_v46 = vld [vmem:[%s5015_s9 + $0x270] sm:$0xff] }
 0x256   :  { %1954 = vmatpush.bf16.msrb.mxu1 %v3652_v6 }
 0x257   :  { %v1327_v11 = vsel %vm1326_vm3, %v1318_v8, -inf  ;;  %1937 = vmatpush.bf16.msrb.mxu0 %v3648_v13  ;;  %v1114_v29 = vld [vmem:[#allocation2 + $0x8] sm:$0xff]  ;;  %v743_v59 = vadd.f32 %v735_v60, %v576_v2  ;;  %v3722_v60 = vld [vmem:[%s5015_s9 + $0x2f0] sm:$0xff]  ;;  %v3711_v2 = vld [vmem:[%s5015_s9 + $0x298] sm:$0xff] }
 0x258   :  { %v1331_v17 = vmax.f32 %v1310_v7, %v1327_v11  ;;  %v1272_v7 = vperm.slane %v4650_v51, 2 }
 0x25a   :  { %v4728_v19 = vpack.c.bf16 %v1331_v17, %v1331_v17  ;;  %v1250_v16 = vpop.permute.xlu2 %1249  ;;  %v1290_v17 = vperm.slane %v4668_v55, 2 }
 0x25b   :  { %1938 = vmatpush.bf16.msrb.mxu0 %v3647_v21 }
 0x25c   :  { %1668 = vmatmul.bf16.vlgmr.msrb.gmra.mxu2 %v4728_v19 }
 0x25d   :  { %v1121_v25 = vpop.permute.xlu1 %1120  ;;  %2217 = vmatpush.bf16.msrb.mxu2 %v3699_v18  ;;  %v868_v18 = vadd.f32 %v4512_v20, %v743_v59  ;;  %v3719_v59 = vld [vmem:[%s5015_s9 + $0x2d8] sm:$0xff] }
 0x25e   :  { %v1131_v35 = vadd.f32 %v1121_v25, %v1114_v29  ;;  %v1126_v27 = vsel %vm565_vm6, %v1121_v25, %v1123_v53  ;;  %v1304_v25 = vperm.slane %v4681_v33, 2 }
 0x25f   :  { %1939 = vmatpush.bf16.msrb.mxu0 %v3646_v39  ;;  %v1132_v56 = vadd.f32 %v1126_v27, %v1008_v52  ;;  %v3712_v27 = vld [vmem:[%s5015_s9 + $0x2a0] sm:$0xff]  ;;  %v3705_v52 = vld [vmem:[%s5015_s9 + $0x268] sm:$0xff] }
 0x260   :  { %1134 = vst.msk [vmem:[#allocation2 + $0x8] sm:$0xff] %vm577_vm1, %v1131_v35 }
 0x261   :  { %2218 = vmatpush.bf16.msrb.mxu2 %v3698_v30  ;;  %v1271_v30 = vperm.slane %v4650_v51, 1 }
 0x262   :  { %v1001_v37 = vpop.permute.xlu0 %1000 }
 0x263   :  { %1940 = vmatpush.bf16.msrb.mxu0 %v3645_v45  ;;  %v1003_v13 = vsel %vm85_vm0, %v4743_v32, %v1001_v37 }
 0x264   :  { %v1009_v29 = vadd.f32 %v1003_v13, %v868_v18  ;;  %v3700_v13 = vld [vmem:[%s5015_s9 + $0x240] sm:$0xff] }
 0x265   :  { %2219 = vmatpush.bf16.msrb.mxu2 %v3697_v44 }
 0x267   :  { %1941 = vmatpush.bf16.msrb.mxu0 %v3644_v63  ;;  %v1241_v5 = vld [vmem:[#allocation2 + $0x8] sm:$0xff] }
 0x269   :  { %2220 = vmatpush.bf16.msrb.mxu2 %v3696_v54  ;;  %v1291_v54 = vperm.slane %v4668_v55, 3  ;;  %v3714_v55 = vld [vmem:[%s5015_s9 + $0x2b0] sm:$0xff] }
 0x26c   :  { %1916 = vmatmul.bf16.vlgmr.msra.gmra.mxu2 %v4728_v19 }
 0x26d   :  { %2221 = vmatpush.bf16.msrb.mxu2 %v3695_v57 }
 0x271   :  { %2222 = vmatpush.bf16.msrb.mxu2 %v3694_v1  ;;  %v3713_v1 = vld [vmem:[%s5015_s9 + $0x2a8] sm:$0xff] }
 0x272   :  { %v1248_v4 = vpop.permute.xlu1 %1247 }
 0x273   :  { %v1253_v8 = vsel %vm646_vm4, %v1248_v4, %v1250_v16  ;;  %v1258_v9 = vadd.f32 %v1248_v4, %v1241_v5  ;;  %v1125_v11 = vpop.permute.xlu0 %1124  ;;  %v3720_v4 = vld [vmem:[%s5015_s9 + $0x2e0] sm:$0xff]  ;;  %v3703_v5 = vld [vmem:[%s5015_s9 + $0x258] sm:$0xff] }
 0x274   :  { %v1259_v10 = vadd.f32 %v1253_v8, %v1132_v56  ;;  %v1127_v21 = vsel %vm565_vm6, %v1123_v53, %v1125_v11  ;;  %v3710_v56 = vld [vmem:[%s5015_s9 + $0x290] sm:$0xff] }
 0x275   :  { %1261 = vst.msk [vmem:[#allocation2 + $0x8] sm:$0xff] %vm744_vm2, %v1258_v9  ;;  %2223 = vmatpush.bf16.msrb.mxu2 %v3693_v23  ;;  %v1133_v35 = vadd.f32 %v1127_v21, %v1009_v29  ;;  %v3721_v23 = vld [vmem:[%s5015_s9 + $0x2e8] sm:$0xff]  ;;  %v3702_v8 = vld [vmem:[%s5015_s9 + $0x250] sm:$0xff]  ;;  %v3708_v9 = vld [vmem:[%s5015_s9 + $0x280] sm:$0xff] }
 0x276   :  { %v1280_v14 = vadd.f32 %v1272_v7, %v1259_v10  ;;  %v3709_v7 = vld [vmem:[%s5015_s9 + $0x288] sm:$0xff]  ;;  %v3718_v11 = vld [vmem:[%s5015_s9 + $0x2d0] sm:$0xff] }
 0x277   :  { %v3701_v10 = vld [vmem:[%s5015_s9 + $0x248] sm:$0xff] }
 0x278   :  { %v1284_v24 = vmax.f32 %v1280_v14, 0.0  ;;  %v3716_v14 = vld [vmem:[%s5015_s9 + $0x2c0] sm:$0xff] }
 0x279   :  { %2224 = vmatpush.bf16.msrb.mxu2 %v3692_v12  ;;  %v3717_v12 = vld [vmem:[%s5015_s9 + $0x2c8] sm:$0xff] }
 0x27a   :  { %v1298_v31 = vmul.f32 %v1290_v17, %v1284_v24 }
 0x27b   :  { %v1252_v39 = vpop.permute.xlu0 %1251 }
 0x27c   :  { %v1254_v32 = vsel %vm646_vm4, %v1250_v16, %v1252_v39  ;;  %2225 = vmatmul.bf16.vlgmr.msrb.gmra.mxu2 %v4728_v19  ;;  %v1265_v34 = vld [vmem:[#allocation2 + $0x8] sm:$0xff]  ;;  %v1312_v20 = vadd.f32 %v1304_v25, %v1298_v31  ;;  %v1305_v19 = vperm.slane %v4681_v33, 3  ;;  %v3707_v33 = vld [vmem:[%s5015_s9 + $0x278] sm:$0xff]  ;;  %v3704_v16 = vld [vmem:[%s5015_s9 + $0x260] sm:$0xff]  ;;  %vm2272_vm4 = vcmask 1045504  }
 0x27d   :  { %v1260_v44 = vadd.f32 %v1254_v32, %v1133_v35  ;;  %v1279_v45 = vadd.f32 %v1271_v30, %v1265_v34 }
 0x27e   :  { %v1320_v49 = vrot.slane %v1312_v20, 1 }
 0x27f   :  { %v1283_v50 = vmax.f32 %v1279_v45, 0.0  ;;  %v1281_v36 = vadd.f32 %v1273_v43, %v1260_v44 }
 0x280   :  { %v1329_v22 = vsel %vm1326_vm3, %v1320_v49, -inf }
 0x281   :  { %v1297_v51 = vmul.f32 %v1289_v48, %v1283_v50  ;;  %v1333_v63 = vmax.f32 %v1312_v20, %v1329_v22  ;;  %v1285_v26 = vmax.f32 %v1281_v36, 0.0  ;;  %v3727_v22 = vld [vmem:[%s5022_s13 + $0x18] sm:$0xff] }
 0x282   :  { %2322 = vmatpush.bf16.msra.mxu2 %v3727_v22 }
 0x283   :  { %v1311_v40 = vadd.f32 %v1303_v28, %v1297_v51  ;;  %v1337_v42 = vpack.c.bf16 %v1333_v63, %v1333_v63  ;;  %v1299_v53 = vmul.f32 %v1291_v54, %v1285_v26  ;;  %v3725_v51 = vld [vmem:[%s5022_s13 + $0x8] sm:$0xff] }
 0x284   :  { %v3729_v63 = vld [vmem:[%s5022_s13 + $0x28] sm:$0xff] }
 0x285   :  { %v1319_v57 = vrot.slane %v1311_v40, 1  ;;  %1694 = vmatmul.bf16.vlgmr.msra.gmra.mxu0 %v1337_v42  ;;  %v1313_v58 = vadd.f32 %v1305_v19, %v1299_v53 }
 0x286   :  { %2243 = vmatpush.bf16.msra.mxu0 %v3715_v15  ;;  %v3726_v15 = vld [vmem:[%s5022_s13 + $0x10] sm:$0xff] }
 0x287   :  { %v1328_v47 = vsel %vm1326_vm3, %v1319_v57, -inf  ;;  %v1321_v37 = vrot.slane %v1313_v58, 1  ;;  %2323 = vmatpush.bf16.msra.mxu2 %v3726_v15 }
 0x288   :  { %v1332_v61 = vmax.f32 %v1311_v40, %v1328_v47  ;;  %v3724_v40 = vld [vmem:[%s5022_s13] sm:$0xff] }
 0x289   :  { %v1330_v62 = vsel %vm1326_vm3, %v1321_v37, -inf }
 0x28a   :  { %v1336_v0 = vpack.c.bf16 %v1332_v61, %v1332_v61  ;;  %2244 = vmatpush.bf16.msra.mxu0 %v3714_v55  ;;  %v1334_v41 = vmax.f32 %v1313_v58, %v1330_v62 }
 0x28c   :  { %1681 = vmatmul.bf16.vlgmr.msrb.gmra.mxu3 %v1336_v0  ;;  %v1338_v6 = vpack.c.bf16 %v1334_v41, %v1334_v41 }
 0x28d   :  { %2230 = vmatpush.bf16.msrb.mxu3 %v3707_v33 }
 0x28e   :  { %2245 = vmatpush.bf16.msra.mxu0 %v3713_v1  ;;  %1707 = vmatmul.bf16.vlgmr.msra.gmra.mxu1 %v1338_v6 }
 0x28f   :  { %2256 = vmatpush.bf16.msra.mxu1 %v3723_v3  ;;  %v3743_v3 = vld [vmem:[%s5019_s10] ss:$0 sm:$0xff] }
 0x291   :  { %2231 = vmatpush.bf16.msrb.mxu3 %v3706_v46 }
 0x292   :  { %2246 = vmatpush.bf16.msra.mxu0 %v3712_v27 }
 0x293   :  { %2257 = vmatpush.bf16.msra.mxu1 %v3722_v60 }
 0x295   :  { %2232 = vmatpush.bf16.msrb.mxu3 %v3705_v52  ;;  %1942 = vmatmul.bf16.vlgmr.msrb.gmra.mxu0 %v1337_v42  ;;  %v3744_v52 = vld [vmem:[%s5020_s11] ss:$0 sm:$0xff] }
 0x296   :  { %2247 = vmatpush.bf16.msra.mxu0 %v3711_v2 }
 0x297   :  { %2258 = vmatpush.bf16.msra.mxu1 %v3721_v23  ;;  %v3745_v23 = vld [vmem:[%s5021_s12] ss:$0 sm:$0xff] }
 0x299   :  { %2233 = vmatpush.bf16.msrb.mxu3 %v3704_v16 }
 0x29a   :  { %2248 = vmatpush.bf16.msra.mxu0 %v3710_v56 }
 0x29b   :  { %2259 = vmatpush.bf16.msra.mxu1 %v3720_v4 }
 0x29c   :  { %1929 = vmatmul.bf16.vlgmr.msra.gmra.mxu3 %v1336_v0 }
 0x29d   :  { %2234 = vmatpush.bf16.msrb.mxu3 %v3703_v5  ;;  %v3731_v5 = vld [vmem:[%s5027_s17 + $0x8] sm:$0xff] }
 0x29e   :  { %2249 = vmatpush.bf16.msra.mxu0 %v3709_v7  ;;  %1955 = vmatmul.bf16.vlgmr.msrb.gmra.mxu1 %v1338_v6  ;;  %v3730_v7 = vld [vmem:[%s5027_s17] sm:$0xff] }
 0x29f   :  { %2260 = vmatpush.bf16.msra.mxu1 %v3719_v59 }
 0x2a1   :  { %2235 = vmatpush.bf16.msrb.mxu3 %v3702_v8 }
 0x2a2   :  { %2250 = vmatpush.bf16.msra.mxu0 %v3708_v9 }
 0x2a3   :  { %2261 = vmatpush.bf16.msra.mxu1 %v3718_v11 }
 0x2a5   :  { %2236 = vmatpush.bf16.msrb.mxu3 %v3701_v10  ;;  %2251 = vmatmul.bf16.vlgmr.msra.gmra.mxu0 %v1337_v42  ;;  %v3728_v42 = vld [vmem:[%s5022_s13 + $0x20] sm:$0xff] }
 0x2a6   :  { %2381 = vmatpush.bf16.msrb.mxu0 %v3729_v63 }
 0x2a7   :  { %2262 = vmatpush.bf16.msra.mxu1 %v3717_v12 }
 0x2a9   :  { %2237 = vmatpush.bf16.msrb.mxu3 %v3700_v13 }
 0x2aa   :  { %2382 = vmatpush.bf16.msrb.mxu0 %v3728_v42 }
 0x2ab   :  { %2263 = vmatpush.bf16.msra.mxu1 %v3716_v14 }
 0x2ac   :  { %2238 = vmatmul.bf16.vlgmr.msrb.gmra.mxu3 %v1336_v0 }
 0x2ad   :  { %2351 = vmatpush.bf16.msra.mxu3 %v3725_v51 }
 0x2ae   :  { %2264 = vmatmul.bf16.vlgmr.msra.gmra.mxu1 %v1338_v6 }
 0x2af   :  { %2437 = vmatpush.bf16.msrb.mxu1 %v3731_v5 }
 0x2b1   :  { %2352 = vmatpush.bf16.msra.mxu3 %v3724_v40 }
 0x2b3   :  { %2438 = vmatpush.bf16.msrb.mxu1 %v3730_v7 }
 0x2df   :  { %v1669_v17 = vpop.f32.mrf.mxu2 }
 0x2e7   :  { %v1671_v18 = vpop.f32.mrf.mxu2 }
 0x2ef   :  { %v1917_v21 = vpop.f32.mrf.mxu2 }
 0x2f7   :  { %v1919_v24 = vpop.f32.mrf.mxu2 }
 0x2f8   :  { %v3747_v24 = vld [vmem:[%s5024_s15] ss:$0 sm:$0xff] }
 0x2ff   :  { %v2226_v25 = vpop.f32.mrf.mxu2 }
 0x302   :  { %v1695_v29 = vpop.f32.mrf.mxu0 }
 0x307   :  { %v2228_v30 = vpop.f32.mrf.mxu2 }
 0x30a   :  { %v1697_v31 = vpop.f32.mrf.mxu0 }
 0x30b   :  { %v1708_v35 = vpop.f32.mrf.mxu1 }
 0x30f   :  { %v1682_v39 = vpop.f32.mrf.mxu3 }
 0x310   :  { %v1683_v43 = vadd.f32 %v1682_v39, %v1669_v17  ;;  %v3746_v17 = vld [vmem:[%s5040_s0] ss:$0 sm:$0xff] }
 0x312   :  { %v1696_v32 = vadd.f32 %v1695_v29, %v1683_v43  ;;  %v1943_v34 = vpop.f32.mrf.mxu0  ;;  %v3748_v29 = vld [vmem:[%s5025_s16] ss:$0 sm:$0xff] }
 0x313   :  { %v1710_v20 = vpop.f32.mrf.mxu1 }
 0x314   :  { %v1709_v44 = vadd.f32 %v1708_v35, %v1696_v32  ;;  %v3732_v20 = vld [vmem:[%s5027_s17 + $0x10] sm:$0xff] }
 0x316   :  { %v1713_v45 = vrot.slane %v1709_v44, 1  ;;  %v3749_v44 = vld [vmem:[%s5026_s18] ss:$0 sm:$0xff] }
 0x317   :  { %v1684_v48 = vpop.f32.mrf.mxu3 }
 0x318   :  { %v1715_v49 = vsel %vm1326_vm3, %v1713_v45, 0.0 }
 0x319   :  { %v1918_v50 = vadd.f32 %v1917_v21, %v1715_v49 }
 0x31a   :  { %v1945_v28 = vpop.f32.mrf.mxu0 }
 0x31b   :  { %v1956_v36 = vpop.f32.mrf.mxu1 }
 0x31f   :  { %v1930_v54 = vpop.f32.mrf.mxu3 }
 0x320   :  { %v1931_v55 = vadd.f32 %v1930_v54, %v1918_v50 }
 0x322   :  { %v2252_v26 = vpop.f32.mrf.mxu0  ;;  %v1944_v33 = vadd.f32 %v1943_v34, %v1931_v55  ;;  %v3733_v34 = vld [vmem:[%s5027_s17 + $0x18] sm:$0xff] }
 0x323   :  { %v1958_v19 = vpop.f32.mrf.mxu1  ;;  %2501 = vmatpush.bf16.msrb.mxu2 %v3733_v34 }
 0x324   :  { %v1957_v41 = vadd.f32 %v1956_v36, %v1944_v33  ;;  %v3735_v33 = vld [vmem:[%s5027_s17 + $0x28] sm:$0xff] }
 0x325   :  { %2565 = vmatpush.bf16.msrb.mxu3 %v3735_v33 }
 0x327   :  { %v1932_v53 = vpop.f32.mrf.mxu3  ;;  %2502 = vmatpush.bf16.msrb.mxu2 %v3732_v20 }
 0x32a   :  { %v2254_v57 = vpop.f32.mrf.mxu0 }
 0x32b   :  { %v2265_v58 = vpop.f32.mrf.mxu1 }
 0x32f   :  { %v2239_v47 = vpop.f32.mrf.mxu3 }
 0x330   :  { %v2240_v37 = vadd.f32 %v2239_v47, %v2226_v25 }
 0x332   :  { %v2253_v61 = vadd.f32 %v2252_v26, %v2240_v37 }
 0x333   :  { %v2267_v62 = vpop.f32.mrf.mxu1 }
 0x334   :  { %v2266_v0 = vadd.f32 %v2265_v58, %v2253_v61  ;;  %v3734_v62 = vld [vmem:[%s5027_s17 + $0x20] sm:$0xff] }
 0x335   :  { %2566 = vmatpush.bf16.msrb.mxu3 %v3734_v62 }
 0x336   :  { %v2270_v1 = vrot.slane %v2266_v0, 2  ;;  %v3750_v0 = vld [vmem:[%s5026_s18 + $0x1] ss:$0 sm:$0xff] }
 0x337   :  { %v2241_v6 = vpop.f32.mrf.mxu3 }
 0x338   :  { %v2273_v46 = vsel %vm2272_vm4, %v2270_v1, 0.0 }
 0x339   :  { %v2274_v27 = vadd.f32 %v2273_v46, %v1957_v41 }
 0x33b   :  { %v2279_v60 = vadd.f32 %v3743_v3, %v2274_v27 }
 0x33d   :  { %v2280_v2 = vmax.f32 %v2279_v60, 0.0 }
 0x33f   :  { %v2285_v16 = vmul.f32 %v3744_v52, %v2280_v2 }
 0x341   :  { %v2290_v56 = vadd.f32 %v3745_v23, %v2285_v16 }
 0x343   :  { %v2291_v4 = vpack.c.bf16 %v2290_v56, %v2290_v56 }
 0x345   :  { %3487 = vmatmul.msk.bf16.vlgmr.msra.gmra.mxu2 %vm85_vm0, %v2291_v4  ;;  %3496 = vmatmul.msk.bf16.vlgmr.msra.gmra.mxu3 %vm85_vm0, %v2291_v4 }
 0x346   :  { %3509 = vmatmul.msk.bf16.vlgmr.msrb.gmra.mxu0 %vm85_vm0, %v2291_v4 }
 0x3c3   :  { %v2384_v59 = vpop.f32.mrf.mxu0 }
 0x3c4   :  { %v2389_v11 = vrot.slane %v2384_v59, 2 }
 0x3c6   :  { %v2391_v18 = vsel %vm2272_vm4, %v2389_v11, 0.0 }
 0x3c8   :  { %v2325_v8 = vpop.f32.mrf.mxu2  ;;  %v2354_v9 = vpop.f32.mrf.mxu3 }
 0x3c9   :  { %v2330_v10 = vrot.slane %v2325_v8, 1 }
 0x3cb   :  { %v2332_v12 = vsel %vm1326_vm3, %v2330_v10, 0.0  ;;  %v2386_v13 = vpop.f32.mrf.mxu0 }
 0x3cc   :  { %v2355_v14 = vadd.f32 %v2354_v9, %v2332_v12 }
 0x3ce   :  { %v2392_v21 = vadd.f32 %v2391_v18, %v2355_v14  ;;  %v3736_v18 = vld [vmem:[%s5027_s17 + $0x30] sm:$0xff] }
 0x3d0   :  { %v2397_v25 = vadd.f32 %v3746_v17, %v2392_v21  ;;  %v2327_v30 = vpop.f32.mrf.mxu2  ;;  %v2356_v31 = vpop.f32.mrf.mxu3  ;;  %v3737_v17 = vld [vmem:[%s5027_s17 + $0x38] sm:$0xff]  ;;  %v3751_v21 = vld [vmem:[%s5026_s18 + $0x2] ss:$0 sm:$0xff] }
 0x3d1   :  { %2629 = vmatpush.bf16.msra.mxu0 %v3737_v17 }
 0x3d2   :  { %v2402_v35 = vmul.f32 %v3747_v24, %v2397_v25 }
 0x3d4   :  { %v2407_v39 = vadd.f32 %v3748_v29, %v2402_v35 }
 0x3d5   :  { %2630 = vmatpush.bf16.msra.mxu0 %v3736_v18 }
 0x3d6   :  { %v2408_v43 = vadd.f32 %v2407_v39, %v4355_v38 }
 0x3d8   :  { %v2409_v32 = vpack.c.bf16 %v2408_v43, %v2408_v43 }
 0x3da   :  { %3518 = vmatmul.msk.bf16.vlgmr.msrb.gmra.mxu1 %vm85_vm0, %v2409_v32 }
 0x457   :  { %v2440_v45 = vpop.f32.mrf.mxu1 }
 0x458   :  { %v2441_v48 = vadd.f32 %v3749_v44, %v2440_v45 }
 0x45a   :  { %v2463_v38 = vmax.f32 %v2441_v48, 0.0  ;;  %v3519_v50 = vmul.f32 -1.442695, %v2441_v48 }
 0x45c   :  { %2465 = vrot.lane.b32.xlu1 %v2463_v38, %s3770_s22  ;;  %3753 = vpow2.f32 %v3519_v50 }
 0x45f   :  { %v2442_v49 = vpop.f32.mrf.mxu1 }
 0x462   :  { %v3754_v28 = vpop.eup %3753 }
 0x463   :  { %v2447_v36 = vadd.f32 1.0, %v3754_v28 }
 0x465   :  { %3755 = vrcp.f32 %v2447_v36  ;;  %v2459_v19 = vand.u32 2147483648, %v2447_v36  ;;  %vm2453_vm6 = vweird.f32 %v2447_v36  ;;  %v2457_v15 = vand.u32 2147483647, %v2447_v36 }
 0x467   :  { %v2460_v42 = vor.u32 1.1754944e-38, %v2459_v19  ;;  %vm2458_vm8 = vcmp.eq.f32.partialorder %v2457_v15, 8.507059e+37 }
 0x46b   :  { %v3756_v54 = vpop.eup %3755 }
 0x46c   :  { %v2449_v22 = vmul.f32 %v3756_v54, %v2447_v36  ;;  %vm2454_vm5 = vweird.f32 %v3756_v54 }
 0x46d   :  { %vm2455_vm7 = vmor %vm2453_vm6, %vm2454_vm5 }
 0x46e   :  { %v2450_v51 = vsub.f32 1.0, %v2449_v22 }
 0x470   :  { %v2451_v63 = vmul.f32 %v3756_v54, %v2450_v51 }
 0x472   :  { %v2452_v26 = vadd.f32 %v3756_v54, %v2451_v63 }
 0x474   :  { %v2456_v40 = vsel %vm2455_vm7, %v3756_v54, %v2452_v26  ;;  %v3752_v26 = vld [vmem:[%s5026_s18 + $0x3] ss:$0 sm:$0xff] }
 0x475   :  { %v2461_v53 = vsel %vm2458_vm8, %v2460_v42, %v2456_v40 }
 0x476   :  { %v2469_v57 = vsub.f32 1.0, %v2461_v53 }
 0x478   :  { %v2470_v47 = vmul.f32 %v2469_v57, %v2408_v43 }
 0x4ce   :  { %v2466_v58 = vpop.permute.xlu1 %2465 }
 0x4cf   :  { %v2468_v55 = vmul.f32 %v2466_v58, %v2461_v53 }
 0x4d1   :  { %v2471_v37 = vadd.f32 %v2470_v47, %v2468_v55 }
 0x4d3   :  { %v2472_v61 = vpack.c.bf16 %v2471_v37, %v2471_v37 }
 0x4d5   :  { %3532 = vmatmul.msk.bf16.vlgmr.msrb.gmra.mxu2 %vm85_vm0, %v2472_v61 }
 0x558   :  { %v2504_v1 = vpop.f32.mrf.mxu2 }
 0x559   :  { %v2505_v41 = vadd.f32 %v3750_v0, %v2504_v1 }
 0x55b   :  { %v2527_v3 = vmax.f32 %v2505_v41, 0.0  ;;  %v3533_v46 = vmul.f32 -1.442695, %v2505_v41 }
 0x55d   :  { %2529 = vrot.lane.b32.xlu2 %v2527_v3, %s3770_s22  ;;  %3757 = vpow2.f32 %v3533_v46 }
 0x560   :  { %v2506_v6 = vpop.f32.mrf.mxu2 }
 0x563   :  { %v3758_v27 = vpop.eup %3757 }
 0x564   :  { %v2511_v60 = vadd.f32 1.0, %v3758_v27 }
 0x566   :  { %3759 = vrcp.f32 %v2511_v60  ;;  %v2523_v4 = vand.u32 2147483648, %v2511_v60  ;;  %vm2517_vm10 = vweird.f32 %v2511_v60  ;;  %v2521_v5 = vand.u32 2147483647, %v2511_v60 }
 0x568   :  { %v2524_v59 = vor.u32 1.1754944e-38, %v2523_v4  ;;  %vm2522_vm12 = vcmp.eq.f32.partialorder %v2521_v5, 8.507059e+37 }
 0x56c   :  { %v3760_v52 = vpop.eup %3759 }
 0x56d   :  { %v2513_v2 = vmul.f32 %v3760_v52, %v2511_v60  ;;  %vm2518_vm9 = vweird.f32 %v3760_v52 }
 0x56e   :  { %vm2519_vm11 = vmor %vm2517_vm10, %vm2518_vm9 }
 0x56f   :  { %v2514_v23 = vsub.f32 1.0, %v2513_v2 }
 0x571   :  { %v2515_v16 = vmul.f32 %v3760_v52, %v2514_v23 }
 0x573   :  { %v2516_v56 = vadd.f32 %v3760_v52, %v2515_v16 }
 0x575   :  { %v2520_v7 = vsel %vm2519_vm11, %v3760_v52, %v2516_v56 }
 0x576   :  { %v2525_v8 = vsel %vm2522_vm12, %v2524_v59, %v2520_v7 }
 0x577   :  { %v2533_v9 = vsub.f32 1.0, %v2525_v8 }
 0x579   :  { %v2534_v12 = vmul.f32 %v2533_v9, %v2471_v37 }
 0x5b7   :  { %v2530_v11 = vpop.permute.xlu2 %2529 }
 0x5b8   :  { %v2532_v10 = vmul.f32 %v2530_v11, %v2525_v8 }
 0x5ba   :  { %v2535_v13 = vadd.f32 %v2534_v12, %v2532_v10 }
 0x5bc   :  { %v2536_v14 = vpack.c.bf16 %v2535_v13, %v2535_v13 }
 0x5be   :  { %3546 = vmatmul.msk.bf16.vlgmr.msrb.gmra.mxu3 %vm85_vm0, %v2536_v14 }
 0x641   :  { %v2568_v24 = vpop.f32.mrf.mxu3 }
 0x642   :  { %v2569_v25 = vadd.f32 %v3751_v21, %v2568_v24 }
 0x644   :  { %v2591_v29 = vmax.f32 %v2569_v25, 0.0  ;;  %v3547_v31 = vmul.f32 -1.442695, %v2569_v25 }
 0x646   :  { %2593 = vrot.lane.b32.xlu0 %v2591_v29, %s3770_s22  ;;  %3761 = vpow2.f32 %v3547_v31 }
 0x649   :  { %v2570_v30 = vpop.f32.mrf.mxu3 }
 0x64c   :  { %v3762_v35 = vpop.eup %3761 }
 0x64d   :  { %v2575_v39 = vadd.f32 1.0, %v3762_v35 }
 0x64f   :  { %3763 = vrcp.f32 %v2575_v39  ;;  %v2587_v45 = vand.u32 2147483648, %v2575_v39  ;;  %vm2581_vm14 = vweird.f32 %v2575_v39  ;;  %v2585_v48 = vand.u32 2147483647, %v2575_v39 }
 0x651   :  { %v2588_v49 = vor.u32 1.1754944e-38, %v2587_v45  ;;  %vm2586_vm1 = vcmp.eq.f32.partialorder %v2585_v48, 8.507059e+37 }
 0x655   :  { %v3764_v43 = vpop.eup %3763 }
 0x656   :  { %v2577_v32 = vmul.f32 %v3764_v43, %v2575_v39  ;;  %vm2582_vm13 = vweird.f32 %v3764_v43 }
 0x657   :  { %vm2583_vm15 = vmor %vm2581_vm14, %vm2582_vm13 }
 0x658   :  { %v2578_v34 = vsub.f32 1.0, %v2577_v32 }
 0x65a   :  { %v2579_v20 = vmul.f32 %v3764_v43, %v2578_v34 }
 0x65c   :  { %v2580_v44 = vadd.f32 %v3764_v43, %v2579_v20 }
 0x65e   :  { %v2584_v38 = vsel %vm2583_vm15, %v3764_v43, %v2580_v44 }
 0x65f   :  { %v2589_v50 = vsel %vm2586_vm1, %v2588_v49, %v2584_v38 }
 0x660   :  { %v2597_v28 = vsub.f32 1.0, %v2589_v50 }
 0x662   :  { %v2598_v22 = vmul.f32 %v2597_v28, %v2535_v13 }
 0x6b8   :  { %v2594_v36 = vpop.permute.xlu0 %2593 }
 0x6b9   :  { %v2596_v54 = vmul.f32 %v2594_v36, %v2589_v50 }
 0x6bb   :  { %v2599_v51 = vadd.f32 %v2598_v22, %v2596_v54 }
 0x6bd   :  { %v2600_v63 = vpack.c.bf16 %v2599_v51, %v2599_v51 }
 0x6bf   :  { %3560 = vmatmul.msk.bf16.vlgmr.msra.gmra.mxu0 %vm85_vm0, %v2600_v63 }
 0x73c   :  { %v2632_v19 = vpop.f32.mrf.mxu0 }
 0x73d   :  { %v2633_v15 = vadd.f32 %v3752_v26, %v2632_v19 }
 0x73f   :  { %v2655_v40 = vmax.f32 %v2633_v15, 0.0  ;;  %v3561_v53 = vmul.f32 -1.442695, %v2633_v15 }
 0x741   :  { %2657 = vrot.lane.b32.xlu1 %v2655_v40, %s3770_s22  ;;  %3765 = vpow2.f32 %v3561_v53 }
 0x744   :  { %v2634_v42 = vpop.f32.mrf.mxu0 }
 0x747   :  { %v3766_v57 = vpop.eup %3765 }
 0x748   :  { %v2639_v58 = vadd.f32 1.0, %v3766_v57 }
 0x74a   :  { %3767 = vrcp.f32 %v2639_v58  ;;  %v2651_v62 = vand.u32 2147483648, %v2639_v58  ;;  %vm2645_vm3 = vweird.f32 %v2639_v58  ;;  %v2649_v0 = vand.u32 2147483647, %v2639_v58 }
 0x74c   :  { %v2652_v41 = vor.u32 1.1754944e-38, %v2651_v62  ;;  %vm2650_vm5 = vcmp.eq.f32.partialorder %v2649_v0, 8.507059e+37 }
 0x750   :  { %v3768_v55 = vpop.eup %3767 }
 0x751   :  { %v2641_v47 = vmul.f32 %v3768_v55, %v2639_v58  ;;  %vm2646_vm2 = vweird.f32 %v3768_v55 }
 0x752   :  { %vm2647_vm4 = vmor %vm2645_vm3, %vm2646_vm2 }
 0x753   :  { %v2642_v37 = vsub.f32 1.0, %v2641_v47 }
 0x755   :  { %v2643_v61 = vmul.f32 %v3768_v55, %v2642_v37 }
 0x757   :  { %v2644_v33 = vadd.f32 %v3768_v55, %v2643_v61 }
 0x759   :  { %v2648_v1 = vsel %vm2647_vm4, %v3768_v55, %v2644_v33 }
 0x75a   :  { %v2653_v3 = vsel %vm2650_vm5, %v2652_v41, %v2648_v1 }
 0x75b   :  { %v2661_v6 = vsub.f32 1.0, %v2653_v3 }
 0x75d   :  { %v2662_v60 = vmul.f32 %v2661_v6, %v2599_v51 }
 0x7b3   :  { %v2658_v46 = vpop.permute.xlu1 %2657 }
 0x7b4   :  { %v2660_v27 = vmul.f32 %v2658_v46, %v2653_v3 }
 0x7b6   :  { %v2663_v52 = vadd.f32 %v2662_v60, %v2660_v27 }
 0x7b8   :  { %2664 = vst.msk [vmem:[%s5028_s19] sm:$0xff] %vm85_vm0, %v2663_v52 }

</bundles_post_ra>
